<compile_context>
chip_gen: v7x
topology: tpu7x:2x2x1
jax: 0.10.0
libtpu: 0.0.40
codegen_flags: <defaults>
</compile_context>

<pallas_src>
import jax
import jax.numpy as jnp
from jax import lax
from jax.experimental import pallas as pl
from jax.experimental.pallas import tpu as pltpu
import numpy as np

EPS = 1e-5  # nn.BatchNorm2d default eps


def bottleneck_kernel(x_ref, w1_ref, b1_ref, w2_ref, b2_ref, w3_ref, b3_ref,
                      out_ref, pad_ref):
    # x_ref:   (NB, H, W, Cin)        bf16  (NB images per grid step)
    # out_ref: (NB, H, W, Cout)       bf16
    # pad_ref: (NB, H+2, W, KP)       bf16 VMEM scratch (kw-im2col, H-padded,
    #                                 KP = 3*planes lane-padded to 128)
    NB, H, W, Cin = x_ref.shape
    planes = w1_ref.shape[1]
    KP = w2_ref.shape[1]
    Cout = w3_ref.shape[1]
    NBHW = NB * H * W
    kpad = KP - 3 * planes            # static zero-pad width (lanes)

    # Zero only the two halo rows per image (interior is fully rewritten every
    # step).  Done every step (not pl.when(program_id == 0)) so it stays
    # correct when the "parallel" batch axis is sharded across TensorCores
    # with per-core scratch.  Full-KP-width (lane-dense) stores.
    zrow = jnp.zeros((NB, 1, W, KP), pad_ref.dtype)
    pad_ref[:, 0:1] = zrow
    pad_ref[:, H + 1:H + 2] = zrow

    x2d = x_ref[...].reshape(NBHW, Cin)          # view (W % 16 == 0, bf16)

    # ---- conv1 (1x1, BN scale pre-folded into w1) + bias + ReLU -------------
    y1 = jnp.dot(x2d, w1_ref[...], preferred_element_type=jnp.float32)
    y1 = jnp.maximum(y1 + b1_ref[...], 0.0)      # (NBHW, planes) f32

    # ---- kw-im2col patch: lanes = [ y1(w-1) | y1(w) | y1(w+1) | 0-pad ] -----
    # Built in bf16 (single cast of y1); roll-across-image-boundary values are
    # masked to zero by the w_idx edge masks, so the flattened (NB*HW) roll is
    # safe across image boundaries as well as row boundaries.
    y1b = y1.astype(pad_ref.dtype)
    w_idx = lax.broadcasted_iota(jnp.int32, (NBHW, 1), 0) % W
    left = jnp.where(w_idx == 0, jnp.zeros_like(y1b), jnp.roll(y1b, 1, axis=0))
    right = jnp.where(w_idx == W - 1, jnp.zeros_like(y1b),
                      jnp.roll(y1b, -1, axis=0))
    parts = [left, y1b, right]
    if kpad:
        parts.append(jnp.zeros((NBHW, kpad), pad_ref.dtype))
    patch = jnp.concatenate(parts, axis=-1)      # (NBHW, KP) bf16, lane-dense
    pad_ref[:, 1:H + 1] = patch.reshape(NB, H, W, KP)

    # ---- conv2 (3x3, pad=1) as 3 MXU matmuls with K = KP --------------------
    # kh taps are slabs of the H-padded scratch (no sublane shifts); keep the
    # three dots as a pure accumulate chain (MRB-friendly on v7x).
    def kh_slab(kh):
        return pad_ref[:, kh:kh + H].reshape(NBHW, KP)

    acc = jnp.dot(kh_slab(0), w2_ref[0], preferred_element_type=jnp.float32)
    acc = acc + jnp.dot(kh_slab(1), w2_ref[1], preferred_element_type=jnp.float32)
    acc = acc + jnp.dot(kh_slab(2), w2_ref[2], preferred_element_type=jnp.float32)
    y2 = jnp.maximum(acc + b2_ref[...], 0.0)     # (NBHW, planes) f32

    # ---- conv3 (1x1) + bias + identity residual + ReLU, stored as bf16 ------
    y3 = jnp.dot(y2.astype(w3_ref.dtype), w3_ref[...],
                 preferred_element_type=jnp.float32) + b3_ref[...]
    out = jnp.maximum(y3 + x2d.astype(jnp.float32), 0.0)
    out_ref[...] = out.astype(out_ref.dtype).reshape(NB, H, W, Cout)


def bottleneck_forward(x_nhwc, p, images_per_step=None):
    N, H, W, Cin = x_nhwc.shape
    planes = p["w1"].shape[1]
    KP = p["w2"].shape[1]
    Cout = p["w3"].shape[1]
    assert Cin == Cout, "identity residual requires inplanes == planes * 4"
    assert W % 16 == 0, ("bf16 sublane tile is (16,128): W % 16 == 0 keeps the "
                         "(NB,H,W,C)->(NB*HW,C) reshapes zero-cost views")

    # Block NB images per grid step to amortize the ~0.35us per-step overhead,
    # while keeping several grid steps so BlockSpec double-buffering overlaps
    # the HBM DMA with compute (and v7x's two TCs each get work).
    if images_per_step is None:
        images_per_step = 2 if (N % 2 == 0 and N > 2) else 1
    NB = images_per_step
    assert N % NB == 0, "batch must be divisible by images_per_step"
    NBHW = NB * H * W

    def rep(arr):
        nd = arr.ndim
        return pl.BlockSpec(arr.shape, lambda n, _nd=nd: (0,) * _nd)

    # Scoped-VMEM budget: double-buffered blocks + weights + scratch + the
    # actually-live f32/bf16 temps (y1, acc, y2, y3, out, x_f32, patch slabs).
    wbytes = sum(int(np.prod(p[k].shape)) * p[k].dtype.itemsize
                 for k in ("w1", "b1", "w2", "b2", "w3", "b3"))
    est = (2 * NBHW * Cin * x_nhwc.dtype.itemsize        # x blocks (bf16, x2)
           + 2 * NBHW * Cout * 2                         # out blocks (bf16, x2)
           + 2 * wbytes                                  # weights / biases
           + NB * (H + 2) * W * KP * 2                   # conv2 im2col scratch
           + NBHW * (4 * planes + 3 * Cout) * 4          # live f32 temps
           + NBHW * 2 * KP * 2                           # live bf16 temps
           + (2 << 20))                                  # slack
    try:  # clamp to physical VMEM (v7x has only 64 MiB per TensorCore)
        vmem_cap = int(pltpu.get_tpu_info().vmem_capacity_bytes * 7 // 8)
    except Exception:
        vmem_cap = 48 << 20
    vmem_limit = int(min(max(est, 32 << 20), vmem_cap))

    return pl.pallas_call(
        bottleneck_kernel,
        out_shape=jax.ShapeDtypeStruct((N, H, W, Cout), jnp.bfloat16),
        grid=(N // NB,),
        in_specs=[
            pl.BlockSpec((NB, H, W, Cin), lambda n: (n, 0, 0, 0)),
            rep(p["w1"]), rep(p["b1"]),
            rep(p["w2"]), rep(p["b2"]),
            rep(p["w3"]), rep(p["b3"]),
        ],
        out_specs=pl.BlockSpec((NB, H, W, Cout), lambda n: (n, 0, 0, 0)),
        scratch_shapes=[pltpu.VMEM((NB, H + 2, W, KP), jnp.bfloat16)],
        compiler_params=pltpu.CompilerParams(
            dimension_semantics=("parallel",),
            vmem_limit_bytes=vmem_limit),
    )(x_nhwc, p["w1"], p["b1"], p["w2"], p["b2"], p["w3"], p["b3"])


def init_params(key, inplanes, planes):
    """Deterministic synthetic parameters (PyTorch shapes -> kernel layout)."""
    expansion = 4
    cout = planes * expansion
    ks = jax.random.split(key, 18)

    def rnd(k, shape, s=0.1):
        return s * jax.random.normal(k, shape, jnp.float32)

    # conv weights (PyTorch OIHW) + conv biases
    w1 = rnd(ks[0], (planes, inplanes, 1, 1)); b1c = rnd(ks[1], (planes,))
    w2 = rnd(ks[2], (planes, planes, 3, 3));   b2c = rnd(ks[3], (planes,))
    w3 = rnd(ks[4], (cout, planes, 1, 1));     b3c = rnd(ks[5], (cout,))

    def bn_fold(kg, kb, km, kv, c, conv_bias):
        gamma = 1.0 + rnd(kg, (c,))
        beta = rnd(kb, (c,))
        mean = rnd(km, (c,))
        var = jnp.abs(rnd(kv, (c,))) + 0.5
        scale = gamma / jnp.sqrt(var + EPS)
        bias = beta - mean * scale + scale * conv_bias   # conv bias folded in
        return scale, bias

    s1, b1 = bn_fold(ks[6], ks[7], ks[8], ks[9], planes, b1c)
    s2, b2 = bn_fold(ks[10], ks[11], ks[12], ks[13], planes, b2c)
    s3, b3 = bn_fold(ks[14], ks[15], ks[16], ks[17], cout, b3c)

    # Kernel layout: BN scales folded into the conv-weight output columns,
    # weights cast to bf16 (MXU inputs); biases stay f32 (VPU epilogue).
    # conv2's K axis (3*planes) is zero-padded to KP (multiple of 128) so the
    # im2col scratch is lane-dense; the zero K rows cost no MXU cycles.
    w1_k = jnp.transpose(w1[:, :, 0, 0]) * s1[None, :]                 # (Cin, planes)
    w2_hwio = jnp.transpose(w2, (2, 3, 1, 0))                          # (3,3,Ci,Co)
    w2_k = (w2_hwio * s2[None, None, None, :]).reshape(3, 3 * planes, planes)
    KP = ((3 * planes + 127) // 128) * 128
    if KP != 3 * planes:
        w2_k = jnp.pad(w2_k, ((0, 0), (0, KP - 3 * planes), (0, 0)))
    w3_k = jnp.transpose(w3[:, :, 0, 0]) * s3[None, :]                 # (planes, Cout)

    kparams = {
        "w1": w1_k.astype(jnp.bfloat16), "b1": b1.reshape(1, planes),
        "w2": w2_k.astype(jnp.bfloat16), "b2": b2.reshape(1, planes),
        "w3": w3_k.astype(jnp.bfloat16), "b3": b3.reshape(1, cout),
    }
    # Un-fused f32 parameters for the module-faithful reference.
    fref = {
        "w1": jnp.transpose(w1[:, :, 0, 0]),
        "w2": w2_hwio,
        "w3": jnp.transpose(w3[:, :, 0, 0]),
        "s1": s1.reshape(1, planes), "b1": b1.reshape(1, planes),
        "s2": s2.reshape(1, planes), "b2": b2.reshape(1, planes),
        "s3": s3.reshape(1, cout),   "b3": b3.reshape(1, cout),
    }
    return kparams, fref


def ref_forward_bf16(x_bf16, kp):
    """Mirrors the kernel numerics: bf16 conv inputs/weights, f32 accum+epilogue."""
    planes = kp["w1"].shape[1]

    def conv(a, w_hwio, pad):
        return lax.conv_general_dilated(
            a, w_hwio, (1, 1), [(pad, pad), (pad, pad)],
            dimension_numbers=("NHWC", "HWIO", "NHWC"),
            preferred_element_type=jnp.float32)

    y = jnp.maximum(conv(x_bf16, kp["w1"][None, None], 0) + kp["b1"], 0.0)
    w2_hwio = kp["w2"][:, :3 * planes, :].reshape(3, 3, planes, planes)
    y = jnp.maximum(conv(y.astype(jnp.bfloat16), w2_hwio, 1) + kp["b2"], 0.0)
    y = conv(y.astype(jnp.bfloat16), kp["w3"][None, None], 0) + kp["b3"]
    return jnp.maximum(y + x_bf16.astype(jnp.float32), 0.0)


def ref_forward_f32(x_f32, fp):
    """Module-faithful f32 reference (eval-mode BN as per-channel scale/bias)."""
    def conv(a, w_hwio, pad):
        return lax.conv_general_dilated(
            a, w_hwio, (1, 1), [(pad, pad), (pad, pad)],
            dimension_numbers=("NHWC", "HWIO", "NHWC"))

    y = jnp.maximum(conv(x_f32, fp["w1"][None, None], 0) * fp["s1"] + fp["b1"], 0.0)
    y = jnp.maximum(conv(y, fp["w2"], 1) * fp["s2"] + fp["b2"], 0.0)
    y = conv(y, fp["w3"][None, None], 0) * fp["s3"] + fp["b3"]
    return jnp.maximum(y + x_f32, 0.0)


if __name__ == "__main__":
    key = jax.random.PRNGKey(0)
    k_x, k_p = jax.random.split(key)

    N, H, W = 8, 16, 16
    planes = 32
    inplanes = planes * 4        # 128 -> identity residual + lane-dense channels

    # PyTorch input would be NCHW (8, 128, 16, 16); transpose to NHWC, cast bf16.
    x_nchw = 0.5 * jax.random.normal(k_x, (N, inplanes, H, W), jnp.float32)
    x_nhwc = jnp.transpose(x_nchw, (0, 2, 3, 1))
    x_bf16 = x_nhwc.astype(jnp.bfloat16)

    kparams, fref = init_params(k_p, inplanes, planes)

    out = jax.block_until_ready(
        bottleneck_forward(x_bf16, kparams, images_per_step=2))
    out_f32 = np.asarray(out, dtype=np.float32)

    # Check against a reference with identical bf16-input / f32-accumulate
    # convolutions (same folded parameters); tolerance covers the bf16 output
    # quantization of the kernel result.
    ref_m = jax.block_until_ready(ref_forward_bf16(x_bf16, kparams))
    np.testing.assert_allclose(out_f32, np.asarray(ref_m), rtol=1e-2, atol=1e-2)

    # Loose check against the pure-f32 module (bound on bf16 quantization error).
    ref_f = jax.block_until_ready(ref_forward_f32(x_nhwc, fref))
    np.testing.assert_allclose(out_f32, np.asarray(ref_f), rtol=1e-1, atol=1e-1)

    print("KERNEL_OK")
</pallas_src>

<mosaic_0001>
module attributes {stable_mosaic.version = 11 : i64} {
  func.func @bottleneck_kernel(%arg0: i32, %arg1: memref<2x16x16x128xbf16, #tpu.memory_space<vmem>>, %arg2: memref<128x32xbf16, #tpu.memory_space<vmem>>, %arg3: memref<1x32xf32, #tpu.memory_space<vmem>>, %arg4: memref<3x128x32xbf16, #tpu.memory_space<vmem>>, %arg5: memref<1x32xf32, #tpu.memory_space<vmem>>, %arg6: memref<32x128xbf16, #tpu.memory_space<vmem>>, %arg7: memref<1x128xf32, #tpu.memory_space<vmem>>, %arg8: memref<2x16x16x128xbf16, #tpu.memory_space<vmem>>, %arg9: memref<2x18x16x128xbf16, #tpu.memory_space<vmem>>) attributes {dimension_semantics = [#tpu.dimension_semantics<parallel>], iteration_bounds = array<i64: 4>, scalar_prefetch = 0 : i64, scratch_operands = 1 : i64, tpu.core_type = #tpu.core_type<tc>, window_params = [{transform_indices = @transform_0, window_bounds = array<i64: 2, 16, 16, 128>}, {pipeline_mode = #tpu.pipeline_mode<synchronous>, transform_indices = @transform_1, window_bounds = array<i64: 128, 32>}, {pipeline_mode = #tpu.pipeline_mode<synchronous>, transform_indices = @transform_2, window_bounds = array<i64: 1, 32>}, {pipeline_mode = #tpu.pipeline_mode<synchronous>, transform_indices = @transform_3, window_bounds = array<i64: 3, 128, 32>}, {pipeline_mode = #tpu.pipeline_mode<synchronous>, transform_indices = @transform_4, window_bounds = array<i64: 1, 32>}, {pipeline_mode = #tpu.pipeline_mode<synchronous>, transform_indices = @transform_5, window_bounds = array<i64: 32, 128>}, {pipeline_mode = #tpu.pipeline_mode<synchronous>, transform_indices = @transform_6, window_bounds = array<i64: 1, 128>}, {transform_indices = @transform_7, window_bounds = array<i64: 2, 16, 16, 128>}]} {
    %cst = arith.constant 0.000000e+00 : bf16
    %0 = vector.broadcast %cst : bf16 to vector<2x1x16x128xbf16>
    %c0 = arith.constant 0 : index
    %c0_0 = arith.constant 0 : index
    %c0_1 = arith.constant 0 : index
    %c0_2 = arith.constant 0 : index
    %1 = vector.load %arg9[%c0, %c0_0, %c0_1, %c0_2] : memref<2x18x16x128xbf16, #tpu.memory_space<vmem>>, vector<2x1x16x128xbf16>
    tpu.vector_store %arg9[%c0, %c0_0, %c0_1, %c0_2], %0 {strides = array<i32>} : memref<2x18x16x128xbf16, #tpu.memory_space<vmem>>, vector<2x1x16x128xbf16>,
    %c0_3 = arith.constant 0 : index
    %c17 = arith.constant 17 : index
    %c0_4 = arith.constant 0 : index
    %c0_5 = arith.constant 0 : index
    %2 = vector.load %arg9[%c0_3, %c17, %c0_4, %c0_5] : memref<2x18x16x128xbf16, #tpu.memory_space<vmem>>, vector<2x1x16x128xbf16>
    tpu.vector_store %arg9[%c0_3, %c17, %c0_4, %c0_5], %0 {strides = array<i32>} : memref<2x18x16x128xbf16, #tpu.memory_space<vmem>>, vector<2x1x16x128xbf16>,
    %c0_6 = arith.constant 0 : index
    %c0_7 = arith.constant 0 : index
    %c0_8 = arith.constant 0 : index
    %c0_9 = arith.constant 0 : index
    %3 = vector.load %arg1[%c0_6, %c0_7, %c0_8, %c0_9] : memref<2x16x16x128xbf16, #tpu.memory_space<vmem>>, vector<2x16x16x128xbf16>
    %4 = vector.shape_cast %3 : vector<2x16x16x128xbf16> to vector<512x128xbf16>
    %c0_10 = arith.constant 0 : index
    %c0_11 = arith.constant 0 : index
    %5 = vector.load %arg2[%c0_10, %c0_11] : memref<128x32xbf16, #tpu.memory_space<vmem>>, vector<128x32xbf16>
    %cst_12 = arith.constant dense<0.000000e+00> : vector<512x32xf32>
    %6 = tpu.matmul %4, %5, %cst_12 {dimension_numbers = #tpu.dot_dimension_numbers<[1], [0], [0], [1], [0, 0, 1, 1], [], []>} : vector<512x128xbf16>, vector<128x32xbf16>, vector<512x32xf32> -> vector<512x32xf32>
    %c0_13 = arith.constant 0 : index
    %c0_14 = arith.constant 0 : index
    %7 = vector.load %arg3[%c0_13, %c0_14] : memref<1x32xf32, #tpu.memory_space<vmem>>, vector<1x32xf32>
    %8 = vector.broadcast %7 : vector<1x32xf32> to vector<512x32xf32>
    %9 = arith.addf %6, %8 : vector<512x32xf32>
    %cst_15 = arith.constant 0.000000e+00 : f32
    %10 = vector.broadcast %cst_15 : f32 to vector<512x32xf32>
    %11 = arith.maximumf %9, %10 : vector<512x32xf32>
    %12 = arith.truncf %11 : vector<512x32xf32> to vector<512x32xbf16>
    %13 = tpu.iota {dimensions = array<i32: 0>} : vector<512x1xi32>
    %c16_i32 = arith.constant 16 : i32
    %c0_i32 = arith.constant 0 : i32
    %14 = arith.cmpi eq, %c16_i32, %c0_i32 : i32
    %c1_i32 = arith.constant 1 : i32
    %15 = arith.select %14, %c1_i32, %c16_i32 : i32
    %16 = vector.broadcast %15 : i32 to vector<512x1xi32>
    %17 = arith.remsi %13, %16 : vector<512x1xi32>
    %c0_i32_16 = arith.constant 0 : i32
    %18 = vector.broadcast %c0_i32_16 : i32 to vector<512x1xi32>
    %19 = arith.cmpi ne, %17, %18 : vector<512x1xi32>
    %c0_i32_17 = arith.constant 0 : i32
    %20 = vector.broadcast %c0_i32_17 : i32 to vector<512x1xi32>
    %21 = arith.cmpi slt, %17, %20 : vector<512x1xi32>
    %c0_i32_18 = arith.constant 0 : i32
    %22 = arith.cmpi slt, %15, %c0_i32_18 : i32
    %23 = vector.broadcast %22 : i1 to vector<512x1xi1>
    %24 = vector.broadcast %23 : vector<512x1xi1> to vector<512x1xi1>
    %25 = arith.xori %21, %24 : vector<512x1xi1>
    %26 = arith.andi %25, %19 : vector<512x1xi1>
    %27 = vector.broadcast %15 : i32 to vector<512x1xi32>
    %28 = arith.addi %17, %27 : vector<512x1xi32>
    %29 = arith.select %26, %28, %17 : vector<512x1xi1>, vector<512x1xi32>
    %c0_i32_19 = arith.constant 0 : i32
    %30 = vector.broadcast %c0_i32_19 : i32 to vector<512x1xi32>
    %31 = arith.cmpi eq, %29, %30 : vector<512x1xi32>
    %cst_20 = arith.constant 0.000000e+00 : bf16
    %32 = vector.broadcast %cst_20 : bf16 to vector<512x32xbf16>
    %33 = vector.extract_strided_slice %12 {offsets = [511, 0], sizes = [1, 32], strides = [1, 1]} : vector<512x32xbf16> to vector<1x32xbf16>
    %34 = vector.extract_strided_slice %12 {offsets = [0, 0], sizes = [511, 32], strides = [1, 1]} : vector<512x32xbf16> to vector<511x32xbf16>
    %35 = tpu.concatenate %33, %34 in 0 : vector<1x32xbf16>, vector<511x32xbf16> -> vector<512x32xbf16>
    %36 = vector.shape_cast %31 : vector<512x1xi1> to vector<512x1xi1>
    %37 = vector.broadcast %36 : vector<512x1xi1> to vector<512x32xi1>
    %38 = arith.select %37, %32, %35 : vector<512x32xi1>, vector<512x32xbf16>
    %c15_i32 = arith.constant 15 : i32
    %39 = vector.broadcast %c15_i32 : i32 to vector<512x1xi32>
    %40 = arith.cmpi eq, %29, %39 : vector<512x1xi32>
    %cst_21 = arith.constant 0.000000e+00 : bf16
    %41 = vector.broadcast %cst_21 : bf16 to vector<512x32xbf16>
    %42 = vector.extract_strided_slice %12 {offsets = [1, 0], sizes = [511, 32], strides = [1, 1]} : vector<512x32xbf16> to vector<511x32xbf16>
    %43 = vector.extract_strided_slice %12 {offsets = [0, 0], sizes = [1, 32], strides = [1, 1]} : vector<512x32xbf16> to vector<1x32xbf16>
    %44 = tpu.concatenate %42, %43 in 0 : vector<511x32xbf16>, vector<1x32xbf16> -> vector<512x32xbf16>
    %45 = vector.shape_cast %40 : vector<512x1xi1> to vector<512x1xi1>
    %46 = vector.broadcast %45 : vector<512x1xi1> to vector<512x32xi1>
    %47 = arith.select %46, %41, %44 : vector<512x32xi1>, vector<512x32xbf16>
    %cst_22 = arith.constant 0.000000e+00 : bf16
    %48 = vector.broadcast %cst_22 : bf16 to vector<512x32xbf16>
    %49 = tpu.concatenate %38, %12, %47, %48 in 1 : vector<512x32xbf16>, vector<512x32xbf16>, vector<512x32xbf16>, vector<512x32xbf16> -> vector<512x128xbf16>
    %50 = vector.shape_cast %49 : vector<512x128xbf16> to vector<2x16x16x128xbf16>
    %c0_23 = arith.constant 0 : index
    %c1 = arith.constant 1 : index
    %c0_24 = arith.constant 0 : index
    %c0_25 = arith.constant 0 : index
    %51 = vector.load %arg9[%c0_23, %c1, %c0_24, %c0_25] : memref<2x18x16x128xbf16, #tpu.memory_space<vmem>>, vector<2x16x16x128xbf16>
    tpu.vector_store %arg9[%c0_23, %c1, %c0_24, %c0_25], %50 {strides = array<i32>} : memref<2x18x16x128xbf16, #tpu.memory_space<vmem>>, vector<2x16x16x128xbf16>,
    %c0_26 = arith.constant 0 : index
    %c0_27 = arith.constant 0 : index
    %c0_28 = arith.constant 0 : index
    %c0_29 = arith.constant 0 : index
    %52 = vector.load %arg9[%c0_26, %c0_27, %c0_28, %c0_29] : memref<2x18x16x128xbf16, #tpu.memory_space<vmem>>, vector<2x16x16x128xbf16>
    %53 = vector.shape_cast %52 : vector<2x16x16x128xbf16> to vector<512x128xbf16>
    %c0_30 = arith.constant 0 : index
    %c0_31 = arith.constant 0 : index
    %c0_32 = arith.constant 0 : index
    %54 = vector.load %arg4[%c0_30, %c0_31, %c0_32] : memref<3x128x32xbf16, #tpu.memory_space<vmem>>, vector<1x128x32xbf16>
    %55 = vector.shape_cast %54 : vector<1x128x32xbf16> to vector<128x32xbf16>
    %cst_33 = arith.constant dense<0.000000e+00> : vector<512x32xf32>
    %56 = tpu.matmul %53, %55, %cst_33 {dimension_numbers = #tpu.dot_dimension_numbers<[1], [0], [0], [1], [0, 0, 1, 1], [], []>} : vector<512x128xbf16>, vector<128x32xbf16>, vector<512x32xf32> -> vector<512x32xf32>
    %c0_34 = arith.constant 0 : index
    %c1_35 = arith.constant 1 : index
    %c0_36 = arith.constant 0 : index
    %c0_37 = arith.constant 0 : index
    %57 = vector.load %arg9[%c0_34, %c1_35, %c0_36, %c0_37] : memref<2x18x16x128xbf16, #tpu.memory_space<vmem>>, vector<2x16x16x128xbf16>
    %58 = vector.shape_cast %57 : vector<2x16x16x128xbf16> to vector<512x128xbf16>
    %c1_38 = arith.constant 1 : index
    %c0_39 = arith.constant 0 : index
    %c0_40 = arith.constant 0 : index
    %59 = vector.load %arg4[%c1_38, %c0_39, %c0_40] : memref<3x128x32xbf16, #tpu.memory_space<vmem>>, vector<1x128x32xbf16>
    %60 = vector.shape_cast %59 : vector<1x128x32xbf16> to vector<128x32xbf16>
    %cst_41 = arith.constant dense<0.000000e+00> : vector<512x32xf32>
    %61 = tpu.matmul %58, %60, %cst_41 {dimension_numbers = #tpu.dot_dimension_numbers<[1], [0], [0], [1], [0, 0, 1, 1], [], []>} : vector<512x128xbf16>, vector<128x32xbf16>, vector<512x32xf32> -> vector<512x32xf32>
    %62 = arith.addf %56, %61 : vector<512x32xf32>
    %c0_42 = arith.constant 0 : index
    %c2 = arith.constant 2 : index
    %c0_43 = arith.constant 0 : index
    %c0_44 = arith.constant 0 : index
    %63 = vector.load %arg9[%c0_42, %c2, %c0_43, %c0_44] : memref<2x18x16x128xbf16, #tpu.memory_space<vmem>>, vector<2x16x16x128xbf16>
    %64 = vector.shape_cast %63 : vector<2x16x16x128xbf16> to vector<512x128xbf16>
    %c2_45 = arith.constant 2 : index
    %c0_46 = arith.constant 0 : index
    %c0_47 = arith.constant 0 : index
    %65 = vector.load %arg4[%c2_45, %c0_46, %c0_47] : memref<3x128x32xbf16, #tpu.memory_space<vmem>>, vector<1x128x32xbf16>
    %66 = vector.shape_cast %65 : vector<1x128x32xbf16> to vector<128x32xbf16>
    %cst_48 = arith.constant dense<0.000000e+00> : vector<512x32xf32>
    %67 = tpu.matmul %64, %66, %cst_48 {dimension_numbers = #tpu.dot_dimension_numbers<[1], [0], [0], [1], [0, 0, 1, 1], [], []>} : vector<512x128xbf16>, vector<128x32xbf16>, vector<512x32xf32> -> vector<512x32xf32>
    %68 = arith.addf %62, %67 : vector<512x32xf32>
    %c0_49 = arith.constant 0 : index
    %c0_50 = arith.constant 0 : index
    %69 = vector.load %arg5[%c0_49, %c0_50] : memref<1x32xf32, #tpu.memory_space<vmem>>, vector<1x32xf32>
    %70 = vector.broadcast %69 : vector<1x32xf32> to vector<512x32xf32>
    %71 = arith.addf %68, %70 : vector<512x32xf32>
    %cst_51 = arith.constant 0.000000e+00 : f32
    %72 = vector.broadcast %cst_51 : f32 to vector<512x32xf32>
    %73 = arith.maximumf %71, %72 : vector<512x32xf32>
    %74 = arith.truncf %73 : vector<512x32xf32> to vector<512x32xbf16>
    %c0_52 = arith.constant 0 : index
    %c0_53 = arith.constant 0 : index
    %75 = vector.load %arg6[%c0_52, %c0_53] : memref<32x128xbf16, #tpu.memory_space<vmem>>, vector<32x128xbf16>
    %cst_54 = arith.constant dense<0.000000e+00> : vector<512x128xf32>
    %76 = tpu.matmul %74, %75, %cst_54 {dimension_numbers = #tpu.dot_dimension_numbers<[1], [0], [0], [1], [0, 0, 1, 1], [], []>} : vector<512x32xbf16>, vector<32x128xbf16>, vector<512x128xf32> -> vector<512x128xf32>
    %c0_55 = arith.constant 0 : index
    %c0_56 = arith.constant 0 : index
    %77 = vector.load %arg7[%c0_55, %c0_56] : memref<1x128xf32, #tpu.memory_space<vmem>>, vector<1x128xf32>
    %78 = vector.broadcast %77 : vector<1x128xf32> to vector<512x128xf32>
    %79 = arith.addf %76, %78 : vector<512x128xf32>
    %80 = arith.extf %4 : vector<512x128xbf16> to vector<512x128xf32>
    %81 = arith.addf %79, %80 : vector<512x128xf32>
    %cst_57 = arith.constant 0.000000e+00 : f32
    %82 = vector.broadcast %cst_57 : f32 to vector<512x128xf32>
    %83 = arith.maximumf %81, %82 : vector<512x128xf32>
    %84 = arith.truncf %83 : vector<512x128xf32> to vector<512x128xbf16>
    %85 = vector.shape_cast %84 : vector<512x128xbf16> to vector<2x16x16x128xbf16>
    %c0_58 = arith.constant 0 : index
    %c0_59 = arith.constant 0 : index
    %c0_60 = arith.constant 0 : index
    %c0_61 = arith.constant 0 : index
    %86 = vector.load %arg8[%c0_58, %c0_59, %c0_60, %c0_61] : memref<2x16x16x128xbf16, #tpu.memory_space<vmem>>, vector<2x16x16x128xbf16>
    tpu.vector_store %arg8[%c0_58, %c0_59, %c0_60, %c0_61], %85 {strides = array<i32>} : memref<2x16x16x128xbf16, #tpu.memory_space<vmem>>, vector<2x16x16x128xbf16>,
    return
  }
  func.func @transform_0(%arg0: i32) -> (i32, i32, i32, i32) {
    %c0_i32 = arith.constant 0 : i32
    %c0_i32_0 = arith.constant 0 : i32
    %c0_i32_1 = arith.constant 0 : i32
    %c0_i32_2 = arith.constant 0 : i32
    return %arg0, %c0_i32, %c0_i32_0, %c0_i32_1 : i32, i32, i32, i32
  }
  func.func @transform_1(%arg0: i32) -> (i32, i32) {
    %c0_i32 = arith.constant 0 : i32
    %c0_i32_0 = arith.constant 0 : i32
    %c0_i32_1 = arith.constant 0 : i32
    return %c0_i32, %c0_i32_0 : i32, i32
  }
  func.func @transform_2(%arg0: i32) -> (i32, i32) {
    %c0_i32 = arith.constant 0 : i32
    %c0_i32_0 = arith.constant 0 : i32
    %c0_i32_1 = arith.constant 0 : i32
    return %c0_i32, %c0_i32_0 : i32, i32
  }
  func.func @transform_3(%arg0: i32) -> (i32, i32, i32) {
    %c0_i32 = arith.constant 0 : i32
    %c0_i32_0 = arith.constant 0 : i32
    %c0_i32_1 = arith.constant 0 : i32
    %c0_i32_2 = arith.constant 0 : i32
    return %c0_i32, %c0_i32_0, %c0_i32_1 : i32, i32, i32
  }
  func.func @transform_4(%arg0: i32) -> (i32, i32) {
    %c0_i32 = arith.constant 0 : i32
    %c0_i32_0 = arith.constant 0 : i32
    %c0_i32_1 = arith.constant 0 : i32
    return %c0_i32, %c0_i32_0 : i32, i32
  }
  func.func @transform_5(%arg0: i32) -> (i32, i32) {
    %c0_i32 = arith.constant 0 : i32
    %c0_i32_0 = arith.constant 0 : i32
    %c0_i32_1 = arith.constant 0 : i32
    return %c0_i32, %c0_i32_0 : i32, i32
  }
  func.func @transform_6(%arg0: i32) -> (i32, i32) {
    %c0_i32 = arith.constant 0 : i32
    %c0_i32_0 = arith.constant 0 : i32
    %c0_i32_1 = arith.constant 0 : i32
    return %c0_i32, %c0_i32_0 : i32, i32
  }
  func.func @transform_7(%arg0: i32) -> (i32, i32, i32, i32) {
    %c0_i32 = arith.constant 0 : i32
    %c0_i32_0 = arith.constant 0 : i32
    %c0_i32_1 = arith.constant 0 : i32
    %c0_i32_2 = arith.constant 0 : i32
    return %arg0, %c0_i32, %c0_i32_0, %c0_i32_1 : i32, i32, i32, i32
  }
}

</mosaic_0001>

<bundles_post_ra>
// kernel: tpu_custom_call.1
= control target key start
LH: loop header
LB: loop body
LE: loop exit
PB: predicated region body
PF: predicated region fallthrough
CT: control target
= control target key end

     0   :  { %12 = vsyncpa [#allocation4], 0  ;;  %s10251_s0 = inlined_call_operand.hbm [shape: bf16[8,16,16,128], index: 0, kind: input, shape index: {}]   ;;  %s10252_s1 = inlined_call_operand.vmem [shape: bf16[128,32], index: 1, kind: input, shape index: {}]   ;;  %s10253_s2 = inlined_call_operand.vmem [shape: f32[1,32], index: 2, kind: input, shape index: {}]   ;;  %s10254_s3 = inlined_call_operand.vmem [shape: bf16[3,128,32], index: 3, kind: input, shape index: {}]   ;;  %s10255_s4 = inlined_call_operand.vmem [shape: f32[1,32], index: 4, kind: input, shape index: {}]   ;;  %s10256_s5 = inlined_call_operand.vmem [shape: bf16[32,128], index: 5, kind: input, shape index: {}]   ;;  %s10257_s6 = inlined_call_operand.vmem [shape: f32[1,128], index: 6, kind: input, shape index: {}]   ;;  %s10258_s7 = inlined_call_operand.hbm [shape: bf16[8,16,16,128], index: 7, kind: output, shape index: {}]  }
   0x1   :  { %14 = vsyncpa [#allocation4 + $0x1], 0 }
   0x2   :  { %15 = vsyncpa [#allocation5], 0 }
   0x3   :  { %17 = vsyncpa [#allocation5 + $0x1], 0  ;;  %s7773_s24 = smov 0   ;;  %s7775_s25 = smov 0  }
   0x4   :  { %s7777_s26 = smov 0   ;;  %s7779_s27 = smov 0  }
   0x5 LB: > { %s7794_s28 = sadd.s32 4294967295, %s7722_s27   ;;  %s6087_s29 = sadd.s32 4294967294, %s7722_s27   ;;  %s7722_s27 = sphi %s7779_s27, %s10570_s27   ;;  %s7718_s26 = sphi %s7777_s26, %s10569_s26   ;;  %s7714_s25 = sphi %s7775_s25, %s10568_s25   ;;  %s7710_s24 = sphi %s7773_s24, %s10567_s24  }
   0x6   : > { %s7798_s30 = sadd.s32 1, %s7722_s27   ;;  %s30_s8 = sadd.s32 1, %s7718_s26 }
   0x7   : > { %s27_s9 = ssub.s32 %s7722_s27, %s7798_s30  ;;  %p37_p0 = scmp.ne.s32.totalorder %s7718_s26, %s7714_s25 }
   0x8   : > { %p28_p1 = scmp.eq.s32.totalorder %s27_s9, 0  ;;  %p38_p2 = scmp.eq.s32.totalorder %s7722_s27, 0 }
   0x9   : > { %p43_p3 = scmp.ne.s32.totalorder %s7714_s25, %s7710_s24  ;;  %p44_p4 = scmp.eq.s32.totalorder %s7794_s28, 0 }
   0xa   : > { %s7810_s10 = scalar_select %p28_p1, %s7718_s26, %s30_s8  }
   0xb   : > { %p7812_p5 = por %p38_p2, %p37_p0  ;;  %p7816_p6 = por %p44_p4, %p43_p3 }
   0xc   : > { %p193_p7 = scmp.eq.s32.totalorder %s7794_s28, 3  ;;  %p199_p8 = scmp.eq.s32.totalorder %s6087_s29, 3 }
   0xd   : > { %p7453_p9 = scmp.lt.s32.totalorder %s7722_s27, 4  ;;  %s237_s15 = sand.u32 1, %s7718_s26  }
   0xe   : > { %p7822_p10 = por %p193_p7, %p37_p0  ;;  %p7826_p11 = por %p199_p8, %p43_p3 }
   0xf   : > { %s6365_s16 = sshll.u32 %s7722_s27, 12  ;;  %s6090_s17 = sshll.u32 %s237_s15, 8 }
  0x10   : > { %s10275_s13 = scalar_select %p7822_p10, 1, 0 }
  0x11   : > { %s10276_s14 = scalar_select %p7826_p11, 1, 0 }
  0x12   : > { %s7835_s20 = scalar_lea.hbm %s10251_s0, %s6365_s16  ;;  %s241_s21 = scalar_lea.vmem [#allocation3], %s6090_s17 }
  0x13   : > { %s249_s22 = sshll.u32 %s241_s21, 4  ;;  %p7839_p12 = pnand %p7453_p9, %p7812_p5  ;;  %s7843_s22 = int_to_ptr.vmem [resolvable:$true] %s249_s22 }
  0x14   : > { %s7845_s29 = scalar_lea.sflag [#allocation4], %s237_s15  ;;  %s7626_s8 = scalar_lea.hbm %s7835_s20, 4096 }
  0x15   : > { %p7627_p13 = scmp.ne.s32.totalorder %s7835_s20, %s7626_s8  ;;  %p7628_p0 = pneg %p7839_p12 }
  0x16   : > { %s7631_s16 = scalar_lea.hbm %s10251_s0, 16384  ;;  %p7632_p3 = scmp.lt.u32.totalorder %s7835_s20, %s10251_s0 }
  0x17   : > { %p7629_p1 = pnand %p7628_p0, %p7627_p13  ;;  %p7633_p4 = scmp.lt.u32.totalorder %s7631_s16, %s7626_s8 }
  0x18   : > { %p7635_p7 = scmp.lt.u32.totalorder %s7626_s8, %s7835_s20 }
  0x19   : > { %p7630_p2 = pneg %p7629_p1  ;;  %p7634_p5 = por %p7633_p4, %p7632_p3 }
  0x1b   : > { %p7636_p8 = por %p7635_p7, %p7634_p5 }
  0x1d   : > { %p7637_p9 = pnand %p7636_p8, %p7630_p2 }
  0x1f   : > { %7640 = shalt.err (!%p7637_p9)
}
  0x20   : > { %s7641_s15 = scalar_lea.vmem %s7843_s22, 4096  ;;  %s7724_s19 = smov [#allocation3]  }
  0x21   : > { %p7642_p13 = scmp.ne.s32.totalorder %s7843_s22, %s7641_s15  ;;  %s7646_s21 = sshll.u32 %s7724_s19, 4  ;;  %s7647_s21 = int_to_ptr.vmem [resolvable:$false] %s7646_s21 }
  0x22   : > { %s7648_s9 = scalar_lea.vmem %s7647_s21, 8192  ;;  %p7649_p10 = scmp.lt.s32.totalorder %s7843_s22, %s7647_s21 }
  0x23   : > { %p7644_p1 = pnand %p7642_p13, %p7628_p0  ;;  %p7650_p3 = scmp.lt.s32.totalorder %s7648_s9, %s7641_s15 }
  0x25   : > { %p7645_p11 = pneg %p7644_p1  ;;  %p7651_p4 = por %p7650_p3, %p7649_p10 }
  0x27   : > { %p7652_p5 = pnand %p7651_p4, %p7645_p11 }
  0x29   : > { %7655 = shalt.err (!%p7652_p5)
}
  0x2a   : > { %s7725_s8 = smov 64   ;;  %s7726_s11 = smov 4  }
  0x2b   : > { %7448 = dma.hbm_to_vmem [thread:$0]  (!%p7839_p12), %s7835_s20, 4096, %s7843_s22, %s7845_s29, %s7725_s8, %s7725_s8, %s7726_s11  }
  0x2c   : > { %p6094_p0 = scmp.ge.s32.totalorder %s7722_s27, 1  ;;  %p257_p2 = scmp.lt.s32.totalorder %s7722_s27, 5 }
  0x2e   : > { %p258_p7 = pnand %p6094_p0, %p257_p2 }
  0x30   : > { %261 = sbr.rel (%p258_p7) target bundleno = 1286 (0x506), region = 48 }
  0x37   : > { %s7876_s16 = sand.u32 1, %s7714_s25  }
  0x38   : > { %s6095_s17 = sshll.u32 %s7876_s16, 8  ;;  %s264_s18 = scalar_lea.sflag [#allocation4], %s7876_s16 }
  0x39   : > { %s7882_s15 = scalar_lea.vmem [#allocation3], %s6095_s17 }
  0x3a   : > { %7701 = dma.done.wait (%p7816_p6), %s264_s18, 4096  }
  0x3b   : > { %7703 = vsyncadd (%p7816_p6), %s264_s18, 4294963200  ;;  %v7494_v0 = vld [vmem:[%s10252_s1] sm:$0xff]   ;;  %v7495_v1 = vld [vmem:[%s10252_s1 + $0x8] sm:$0xff]   ;;  %v1020_v40 = vlaneseq  ;;  %vm2689_vm2 = vsmask.f32 7424  ;;  %vm7728_vm4 = vmmov 0  }
  0x3c   : > { %6909 = vmatprep.subr.bf16.mxu0 %v7494_v0  ;;  %v7496_v2 = vld [vmem:[%s10252_s1 + $0x10] sm:$0xff]   ;;  %v7497_v3 = vld [vmem:[%s10252_s1 + $0x18] sm:$0xff]   ;;  %v308_v4 = vld [vmem:[%s7882_s15] sm:$0xff]   ;;  %vm1922_vm7 = vsmask.f32 256  ;;  %s7729_s22 = smov 32  }
  0x3d   : > { %6910 = vmatpush3.bf16.msra.mxu0 %v7494_v0  ;;  %6925 = vmatprep.mubr.bf16.mxu0 %v308_v4  ;;  %v7498_v5 = vld [vmem:[%s10252_s1 + $0x20] sm:$0xff]   ;;  %v7499_v6 = vld [vmem:[%s10252_s1 + $0x28] sm:$0xff]   ;;  %v7500_v7 = vld [vmem:[%s10252_s1 + $0x30] sm:$0xff]   ;;  %v7944_v41 = vshrl.u32 %v1020_v40, 7  ;;  %s7730_s19 = smov 64   ;;  %s10079_s9 = scalar_lea.vmem [#allocation6], %s6095_s17 }
  0x3e   : > { %6911 = vmatprep.subr.bf16.mxu0 %v7495_v1  ;;  %v7501_v8 = vld [vmem:[%s10252_s1 + $0x38] sm:$0xff]   ;;  %v310_v9 = vld [vmem:[%s7882_s15 + $0x8] sm:$0xff]   ;;  %v312_v10 = vld [vmem:[%s7882_s15 + $0x10] sm:$0xff]   ;;  %s6431_s17 = sshll.u32 %s7794_s28, 12  ;;  %s6000_s28 = scalar_lea.sflag [#allocation5], %s7876_s16 }
  0x3f   : > { %v314_v11 = vld [vmem:[%s7882_s15 + $0x18] sm:$0xff]   ;;  %v316_v12 = vld [vmem:[%s7882_s15 + $0x20] sm:$0xff]   ;;  %v318_v13 = vld [vmem:[%s7882_s15 + $0x28] sm:$0xff]   ;;  %v1054_v42 = vadd.s32 264, %v7944_v41  ;;  %v1056_v53 = vadd.s32 280, %v7944_v41  ;;  %v7969_v63 = vadd.s32 8, %v7944_v41  ;;  %s10202_s18 = scalar_lea.hbm %s10258_s7, %s6431_s17 }
  0x40   : > { %v320_v14 = vld [vmem:[%s7882_s15 + $0x30] sm:$0xff]   ;;  %v322_v15 = vld [vmem:[%s7882_s15 + $0x38] sm:$0xff]   ;;  %v324_v16 = vld [vmem:[%s7882_s15 + $0x40] sm:$0xff]   ;;  %v1058_v4 = vadd.s32 296, %v7944_v41  ;;  %p10565_p10 = scmp.ne.s32.totalorder %s10275_s13, 0 }
  0x41   : > { %6912 = vmatpush3.bf16.msra.mxu0 %v7495_v1  ;;  %v326_v17 = vld [vmem:[%s7882_s15 + $0x48] sm:$0xff]   ;;  %v328_v18 = vld [vmem:[%s7882_s15 + $0x50] sm:$0xff]   ;;  %v330_v19 = vld [vmem:[%s7882_s15 + $0x58] sm:$0xff]   ;;  %v1320_v47 = vand.u32 15, %v1054_v42  ;;  %v1334_v62 = vand.u32 15, %v1056_v53 }
  0x42   : > { %6913 = vmatprep.subr.bf16.mxu0 %v7496_v2  ;;  %v332_v20 = vld [vmem:[%s7882_s15 + $0x60] sm:$0xff]   ;;  %v334_v21 = vld [vmem:[%s7882_s15 + $0x68] sm:$0xff]   ;;  %v336_v22 = vld [vmem:[%s7882_s15 + $0x70] sm:$0xff]  }
  0x43   : > { %v338_v23 = vld [vmem:[%s7882_s15 + $0x78] sm:$0xff]   ;;  %v340_v24 = vld [vmem:[%s7882_s15 + $0x80] sm:$0xff]   ;;  %v342_v25 = vld [vmem:[%s7882_s15 + $0x88] sm:$0xff]   ;;  %vm7957_vm0 = vcmp.eq.s32.totalorder %v1320_v47, 15  ;;  %vm7990_vm3 = vcmp.eq.s32.totalorder %v1334_v62, 15 }
  0x44   : > { %v344_v26 = vld [vmem:[%s7882_s15 + $0x90] sm:$0xff]   ;;  %v346_v27 = vld [vmem:[%s7882_s15 + $0x98] sm:$0xff]   ;;  %v348_v28 = vld [vmem:[%s7882_s15 + $0xa0] sm:$0xff]  }
  0x45   : > { %6914 = vmatpush3.bf16.msra.mxu0 %v7496_v2  ;;  %v350_v29 = vld [vmem:[%s7882_s15 + $0xa8] sm:$0xff]   ;;  %v352_v30 = vld [vmem:[%s7882_s15 + $0xb0] sm:$0xff]   ;;  %v354_v31 = vld [vmem:[%s7882_s15 + $0xb8] sm:$0xff]  }
  0x46   : > { %6915 = vmatprep.subr.bf16.mxu0 %v7497_v3  ;;  %v356_v32 = vld [vmem:[%s7882_s15 + $0xc0] sm:$0xff]   ;;  %v358_v33 = vld [vmem:[%s7882_s15 + $0xc8] sm:$0xff]   ;;  %v360_v34 = vld [vmem:[%s7882_s15 + $0xd0] sm:$0xff]  }
  0x47   : > { %v362_v35 = vld [vmem:[%s7882_s15 + $0xd8] sm:$0xff]   ;;  %v364_v36 = vld [vmem:[%s7882_s15 + $0xe0] sm:$0xff]   ;;  %v366_v37 = vld [vmem:[%s7882_s15 + $0xe8] sm:$0xff]  }
  0x48   : > { %v368_v38 = vld [vmem:[%s7882_s15 + $0xf0] sm:$0xff]   ;;  %v370_v39 = vld [vmem:[%s7882_s15 + $0xf8] sm:$0xff]   ;;  %v7950_v43 = vld [vmem:[%s10253_s2] ss:$0 sm:$0xff] }
  0x49   : > { %6916 = vmatpush3.bf16.msra.mxu0 %v7497_v3  ;;  %vm2982_vm1 = vmpackc.low %vm7957_vm0, %vm7957_vm0 }
  0x4a   : > { %6917 = vmatprep.subr.bf16.mxu0 %v7498_v5  ;;  %vm2338_vm5 = vmpackc.low %vm7728_vm4, %vm7728_vm4 }
  0x4b   : > { %vm2984_vm6 = vmpackc.low %vm7990_vm3, %vm7990_vm3 }
  0x4d   : > { %6918 = vmatpush3.bf16.msra.mxu0 %v7498_v5 }
  0x4e   : > { %6919 = vmatprep.subr.bf16.mxu0 %v7499_v6 }
  0x51   : > { %6920 = vmatpush3.bf16.msra.mxu0 %v7499_v6 }
  0x52   : > { %6921 = vmatprep.subr.bf16.mxu0 %v7500_v7 }
  0x55   : > { %6922 = vmatpush3.bf16.msra.mxu0 %v7500_v7 }
  0x56   : > { %6923 = vmatprep.subr.bf16.mxu0 %v7501_v8 }
  0x59   : > { %6924 = vmatpush3.bf16.msra.mxu0 %v7501_v8 }
  0x5c   : > { %6926 = vmatmul.mubr.bf16.vlgmr.msra.gmra.mrb[0].mxu0 %v310_v9 }
  0x5d   : > { %6929 = vmatprep.mubr.bf16.mxu0 %v312_v10 }
  0x64   : > { %6930 = vmatmul.mubr.bf16.gmra.mrb[4].mxu0 %v314_v11 }
  0x65   : > { %6933 = vmatprep.mubr.bf16.mxu0 %v316_v12  ;;  %v10260_v12 = vmov 0  }
  0x6c   : > { %6934 = vmatmul.mubr.bf16.gmra.mrb[8].mxu0 %v318_v13  ;;  %v7987_v13 = vsel %vm2982_vm1, 65537, %v10260_v12 }
  0x6d   : > { %6937 = vmatprep.mubr.bf16.mxu0 %v320_v14 }
  0x74   : > { %6938 = vmatmul.mubr.bf16.gmra.mrb[12].mxu0 %v322_v15 }
  0x75   : > { %6941 = vmatprep.mubr.bf16.mxu0 %v324_v16 }
  0x7c   : > { %6942 = vmatmul.mubr.bf16.gmra.mrb[16].mxu0 %v326_v17 }
  0x7d   : > { %6945 = vmatprep.mubr.bf16.mxu0 %v328_v18 }
  0x84   : > { %6946 = vmatmul.mubr.bf16.gmra.mrb[20].mxu0 %v330_v19 }
  0x85   : > { %6949 = vmatprep.mubr.bf16.mxu0 %v332_v20  ;;  %v1348_v20 = vand.u32 15, %v1058_v4  ;;  %v1062_v4 = vadd.s32 328, %v7944_v41 }
  0x87   : > { %vm8023_vm8 = vcmp.eq.s32.totalorder %v1348_v20, 15 }
  0x88   : > { %vm2986_vm9 = vmpackc.low %vm8023_vm8, %vm8023_vm8 }
  0x8c   : > { %6950 = vmatmul.mubr.bf16.gmra.mrb[24].mxu0 %v334_v21 }
  0x8d   : > { %6953 = vmatprep.mubr.bf16.mxu0 %v336_v22 }
  0x94   : > { %6954 = vmatmul.mubr.bf16.gmra.mrb[28].mxu0 %v338_v23 }
  0x95   : > { %6957 = vmatprep.mubr.bf16.mxu0 %v340_v24 }
  0x9c   : > { %6958 = vmatmul.mubr.bf16.gmra.mrb[32].mxu0 %v342_v25 }
  0x9d   : > { %6961 = vmatprep.mubr.bf16.mxu0 %v344_v26 }
  0xa4   : > { %6962 = vmatmul.mubr.bf16.gmra.mrb[36].mxu0 %v346_v27  ;;  %v1060_v27 = vadd.s32 312, %v7944_v41 }
  0xa5   : > { %6965 = vmatprep.mubr.bf16.mxu0 %v348_v28 }
  0xac   : > { %6966 = vmatmul.mubr.bf16.gmra.mrb[40].mxu0 %v350_v29 }
  0xad   : > { %6969 = vmatprep.mubr.bf16.mxu0 %v352_v30 }
  0xb4   : > { %6970 = vmatmul.mubr.bf16.gmra.mrb[44].mxu0 %v354_v31 }
  0xb5   : > { %6973 = vmatprep.mubr.bf16.mxu0 %v356_v32  ;;  %v8007_v32 = vsel %vm2338_vm5, 65537, %v10260_v12 }
  0xbc   : > { %6974 = vmatmul.mubr.bf16.gmra.mrb[48].mxu0 %v358_v33 }
  0xbd   : > { %6977 = vmatprep.mubr.bf16.mxu0 %v360_v34 }
  0xc4   : > { %6978 = vmatmul.mubr.bf16.gmra.mrb[52].mxu0 %v362_v35 }
  0xc5   : > { %6981 = vmatprep.mubr.bf16.mxu0 %v364_v36 }
  0xcc   : > { %6982 = vmatmul.mubr.bf16.gmra.mrb[56].mxu0 %v366_v37 }
  0xcd   : > { %6985 = vmatprep.mubr.bf16.mxu0 %v368_v38 }
  0xd4   : > { %6986 = vmatmul.mubr.bf16.gmra.mrb[60].mxu0 %v370_v39 }
 0x12f   : > { %v6927_v44 = vpop.f32.mrb[0].mxu0 }
 0x130   : > { %v678_v45 = vadd.f32 %v6927_v44, %v7950_v43  ;;  %v669_v46 = vpop.f32.mrb[1].mxu0 }
 0x131   : > { %v670_v48 = vadd.f32 %v7950_v43, %v669_v46  ;;  %v6928_v49 = vpop.f32.mrb[2].mxu0 }
 0x132   : > { %v681_v50 = vadd.f32 %v6928_v49, %v7950_v43  ;;  %v672_v51 = vpop.f32.mrb[3].mxu0  ;;  %v926_v54 = vmax.f32 %v678_v45, 0.0  ;;  %v1362_v49 = vand.u32 15, %v1060_v27 }
 0x133   : > { %v673_v52 = vadd.f32 %v7950_v43, %v672_v51  ;;  %v924_v57 = vmax.f32 %v670_v48, 0.0  ;;  %v8029_v48 = vsel %vm2984_vm6, 65537, %v10260_v12 }
 0x134   : > { %v927_v55 = vmax.f32 %v681_v50, 0.0  ;;  %vm8060_vm10 = vcmp.eq.s32.totalorder %v1362_v49, 15 }
 0x135   : > { %v925_v58 = vmax.f32 %v673_v52, 0.0  ;;  %vm2988_vm11 = vmpackc.low %vm8060_vm10, %vm8060_vm10 }
 0x136   : > { %v7961_v59 = vpack.c.bf16 %v927_v55, %v926_v54 }
 0x137   : > { %v7963_v60 = vpack.c.bf16 %v925_v58, %v924_v57  ;;  %v6931_v61 = vpop.f32.mrb[4].mxu0 }
 0x138   : > { %v1931_v0 = vshrl.u32 %v7961_v59, 16  ;;  %v1934_v1 = vshll.u32 %v7961_v59, 16  ;;  %v694_v2 = vadd.f32 %v6931_v61, %v7950_v43  ;;  %v685_v3 = vpop.f32.mrb[5].mxu0 }
 0x139   : > { %v1924_v5 = vshrl.u32 %v7963_v60, 16  ;;  %v1927_v6 = vshll.u32 %v7963_v60, 16  ;;  %v686_v7 = vadd.f32 %v7950_v43, %v685_v3  ;;  %v6932_v8 = vpop.f32.mrb[6].mxu0 }
 0x13a   : > { %v7978_v9 = vrot.slane %v1931_v0, 7  ;;  %v697_v10 = vadd.f32 %v6932_v8, %v7950_v43  ;;  %v688_v11 = vpop.f32.mrb[7].mxu0  ;;  %v930_v18 = vmax.f32 %v694_v2, 0.0  ;;  %v2692_v21 = vrot.slane %v1934_v1, 1 }
 0x13b   : > { %v1926_v14 = vrot.slane %v1924_v5, 7  ;;  %v689_v15 = vadd.f32 %v7950_v43, %v688_v11  ;;  %v7994_v17 = vrot.slane %v1927_v6, 1  ;;  %v928_v22 = vmax.f32 %v686_v7, 0.0 }
 0x13c   : > { %v931_v19 = vmax.f32 %v697_v10, 0.0  ;;  %v1936_v29 = vor.u32 %v1934_v1, %v7978_v9  ;;  %v2694_v50 = vor.u32 %v2692_v21, %v1931_v0  ;;  %v8051_v8 = vsel %vm2986_vm9, 65537, %v10260_v12 }
 0x13d   : > { %v929_v23 = vmax.f32 %v689_v15, 0.0  ;;  %v2691_v24 = vor.u32 %v7994_v17, %v1924_v5  ;;  %v7997_v25 = vor.u32 %v1927_v6, %v1926_v14 }
 0x13e   : > { %v7999_v26 = vpack.c.bf16 %v931_v19, %v930_v18  ;;  %v8038_v58 = vsel %vm1922_vm7, %v1926_v14, %v1936_v29 }
 0x13f   : > { %v8004_v30 = vpack.c.bf16 %v929_v23, %v928_v22  ;;  %v6935_v31 = vpop.f32.mrb[8].mxu0  ;;  %v8013_v33 = vsel %vm2689_vm2, %v2691_v24, %v2692_v21  ;;  %10284 = vst [vmem:[#allocation9_spill] sm:$0xff] %v8038_v58 }
 0x140   : > { %v1947_v34 = vshrl.u32 %v7999_v26, 16  ;;  %v1950_v35 = vshll.u32 %v7999_v26, 16  ;;  %v710_v36 = vadd.f32 %v6935_v31, %v7950_v43  ;;  %v701_v37 = vpop.f32.mrb[9].mxu0 }
 0x141   : > { %v1939_v39 = vshrl.u32 %v8004_v30, 16  ;;  %v1942_v40 = vshll.u32 %v8004_v30, 16  ;;  %v702_v42 = vadd.f32 %v7950_v43, %v701_v37  ;;  %v6936_v44 = vpop.f32.mrb[10].mxu0 }
 0x142   : > { %v713_v46 = vadd.f32 %v6936_v44, %v7950_v43  ;;  %v704_v47 = vpop.f32.mrb[11].mxu0  ;;  %v8031_v51 = vrot.slane %v1947_v34, 7  ;;  %v934_v55 = vmax.f32 %v710_v36, 0.0  ;;  %v2698_v57 = vrot.slane %v1950_v35, 1 }
 0x143   : > { %v1941_v52 = vrot.slane %v1939_v39, 7  ;;  %v705_v53 = vadd.f32 %v7950_v43, %v704_v47  ;;  %v2695_v54 = vrot.slane %v1942_v40, 1  ;;  %v932_v61 = vmax.f32 %v702_v42, 0.0 }
 0x144   : > { %v935_v56 = vmax.f32 %v713_v46, 0.0  ;;  %v1952_v11 = vor.u32 %v1950_v35, %v8031_v51  ;;  %v1376_v35 = vand.u32 15, %v1062_v4  ;;  %v8075_v36 = vadd.s32 344, %v7944_v41 }
 0x145   : > { %v933_v62 = vmax.f32 %v705_v53, 0.0  ;;  %v8041_v0 = vsel %vm2689_vm2, %v2694_v50, %v2695_v54  ;;  %v2697_v1 = vor.u32 %v2695_v54, %v1939_v39  ;;  %v1944_v5 = vor.u32 %v1942_v40, %v1941_v52 }
 0x146   : > { %v8043_v2 = vpack.c.bf16 %v935_v56, %v934_v55  ;;  %v2700_v40 = vor.u32 %v2698_v57, %v1947_v34  ;;  %v8082_v46 = vsel %vm1922_vm7, %v1941_v52, %v1952_v11  ;;  %v1066_v34 = vadd.s32 360, %v7944_v41 }
 0x147   : > { %v8048_v6 = vpack.c.bf16 %v933_v62, %v932_v61  ;;  %v6939_v7 = vpop.f32.mrb[12].mxu0  ;;  %v8054_v10 = vsel %vm2689_vm2, %v2697_v1, %v2698_v57  ;;  %v8069_v24 = vsel %vm1922_vm7, %v7978_v9, %v1944_v5  ;;  %10288 = vst [vmem:[#allocation11_spill] sm:$0xff] %v8082_v46  ;;  %v8096_v62 = vsel %vm2988_vm11, 65537, %v10260_v12 }
 0x148   : > { %v1963_v14 = vshrl.u32 %v8043_v2, 16  ;;  %v1966_v15 = vshll.u32 %v8043_v2, 16  ;;  %v726_v16 = vadd.f32 %v6939_v7, %v7950_v43  ;;  %v717_v18 = vpop.f32.mrb[13].mxu0  ;;  %10287 = vst [vmem:[#allocation10_spill] sm:$0xff] %v8069_v24  ;;  %vm8104_vm12 = vcmp.eq.s32.totalorder %v1376_v35, 15 }
 0x149   : > { %v1955_v20 = vshrl.u32 %v8048_v6, 16  ;;  %v1958_v21 = vshll.u32 %v8048_v6, 16  ;;  %v718_v22 = vadd.f32 %v7950_v43, %v717_v18  ;;  %v6940_v23 = vpop.f32.mrb[14].mxu0  ;;  %v1404_v35 = vand.u32 15, %v1066_v34  ;;  %vm2990_vm13 = vmpackc.low %vm8104_vm12, %vm8104_vm12 }
 0x14a   : > { %v8071_v27 = vrot.slane %v1963_v14, 7  ;;  %v729_v29 = vadd.f32 %v6940_v23, %v7950_v43  ;;  %v720_v31 = vpop.f32.mrb[15].mxu0  ;;  %v938_v44 = vmax.f32 %v726_v16, 0.0  ;;  %v2704_v9 = vrot.slane %v1966_v15, 1 }
 0x14b   : > { %v1957_v37 = vrot.slane %v1955_v20, 7  ;;  %v721_v39 = vadd.f32 %v7950_v43, %v720_v31  ;;  %v2701_v42 = vrot.slane %v1958_v21, 1  ;;  %v936_v47 = vmax.f32 %v718_v22, 0.0 }
 0x14c   : > { %v939_v45 = vmax.f32 %v729_v29, 0.0  ;;  %v1968_v56 = vor.u32 %v1966_v15, %v8071_v27  ;;  %v1390_v31 = vand.u32 15, %v8075_v36  ;;  %vm8167_vm15 = vcmp.eq.s32.totalorder %v1404_v35, 15 }
 0x14d   : > { %v937_v49 = vmax.f32 %v721_v39, 0.0  ;;  %v8085_v50 = vsel %vm2689_vm2, %v2700_v40, %v2701_v42  ;;  %v2703_v53 = vor.u32 %v2701_v42, %v1955_v20  ;;  %v1960_v55 = vor.u32 %v1958_v21, %v1957_v37  ;;  %vm2994_vm1 = vmpackc.low %vm8167_vm15, %vm8167_vm15 }
 0x14e   : > { %v8087_v54 = vpack.c.bf16 %v939_v45, %v938_v44  ;;  %v2706_v42 = vor.u32 %v2704_v9, %v1963_v14  ;;  %v8132_v14 = vadd.s32 376, %v7944_v41  ;;  %vm8148_vm14 = vcmp.eq.s32.totalorder %v1390_v31, 15 }
 0x14f   : > { %v8091_v57 = vpack.c.bf16 %v937_v49, %v936_v47  ;;  %v6943_v61 = vpop.f32.mrb[16].mxu0  ;;  %v8099_v1 = vsel %vm2689_vm2, %v2703_v53, %v2704_v9  ;;  %v8113_v21 = vsel %vm1922_vm7, %v8031_v51, %v1960_v55  ;;  %v8124_v49 = vsel %vm1922_vm7, %v1957_v37, %v1968_v56  ;;  %vm2992_vm0 = vmpackc.low %vm8148_vm14, %vm8148_vm14 }
 0x150   : > { %v1979_v4 = vshrl.u32 %v8087_v54, 16  ;;  %v1982_v5 = vshll.u32 %v8087_v54, 16  ;;  %v742_v7 = vadd.f32 %v6943_v61, %v7950_v43  ;;  %v733_v11 = vpop.f32.mrb[17].mxu0  ;;  %10291 = vst [vmem:[#allocation12_spill] sm:$0xff] %v8113_v21  ;;  %10292 = vst [vmem:[#allocation13_spill] sm:$0xff] %v8124_v49  ;;  %v8140_v56 = vsel %vm2990_vm13, 65537, %v10260_v12 }
 0x151   : > { %v1971_v16 = vshrl.u32 %v8091_v57, 16  ;;  %v1974_v18 = vshll.u32 %v8091_v57, 16  ;;  %v734_v19 = vadd.f32 %v7950_v43, %v733_v11  ;;  %v6944_v20 = vpop.f32.mrb[18].mxu0  ;;  %v1072_v46 = vadd.s32 408, %v7944_v41 }
 0x152   : > { %v8115_v22 = vrot.slane %v1979_v4, 7  ;;  %v745_v23 = vadd.f32 %v6944_v20, %v7950_v43  ;;  %v736_v29 = vpop.f32.mrb[19].mxu0  ;;  %v942_v45 = vmax.f32 %v742_v7, 0.0  ;;  %v2710_v51 = vrot.slane %v1982_v5, 1 }
 0x153   : > { %v1973_v39 = vrot.slane %v1971_v16, 7  ;;  %v737_v40 = vadd.f32 %v7950_v43, %v736_v29  ;;  %v2707_v44 = vrot.slane %v1974_v18, 1  ;;  %v940_v53 = vmax.f32 %v734_v19, 0.0 }
 0x154   : > { %v943_v47 = vmax.f32 %v745_v23, 0.0  ;;  %v1984_v7 = vor.u32 %v1982_v5, %v8115_v22  ;;  %v2712_v37 = vor.u32 %v2710_v51, %v1979_v4  ;;  %v8218_v5 = vsel %vm2994_vm1, 65537, %v10260_v12 }
 0x155   : > { %v941_v55 = vmax.f32 %v737_v40, 0.0  ;;  %v8127_v36 = vsel %vm2689_vm2, %v2706_v42, %v2707_v44  ;;  %v2709_v34 = vor.u32 %v2707_v44, %v1971_v16  ;;  %v1976_v9 = vor.u32 %v1974_v18, %v1973_v39 }
 0x156   : > { %v8129_v61 = vpack.c.bf16 %v943_v47, %v942_v45  ;;  %v7534_v45 = vld [vmem:[%s10254_s3 + $0x40] sm:$0xff]  }
 0x157   : > { %v8135_v11 = vpack.c.bf16 %v941_v55, %v940_v53  ;;  %v6947_v15 = vpop.f32.mrb[20].mxu0  ;;  %v8143_v19 = vsel %vm2689_vm2, %v2709_v34, %v2710_v51  ;;  %v8160_v47 = vsel %vm1922_vm7, %v8071_v27, %v1976_v9  ;;  %7297 = vmatprep.subr.bf16.mxu1 %v7534_v45  ;;  %6989 = vmatprep.subr.bf16.mxu0 %v7534_v45  ;;  %v7535_v51 = vld [vmem:[%s10254_s3 + $0x48] sm:$0xff]  }
 0x158   : > { %10293 = vst [vmem:[#allocation14_spill] sm:$0xff] %v8129_v61  ;;  %v10262_v16 = vshrl.u32 %v8129_v61, 16  ;;  %v1998_v20 = vshll.u32 %v8129_v61, 16  ;;  %v758_v18 = vadd.f32 %v6947_v15, %v7950_v43  ;;  %v749_v23 = vpop.f32.mrb[21].mxu0  ;;  %10297 = vst [vmem:[#allocation16_spill] sm:$0xff] %v8160_v47  ;;  %v1418_v15 = vand.u32 15, %v8132_v14  ;;  %7305 = vmatpush3.bf16.msra.mxu1 %v7534_v45  ;;  %6990 = vmatpush3.bf16.msra.mxu0 %v7534_v45 }
 0x159   : > { %10294 = vst [vmem:[#allocation15_spill] sm:$0xff] %v8135_v11  ;;  %v1987_v29 = vshrl.u32 %v8135_v11, 16  ;;  %v1990_v40 = vshll.u32 %v8135_v11, 16  ;;  %v750_v42 = vadd.f32 %v7950_v43, %v749_v23  ;;  %v6948_v44 = vpop.f32.mrb[22].mxu0  ;;  %v8191_v45 = vadd.s32 392, %v7944_v41  ;;  %7298 = vmatprep.subr.bf16.mxu1 %v7535_v51  ;;  %6991 = vmatprep.subr.bf16.mxu0 %v7535_v51 }
 0x15a   : > { %v8164_v31 = vrot.slane %v10262_v16, 7  ;;  %v761_v53 = vadd.f32 %v6948_v44, %v7950_v43  ;;  %v752_v55 = vpop.f32.mrb[23].mxu0  ;;  %v946_v9 = vmax.f32 %v758_v18, 0.0  ;;  %v2716_v35 = vrot.slane %v1998_v20, 1 }
 0x15b   : > { %v1989_v23 = vrot.slane %v1987_v29, 7  ;;  %v753_v28 = vadd.f32 %v7950_v43, %v752_v55  ;;  %v2713_v27 = vrot.slane %v1990_v40, 1  ;;  %v8177_v44 = vsel %vm1922_vm7, %v1973_v39, %v1984_v7 }
 0x15c   : > { %v947_v52 = vmax.f32 %v761_v53, 0.0  ;;  %10300 = vst [vmem:[#allocation17_spill] sm:$0xff] %v8177_v44  ;;  %v944_v14 = vmax.f32 %v750_v42, 0.0  ;;  %7306 = vmatpush3.bf16.msra.mxu1 %v7535_v51  ;;  %6992 = vmatpush3.bf16.msra.mxu0 %v7535_v51  ;;  %vm8235_vm3 = vcmp.eq.s32.totalorder %v1418_v15, 15 }
 0x15d   : > { %v945_v3 = vmax.f32 %v753_v28, 0.0  ;;  %v8183_v4 = vsel %vm2689_vm2, %v2712_v37, %v2713_v27  ;;  %v2715_v18 = vor.u32 %v2713_v27, %v1987_v29  ;;  %v1992_v39 = vor.u32 %v1990_v40, %v1989_v23  ;;  %vm2996_vm4 = vmpackc.low %vm8235_vm3, %vm8235_vm3 }
 0x15e   : > { %v8188_v53 = vpack.c.bf16 %v947_v52, %v946_v9  ;;  %v2000_v28 = vor.u32 %v1998_v20, %v8164_v31  ;;  %v8204_v52 = vsel %vm2992_vm0, 65537, %v10260_v12  ;;  %v7538_v12 = vld [vmem:[%s10254_s3 + $0x60] sm:$0xff]  }
 0x15f   : > { %v8194_v7 = vpack.c.bf16 %v945_v3, %v944_v14  ;;  %v6951_v42 = vpop.f32.mrb[24].mxu0  ;;  %v8207_v29 = vsel %vm2689_vm2, %v2715_v18, %v2716_v35  ;;  %v8228_v37 = vsel %vm1922_vm7, %v8115_v22, %v1992_v39  ;;  %v10307_v22 = vshrl.u32 %v8129_v61, 16 }
 0x160   : > { %10301 = vst [vmem:[#allocation18_spill] sm:$0xff] %v8188_v53  ;;  %10303 = vst [vmem:[#allocation20_spill] sm:$0xff] %v8207_v29  ;;  %v10263_v3 = vshrl.u32 %v8188_v53, 16  ;;  %v2014_v20 = vshll.u32 %v8188_v53, 16  ;;  %v774_v40 = vadd.f32 %v6951_v42, %v7950_v43  ;;  %v765_v55 = vpop.f32.mrb[25].mxu0  ;;  %v7536_v42 = vld [vmem:[%s10254_s3 + $0x50] sm:$0xff]   ;;  %v8244_v15 = vsel %vm1922_vm7, %v1989_v23, %v2000_v28 }
 0x161   : > { %10302 = vst [vmem:[#allocation19_spill] sm:$0xff] %v8194_v7  ;;  %v2003_v27 = vshrl.u32 %v8194_v7, 16  ;;  %v2006_v9 = vshll.u32 %v8194_v7, 16  ;;  %v766_v14 = vadd.f32 %v7950_v43, %v765_v55  ;;  %v6952_v18 = vpop.f32.mrb[26].mxu0  ;;  %10304 = vst [vmem:[#allocation21_spill] sm:$0xff] %v8228_v37  ;;  %v1432_v55 = vand.u32 15, %v8191_v45  ;;  %7299 = vmatprep.subr.bf16.mxu1 %v7536_v42  ;;  %6993 = vmatprep.subr.bf16.mxu0 %v7536_v42 }
 0x162   : > { %v8232_v34 = vrot.slane %v10263_v3, 7  ;;  %v777_v51 = vadd.f32 %v6952_v18, %v7950_v43  ;;  %v768_v38 = vpop.f32.mrb[27].mxu0  ;;  %v2718_v39 = vor.u32 %v2716_v35, %v10307_v22  ;;  %v950_v3 = vmax.f32 %v774_v40, 0.0  ;;  %7307 = vmatpush3.bf16.msra.mxu1 %v7536_v42  ;;  %6994 = vmatpush3.bf16.msra.mxu0 %v7536_v42  ;;  %10308 = vst [vmem:[#allocation22_spill] sm:$0xff] %v8244_v15  ;;  %v7537_v35 = vld [vmem:[%s10254_s3 + $0x58] sm:$0xff]  }
 0x163   : > { %v2005_v16 = vrot.slane %v2003_v27, 7  ;;  %v769_v44 = vadd.f32 %v7950_v43, %v768_v38  ;;  %v2719_v37 = vrot.slane %v2006_v9, 1  ;;  %v2722_v18 = vrot.slane %v2014_v20, 1  ;;  %7300 = vmatprep.subr.bf16.mxu1 %v7537_v35  ;;  %6995 = vmatprep.subr.bf16.mxu0 %v7537_v35 }
 0x164   : > { %v951_v47 = vmax.f32 %v777_v51, 0.0  ;;  %v948_v49 = vmax.f32 %v766_v14, 0.0  ;;  %v8265_v22 = vadd.s32 24, %v7944_v41  ;;  %vm8284_vm5 = vcmp.eq.s32.totalorder %v1432_v55, 15 }
 0x165   : > { %v949_v21 = vmax.f32 %v769_v44, 0.0  ;;  %v8250_v38 = vsel %vm2689_vm2, %v2718_v39, %v2719_v37  ;;  %v2721_v45 = vor.u32 %v2719_v37, %v2003_v27  ;;  %v2008_v28 = vor.u32 %v2006_v9, %v2005_v16  ;;  %vm2998_vm6 = vmpackc.low %vm8284_vm5, %vm8284_vm5 }
 0x166   : > { %10309 = vst [vmem:[#allocation23_spill] sm:$0xff] %v8250_v38  ;;  %v8255_v40 = vpack.c.bf16 %v951_v47, %v950_v3  ;;  %v2016_v44 = vor.u32 %v2014_v20, %v8232_v34  ;;  %7308 = vmatpush3.bf16.msra.mxu1 %v7537_v35  ;;  %6996 = vmatpush3.bf16.msra.mxu0 %v7537_v35 }
 0x167   : > { %v8260_v14 = vpack.c.bf16 %v949_v21, %v948_v49  ;;  %v6955_v42 = vpop.f32.mrb[28].mxu0  ;;  %v8268_v37 = vsel %vm2689_vm2, %v2721_v45, %v2722_v18  ;;  %v10313_v49 = vmov 0   ;;  %7301 = vmatprep.subr.bf16.mxu1 %v7538_v12  ;;  %6997 = vmatprep.subr.bf16.mxu0 %v7538_v12 }
 0x168   : > { %10310 = vst [vmem:[#allocation24_spill] sm:$0xff] %v8255_v40  ;;  %10312 = vst [vmem:[#allocation26_spill] sm:$0xff] %v8268_v37  ;;  %v10266_v47 = vshrl.u32 %v8255_v40, 16  ;;  %v2030_v3 = vshll.u32 %v8255_v40, 16  ;;  %v790_v20 = vadd.f32 %v6955_v42, %v7950_v43  ;;  %v781_v21 = vpop.f32.mrb[29].mxu0  ;;  %v8279_v27 = vsel %vm2996_vm4, 65537, %v10313_v49 }
 0x169   : > { %10311 = vst [vmem:[#allocation25_spill] sm:$0xff] %v8260_v14  ;;  %v2019_v9 = vshrl.u32 %v8260_v14, 16  ;;  %v2022_v39 = vshll.u32 %v8260_v14, 16  ;;  %v782_v45 = vadd.f32 %v7950_v43, %v781_v21  ;;  %v6956_v51 = vpop.f32.mrb[30].mxu0  ;;  %v10316_v21 = vshrl.u32 %v8188_v53, 16 }
 0x16a   : > { %v8293_v23 = vrot.slane %v10266_v47, 7  ;;  %v793_v35 = vadd.f32 %v6956_v51, %v7950_v43  ;;  %v784_v15 = vpop.f32.mrb[31].mxu0  ;;  %v954_v58 = vmax.f32 %v790_v20, 0.0  ;;  %7309 = vmatpush3.bf16.msra.mxu1 %v7538_v12  ;;  %v2728_v47 = vrot.slane %v2030_v3, 1  ;;  %6998 = vmatpush3.bf16.msra.mxu0 %v7538_v12 }
 0x16b   : > { %v2724_v24 = vor.u32 %v2722_v18, %v10316_v21  ;;  %v8299_v55 = vrot.slane %v2019_v9, 7  ;;  %v785_v14 = vadd.f32 %v7950_v43, %v784_v15  ;;  %v2725_v37 = vrot.slane %v2022_v39, 1  ;;  %v7539_v15 = vld [vmem:[%s10254_s3 + $0x68] sm:$0xff]  }
 0x16c   : > { %v955_v7 = vmax.f32 %v793_v35, 0.0  ;;  %v8304_v51 = vsel %vm1922_vm7, %v8164_v31, %v2008_v28  ;;  %v8307_v38 = vsel %vm1922_vm7, %v2005_v16, %v2016_v44  ;;  %v952_v18 = vmax.f32 %v782_v45, 0.0  ;;  %7302 = vmatprep.subr.bf16.mxu1 %v7539_v15  ;;  %6999 = vmatprep.subr.bf16.mxu0 %v7539_v15 }
 0x16d   : > { %10317 = vst [vmem:[#allocation27_spill] sm:$0xff] %v8304_v51  ;;  %10318 = vst [vmem:[#allocation28_spill] sm:$0xff] %v8307_v38  ;;  %v953_v21 = vmax.f32 %v785_v14, 0.0  ;;  %v8310_v20 = vsel %vm2689_vm2, %v2724_v24, %v2725_v37  ;;  %v2727_v35 = vor.u32 %v2725_v37, %v2019_v9  ;;  %v1446_v31 = vand.u32 15, %v1072_v46 }
 0x16e   : > { %10319 = vst [vmem:[#allocation29_spill] sm:$0xff] %v8310_v20  ;;  %v8315_v53 = vpack.c.bf16 %v955_v7, %v954_v58  ;;  %v2024_v28 = vor.u32 %v2022_v39, %v8299_v55  ;;  %v2032_v58 = vor.u32 %v2030_v3, %v8293_v23  ;;  %v1074_v39 = vadd.s32 424, %v7944_v41  ;;  %7310 = vmatpush3.bf16.msra.mxu1 %v7539_v15  ;;  %v7540_v3 = vld [vmem:[%s10254_s3 + $0x70] sm:$0xff]  }
 0x16f   : > { %v8320_v16 = vpack.c.bf16 %v953_v21, %v952_v18  ;;  %v6959_v44 = vpop.f32.mrb[32].mxu0  ;;  %v8327_v14 = vsel %vm2689_vm2, %v2727_v35, %v2728_v47  ;;  %7000 = vmatpush3.bf16.msra.mxu0 %v7539_v15  ;;  %v8351_v15 = vsel %vm2998_vm6, 65537, %v10313_v49  ;;  %vm8353_vm8 = vcmp.eq.s32.totalorder %v1446_v31, 15  ;;  %7303 = vmatprep.subr.bf16.mxu1 %v7540_v3 }
 0x170   : > { %10320 = vst [vmem:[#allocation30_spill] sm:$0xff] %v8315_v53  ;;  %10322 = vst [vmem:[#allocation32_spill] sm:$0xff] %v8327_v14  ;;  %v2046_v7 = vshll.u32 %v8315_v53, 16  ;;  %v806_v37 = vadd.f32 %v6959_v44, %v7950_v43  ;;  %v797_v9 = vpop.f32.mrb[33].mxu0  ;;  %v8342_v24 = vsel %vm1922_vm7, %v8232_v34, %v2024_v28  ;;  %v10326_v46 = vshrl.u32 %v8255_v40, 16  ;;  %7001 = vmatprep.subr.bf16.mxu0 %v7540_v3 }
 0x171   : > { %10321 = vst [vmem:[#allocation31_spill] sm:$0xff] %v8320_v16  ;;  %v2035_v45 = vshrl.u32 %v8320_v16, 16  ;;  %v2038_v18 = vshll.u32 %v8320_v16, 16  ;;  %v798_v21 = vadd.f32 %v7950_v43, %v797_v9  ;;  %v6960_v35 = vpop.f32.mrb[34].mxu0  ;;  %10323 = vst [vmem:[#allocation33_spill] sm:$0xff] %v8342_v24  ;;  %v1460_v31 = vand.u32 15, %v1074_v39 }
 0x172   : > { %v809_v44 = vadd.f32 %v6960_v35, %v7950_v43  ;;  %v800_v12 = vpop.f32.mrb[35].mxu0  ;;  %v2730_v38 = vor.u32 %v2728_v47, %v10326_v46  ;;  %v10327_v35 = vshrl.u32 %v8315_v53, 16  ;;  %v958_v51 = vmax.f32 %v806_v37, 0.0  ;;  %7311 = vmatpush3.bf16.msra.mxu1 %v7540_v3  ;;  %vm3000_vm9 = vmpackc.low %vm8353_vm8, %vm8353_vm8 }
 0x173   : > { %v8359_v34 = vrot.slane %v2035_v45, 7  ;;  %v801_v28 = vadd.f32 %v7950_v43, %v800_v12  ;;  %v2731_v42 = vrot.slane %v2038_v18, 1  ;;  %v2734_v14 = vrot.slane %v2046_v7, 1  ;;  %7002 = vmatpush3.bf16.msra.mxu0 %v7540_v3  ;;  %v7541_v12 = vld [vmem:[%s10254_s3 + $0x78] sm:$0xff]  }
 0x174   : > { %v8364_v24 = vrot.slane %v10327_v35, 7  ;;  %v959_v16 = vmax.f32 %v809_v44, 0.0  ;;  %v956_v20 = vmax.f32 %v798_v21, 0.0  ;;  %v8381_v21 = vsel %vm1922_vm7, %v8299_v55, %v2032_v58  ;;  %7304 = vmatprep.subr.bf16.mxu1 %v7541_v12  ;;  %7003 = vmatprep.subr.bf16.mxu0 %v7541_v12 }
 0x175   : > { %v957_v40 = vmax.f32 %v801_v28, 0.0  ;;  %v8370_v47 = vsel %vm2689_vm2, %v2730_v38, %v2731_v42  ;;  %v2733_v46 = vor.u32 %v2731_v42, %v2035_v45  ;;  %10329 = vst [vmem:[#allocation35_spill] sm:$0xff] %v8381_v21  ;;  %v2040_v3 = vor.u32 %v2038_v18, %v8359_v34 }
 0x176   : > { %10328 = vst [vmem:[#allocation34_spill] sm:$0xff] %v8370_v47  ;;  %v8375_v37 = vpack.c.bf16 %v959_v16, %v958_v51  ;;  %v10330_v38 = vcombine.low %v8007_v32, %v7987_v13  ;;  %v2048_v16 = vor.u32 %v2046_v7, %v8364_v24  ;;  %v8404_v13 = vsel %vm3000_vm9, 65537, %v10313_v49  ;;  %7312 = vmatpush3.bf16.msra.mxu1 %v7541_v12 }
 0x177   : > { %v1004_v44 = vpack.c.bf16 %v957_v40, %v956_v20  ;;  %v6963_v28 = vpop.f32.mrb[36].mxu0  ;;  %v8392_v51 = vsel %vm2689_vm2, %v2733_v46, %v2734_v14  ;;  %7004 = vmatpush3.bf16.msra.mxu0 %v7541_v12  ;;  %vm8408_vm11 = vcmp.eq.s32.totalorder %v1460_v31, 15  ;;  %v8414_v9 = vsel %vm1922_vm7, %v8293_v23, %v2040_v3 }
 0x178   : > { %vm8387_vm10 = vcmp.ne.s16.totalorder %v10330_v38, 0  ;;  %10333 = vst [vmem:[#allocation36_spill] sm:$0xff] %v8392_v51  ;;  %v2059_v55 = vshrl.u32 %v8375_v37, 16  ;;  %v2062_v58 = vshll.u32 %v8375_v37, 16  ;;  %v822_v40 = vadd.f32 %v6963_v28, %v7950_v43  ;;  %v813_v20 = vpop.f32.mrb[37].mxu0  ;;  %10336 = vst [vmem:[#allocation37_spill] sm:$0xff] %v8414_v9 }
 0x179   : > { %v2051_v45 = vshrl.u32 %v1004_v44, 16  ;;  %v2054_v18 = vshll.u32 %v1004_v44, 16  ;;  %v814_v7 = vadd.f32 %v7950_v43, %v813_v20  ;;  %v6964_v42 = vpop.f32.mrb[38].mxu0  ;;  %3301 = vrot.lane.b32.xlu0 %v1004_v44, %s7729_s22  ;;  %v1076_v39 = vadd.s32 440, %v7944_v41  ;;  %v7542_v20 = vld [vmem:[%s10254_s3] sm:$0xff]   ;;  %vm3002_vm0 = vmpackc.low %vm8408_vm11, %vm8408_vm11 }
 0x17a   : > { %v8416_v28 = vrot.slane %v2059_v55, 7  ;;  %v825_v12 = vadd.f32 %v6964_v42, %v7950_v43  ;;  %v816_v38 = vpop.f32.mrb[39].mxu0  ;;  %v10337_v31 = vshrl.u32 %v8315_v53, 16  ;;  %v962_v51 = vmax.f32 %v822_v40, 0.0  ;;  %7069 = vmatprep.subr.bf16.mxu1 %v7542_v20 }
 0x17b   : > { %v2053_v21 = vrot.slane %v2051_v45, 7  ;;  %v817_v47 = vadd.f32 %v7950_v43, %v816_v38  ;;  %v2737_v23 = vrot.slane %v2054_v18, 1  ;;  %v10338_v3 = vcombine.low %v8007_v32, %v8029_v48 }
 0x17c   : > { %v2736_v44 = vor.u32 %v2734_v14, %v10337_v31  ;;  %v960_v9 = vmax.f32 %v814_v7, 0.0  ;;  %v963_v29 = vmax.f32 %v825_v12, 0.0  ;;  %v2740_v61 = vrot.slane %v2062_v58, 1 }
 0x17d   : > { %vm8429_vm12 = vcmp.ne.s16.totalorder %v10338_v3, 0  ;;  %v2064_v11 = vor.u32 %v2062_v58, %v8416_v28  ;;  %v961_v53 = vmax.f32 %v817_v47, 0.0  ;;  %3303 = vrot.lane.b32.xlu0 %v8375_v37, %s7729_s22  ;;  %v2739_v14 = vor.u32 %v2737_v23, %v2051_v45 }
 0x17e   : > { %v10341_v40 = vcombine.low %v8007_v32, %v8051_v8  ;;  %v2056_v38 = vor.u32 %v2054_v18, %v2053_v21  ;;  %v8444_v7 = vsel %vm2689_vm2, %v2736_v44, %v2737_v23  ;;  %v8446_v12 = vpack.c.bf16 %v963_v29, %v962_v51 }
 0x17f   : > { %v1474_v58 = vand.u32 15, %v1076_v39  ;;  %v8449_v47 = vsel %vm1922_vm7, %v2053_v21, %v2064_v11  ;;  %v8453_v37 = vsel %vm1922_vm7, %v8359_v34, %v2048_v16  ;;  %v1006_v45 = vpack.c.bf16 %v961_v53, %v960_v9  ;;  %v6967_v8 = vpop.f32.mrb[40].mxu0 }
 0x180   : > { %vm8439_vm13 = vcmp.ne.s16.totalorder %v10341_v40, 0  ;;  %10344 = vst [vmem:[#allocation38_spill] sm:$0xff] %v8453_v37  ;;  %v2741_v20 = vsel %vm2689_vm2, %v2739_v14, %v2740_v61  ;;  %v8460_v31 = vsel %vm1922_vm7, %v8364_v24, %v2056_v38  ;;  %v2075_v29 = vshrl.u32 %v8446_v12, 16  ;;  %v829_v21 = vpop.f32.mrb[41].mxu0 }
 0x181   : > { %v2078_v11 = vshll.u32 %v8446_v12, 16  ;;  %v838_v39 = vadd.f32 %v6967_v8, %v7950_v43  ;;  %v3221_v53 = vsel %vm8387_vm10, 0, %v2741_v20  ;;  %v2067_v34 = vshrl.u32 %v1006_v45, 16  ;;  %v6968_v9 = vpop.f32.mrb[42].mxu0  ;;  %3305 = vrot.lane.b32.xlu0 %v1006_v45, %s7729_s22 }
 0x182   : > { %v2070_v51 = vshll.u32 %v1006_v45, 16  ;;  %v830_v16 = vadd.f32 %v7950_v43, %v829_v21  ;;  %3397 = vrot.lane.b32.xlu1 %v3221_v53, %s7730_s19  ;;  %v1078_v24 = vadd.s32 456, %v7944_v41  ;;  %v8471_v44 = vrot.slane %v2075_v29, 7  ;;  %v832_v3 = vpop.f32.mrb[43].mxu0 }
 0x183   : > { %v841_v23 = vadd.f32 %v6968_v9, %v7950_v43  ;;  %v2742_v14 = vor.u32 %v2740_v61, %v2059_v55  ;;  %vm8474_vm14 = vcmp.eq.s32.totalorder %v1474_v58, 15  ;;  %v2069_v40 = vrot.slane %v2067_v34, 7 }
 0x184   : > { %v966_v38 = vmax.f32 %v838_v39, 0.0  ;;  %v833_v8 = vadd.f32 %v7950_v43, %v832_v3  ;;  %v2743_v45 = vrot.slane %v2070_v51, 1  ;;  %v10347_v20 = vcombine.low %v8007_v32, %v8096_v62  ;;  %vm3004_vm3 = vmpackc.low %vm8474_vm14, %vm8474_vm14 }
 0x185   : > { %v964_v53 = vmax.f32 %v830_v16, 0.0  ;;  %v967_v9 = vmax.f32 %v841_v23, 0.0  ;;  %v2746_v18 = vrot.slane %v2078_v11, 1  ;;  %v2080_v61 = vor.u32 %v2078_v11, %v8471_v44 }
 0x186   : > { %vm8482_vm15 = vcmp.ne.s16.totalorder %v10347_v20, 0  ;;  %v965_v55 = vmax.f32 %v833_v8, 0.0  ;;  %v2744_v58 = vsel %vm2689_vm2, %v2742_v14, %v2743_v45  ;;  %v2745_v39 = vor.u32 %v2743_v45, %v2067_v34 }
 0x187   : > { %v10350_v62 = vcombine.low %v8007_v32, %v8140_v56  ;;  %v2072_v16 = vor.u32 %v2070_v51, %v2069_v40  ;;  %v8498_v23 = vpack.c.bf16 %v967_v9, %v966_v38  ;;  %v3222_v20 = vsel %vm8429_vm12, 0, %v2744_v58  ;;  %v6971_v56 = vpop.f32.mrb[44].mxu0 }
 0x188   : > { %v1488_v11 = vand.u32 15, %v1078_v24  ;;  %v8506_v34 = vsel %vm1922_vm7, %v2069_v40, %v2080_v61  ;;  %v1008_v14 = vpack.c.bf16 %v965_v55, %v964_v53  ;;  %3399 = vrot.lane.b32.xlu1 %v3222_v20, %s7730_s19  ;;  %v2747_v8 = vsel %vm2689_vm2, %v2745_v39, %v2746_v18  ;;  %v845_v45 = vpop.f32.mrb[45].mxu0 }
 0x189   : > { %vm8494_vm1 = vcmp.ne.s16.totalorder %v10350_v62, 0  ;;  %10353 = vst [vmem:[#allocation39_spill] sm:$0xff] %v8506_v34  ;;  %v8516_v42 = vsel %vm3002_vm0, 65537, %v10313_v49  ;;  %v8520_v51 = vsel %vm1922_vm7, %v8416_v28, %v2072_v16  ;;  %v2091_v24 = vshrl.u32 %v8498_v23, 16  ;;  %v6972_v55 = vpop.f32.mrb[46].mxu0 }
 0x18a   : > { %v2094_v40 = vshll.u32 %v8498_v23, 16  ;;  %v854_v38 = vadd.f32 %v6971_v56, %v7950_v43  ;;  %v3223_v53 = vsel %vm8439_vm13, 0, %v2747_v8  ;;  %v2083_v9 = vshrl.u32 %v1008_v14, 16  ;;  %v848_v39 = vpop.f32.mrb[47].mxu0 }
 0x18b   : > { %v2086_v61 = vshll.u32 %v1008_v14, 16  ;;  %v846_v46 = vadd.f32 %v7950_v43, %v845_v45  ;;  %3401 = vrot.lane.b32.xlu0 %v3223_v53, %s7730_s19  ;;  %v8535_v28 = vsel %vm3004_vm3, 65537, %v10313_v49  ;;  %v8537_v58 = vrot.slane %v2091_v24, 7 }
 0x18c   : > { %v857_v48 = vadd.f32 %v6972_v55, %v7950_v43  ;;  %v2748_v62 = vor.u32 %v2746_v18, %v2075_v29  ;;  %vm8540_vm4 = vcmp.eq.s32.totalorder %v1488_v11, 15  ;;  %v2085_v20 = vrot.slane %v2083_v9, 7  ;;  %3307 = vrot.lane.b32.xlu1 %v8446_v12, %s7729_s22 }
 0x18d   : > { %v970_v56 = vmax.f32 %v854_v38, 0.0  ;;  %v849_v8 = vadd.f32 %v7950_v43, %v848_v39  ;;  %v2749_v35 = vrot.slane %v2086_v61, 1  ;;  %v10356_v45 = vcombine.low %v8007_v32, %v8204_v52  ;;  %vm3006_vm8 = vmpackc.low %vm8540_vm4, %vm8540_vm4 }
 0x18e   : > { %v968_v18 = vmax.f32 %v846_v46, 0.0  ;;  %v971_v29 = vmax.f32 %v857_v48, 0.0  ;;  %v2752_v11 = vrot.slane %v2094_v40, 1  ;;  %v2096_v55 = vor.u32 %v2094_v40, %v8537_v58 }
 0x18f   : > { %vm8550_vm5 = vcmp.ne.s16.totalorder %v10356_v45, 0  ;;  %v969_v37 = vmax.f32 %v849_v8, 0.0  ;;  %3309 = vrot.lane.b32.xlu0 %v1008_v14, %s7729_s22  ;;  %v2750_v38 = vsel %vm2689_vm2, %v2748_v62, %v2749_v35  ;;  %v2751_v39 = vor.u32 %v2749_v35, %v2083_v9  ;;  %v6975_v9 = vpop.f32.mrb[48].mxu0 }
 0x190   : > { %v10359_v12 = vcombine.low %v8007_v32, %v8218_v5  ;;  %v2088_v45 = vor.u32 %v2086_v61, %v2085_v20  ;;  %v8564_v34 = vpack.c.bf16 %v971_v29, %v970_v56  ;;  %v3224_v46 = vsel %vm8482_vm15, 0, %v2750_v38  ;;  %v861_v8 = vpop.f32.mrb[49].mxu0 }
 0x191   : > { %v8574_v14 = vsel %vm1922_vm7, %v2085_v20, %v2096_v55  ;;  %v1010_v5 = vpack.c.bf16 %v969_v37, %v968_v18  ;;  %3403 = vrot.lane.b32.xlu1 %v3224_v46, %s7730_s19  ;;  %v2753_v61 = vsel %vm2689_vm2, %v2751_v39, %v2752_v11  ;;  %v870_v20 = vadd.f32 %v6975_v9, %v7950_v43  ;;  %v6976_v55 = vpop.f32.mrb[50].mxu0 }
 0x192   : > { %vm8560_vm6 = vcmp.ne.s16.totalorder %v10359_v12, 0  ;;  %10362 = vst [vmem:[#allocation40_spill] sm:$0xff] %v8574_v14  ;;  %v8582_v48 = vsel %vm1922_vm7, %v8471_v44, %v2088_v45  ;;  %v2107_v62 = vshrl.u32 %v8564_v34, 16  ;;  %v2110_v56 = vshll.u32 %v8564_v34, 16  ;;  %v864_v39 = vpop.f32.mrb[51].mxu0 }
 0x193   : > { %v3225_v37 = vsel %vm8494_vm1, 0, %v2753_v61  ;;  %v2099_v35 = vshrl.u32 %v1010_v5, 16  ;;  %v2102_v18 = vshll.u32 %v1010_v5, 16  ;;  %v862_v29 = vadd.f32 %v7950_v43, %v861_v8 }
 0x194   : > { %3405 = vrot.lane.b32.xlu0 %v3225_v37, %s7730_s19  ;;  %v8597_v44 = vsel %vm3006_vm8, 65537, %v10313_v49  ;;  %v8599_v38 = vrot.slane %v2107_v62, 7  ;;  %v873_v3 = vadd.f32 %v6976_v55, %v7950_v43  ;;  %v2754_v12 = vor.u32 %v2752_v11, %v2091_v24 }
 0x195   : > { %v8603_v45 = vadd.s32 472, %v7944_v41  ;;  %v2101_v46 = vrot.slane %v2099_v35, 7  ;;  %v974_v9 = vmax.f32 %v870_v20, 0.0  ;;  %v865_v61 = vadd.f32 %v7950_v43, %v864_v39  ;;  %3311 = vrot.lane.b32.xlu1 %v8498_v23, %s7729_s22 }
 0x196   : > { %v2755_v16 = vrot.slane %v2102_v18, 1  ;;  %v10363_v8 = vcombine.low %v8007_v32, %v8279_v27  ;;  %v972_v55 = vmax.f32 %v862_v29, 0.0  ;;  %v975_v24 = vmax.f32 %v873_v3, 0.0 }
 0x197   : > { %v2758_v11 = vrot.slane %v2110_v56, 1  ;;  %v2112_v21 = vor.u32 %v2110_v56, %v8599_v38  ;;  %v973_v40 = vmax.f32 %v865_v61, 0.0  ;;  %v10366_v23 = vcombine.low %v8007_v32, %v8351_v15  ;;  %v6979_v3 = vpop.f32.mrb[52].mxu0 }
 0x198   : > { %vm8611_vm9 = vcmp.ne.s16.totalorder %v10363_v8, 0  ;;  %3313 = vrot.lane.b32.xlu0 %v1010_v5, %s7729_s22  ;;  %v2756_v43 = vsel %vm2689_vm2, %v2754_v12, %v2755_v16  ;;  %v2757_v20 = vor.u32 %v2755_v16, %v2099_v35  ;;  %v2104_v39 = vor.u32 %v2102_v18, %v2101_v46 }
 0x199   : > { %vm8621_vm10 = vcmp.ne.s16.totalorder %v10366_v23, 0  ;;  %v8625_v8 = vpack.c.bf16 %v975_v24, %v974_v9  ;;  %v3226_v29 = vsel %vm8550_vm5, 0, %v2756_v43  ;;  %v8632_v5 = vsel %vm1922_vm7, %v2101_v46, %v2112_v21  ;;  %v877_v46 = vpop.f32.mrb[53].mxu0 }
 0x19a   : > { %10369 = vst [vmem:[#allocation41_spill] sm:$0xff] %v8632_v5  ;;  %v1012_v35 = vpack.c.bf16 %v973_v40, %v972_v55  ;;  %3407 = vrot.lane.b32.xlu1 %v3226_v29, %s7730_s19  ;;  %v2759_v15 = vsel %vm2689_vm2, %v2757_v20, %v2758_v11  ;;  %v8637_v12 = vadd.s32 504, %v7944_v41  ;;  %v8641_v18 = vsel %vm1922_vm7, %v8537_v58, %v2104_v39  ;;  %v8648_v40 = vld [vmem:[%s10253_s2] ss:$0 sm:$0xff]  ;;  %v6980_v24 = vpop.f32.mrb[54].mxu0 }
 0x19b   : > { %10370 = vst [vmem:[#allocation42_spill] sm:$0xff] %v8641_v18  ;;  %v2123_v53 = vshrl.u32 %v8625_v8, 16  ;;  %v2126_v9 = vshll.u32 %v8625_v8, 16  ;;  %v886_v21 = vadd.f32 %v8648_v40, %v6979_v3  ;;  %v3227_v61 = vsel %vm8560_vm6, 0, %v2759_v15  ;;  %v880_v39 = vpop.f32.mrb[55].mxu0 }
 0x19c   : > { %v2115_v16 = vshrl.u32 %v1012_v35, 16  ;;  %v2118_v55 = vshll.u32 %v1012_v35, 16  ;;  %v878_v58 = vadd.f32 %v8648_v40, %v877_v46  ;;  %3409 = vrot.lane.b32.xlu0 %v3227_v61, %s7730_s19  ;;  %v1502_v43 = vand.u32 15, %v8603_v45 }
 0x19d   : > { %v8656_v20 = vrot.slane %v2123_v53, 7  ;;  %v889_v23 = vadd.f32 %v8648_v40, %v6980_v24  ;;  %v2760_v29 = vor.u32 %v2758_v11, %v2107_v62  ;;  %v1082_v3 = vadd.s32 488, %v7944_v41 }
 0x19e   : > { %v2117_v56 = vrot.slane %v2115_v16, 7  ;;  %v978_v52 = vmax.f32 %v886_v21, 0.0  ;;  %v881_v15 = vadd.f32 %v8648_v40, %v880_v39  ;;  %3315 = vrot.lane.b32.xlu1 %v8564_v34, %s7729_s22  ;;  %v2761_v46 = vrot.slane %v2118_v55, 1 }
 0x19f   : > { %v10371_v61 = vcombine.low %v8007_v32, %v8404_v13  ;;  %v976_v24 = vmax.f32 %v878_v58, 0.0  ;;  %v979_v5 = vmax.f32 %v889_v23, 0.0  ;;  %v2764_v62 = vrot.slane %v2126_v9, 1 }
 0x1a0   : > { %v2128_v11 = vor.u32 %v2126_v9, %v8656_v20  ;;  %v977_v18 = vmax.f32 %v881_v15, 0.0  ;;  %3317 = vrot.lane.b32.xlu0 %v1012_v35, %s7729_s22  ;;  %v2762_v21 = vsel %vm2689_vm2, %v2760_v29, %v2761_v46  ;;  %v2763_v39 = vor.u32 %v2761_v46, %v2115_v16  ;;  %v6983_v29 = vpop.f32.mrb[56].mxu0 }
 0x1a1   : > { %vm8666_vm11 = vcmp.ne.s16.totalorder %v10371_v61, 0  ;;  %v10374_v34 = vcombine.low %v8007_v32, %v8516_v42  ;;  %v2120_v61 = vor.u32 %v2118_v55, %v2117_v56  ;;  %v8680_v14 = vpack.c.bf16 %v979_v5, %v978_v52 }
 0x1a2   : > { %v3228_v58 = vsel %vm8611_vm9, 0, %v2762_v21  ;;  %v1516_v9 = vand.u32 15, %v1082_v3  ;;  %v8685_v23 = vsel %vm1922_vm7, %v2117_v56, %v2128_v11  ;;  %v1014_v35 = vpack.c.bf16 %v977_v18, %v976_v24  ;;  %v893_v56 = vpop.f32.mrb[57].mxu0 }
 0x1a3   : > { %vm8676_vm12 = vcmp.ne.s16.totalorder %v10374_v34, 0  ;;  %3411 = vrot.lane.b32.xlu1 %v3228_v58, %s7730_s19  ;;  %v2765_v42 = vsel %vm2689_vm2, %v2763_v39, %v2764_v62  ;;  %v1530_v16 = vand.u32 15, %v8637_v12  ;;  %v8692_v55 = vsel %vm1922_vm7, %v8599_v38, %v2120_v61  ;;  %v6984_v24 = vpop.f32.mrb[58].mxu0 }
 0x1a4   : > { %v2139_v5 = vshrl.u32 %v8680_v14, 16  ;;  %v2142_v37 = vshll.u32 %v8680_v14, 16  ;;  %v902_v3 = vadd.f32 %v8648_v40, %v6983_v29  ;;  %v3229_v18 = vsel %vm8621_vm10, 0, %v2765_v42  ;;  %v896_v21 = vpop.f32.mrb[59].mxu0 }
 0x1a5   : > { %v2131_v52 = vshrl.u32 %v1014_v35, 16  ;;  %v2134_v15 = vshll.u32 %v1014_v35, 16  ;;  %v894_v46 = vadd.f32 %v8648_v40, %v893_v56  ;;  %3413 = vrot.lane.b32.xlu0 %v3229_v18, %s7730_s19  ;;  %vm8701_vm13 = vcmp.eq.s32.totalorder %v1502_v43, 15 }
 0x1a6   : > { %v8705_v12 = vrot.slane %v2139_v5, 7  ;;  %v905_v11 = vadd.f32 %v8648_v40, %v6984_v24  ;;  %v2766_v39 = vor.u32 %v2764_v62, %v2123_v53  ;;  %vm8708_vm14 = vcmp.eq.s32.totalorder %v1516_v9, 15  ;;  %vm3008_vm1 = vmpackc.low %vm8701_vm13, %vm8701_vm13 }
 0x1a7   : > { %v2133_v34 = vrot.slane %v2131_v52, 7  ;;  %v982_v61 = vmax.f32 %v902_v3, 0.0  ;;  %v897_v58 = vadd.f32 %v8648_v40, %v896_v21  ;;  %3319 = vrot.lane.b32.xlu1 %v8625_v8, %s7729_s22  ;;  %v2767_v43 = vrot.slane %v2134_v15, 1  ;;  %vm3010_vm3 = vmpackc.low %vm8708_vm14, %vm8708_vm14 }
 0x1a8   : > { %v10381_v29 = vcombine.low %v8007_v32, %v8535_v28  ;;  %v980_v53 = vmax.f32 %v894_v46, 0.0  ;;  %v983_v62 = vmax.f32 %v905_v11, 0.0  ;;  %v2770_v9 = vrot.slane %v2142_v37, 1 }
 0x1a9   : > { %v2144_v56 = vor.u32 %v2142_v37, %v8705_v12  ;;  %v981_v18 = vmax.f32 %v897_v58, 0.0  ;;  %3321 = vrot.lane.b32.xlu0 %v1014_v35, %s7729_s22  ;;  %v2768_v3 = vsel %vm2689_vm2, %v2766_v39, %v2767_v43  ;;  %v2769_v24 = vor.u32 %v2767_v43, %v2131_v52  ;;  %v6987_v52 = vpop.f32.mrb[60].mxu0 }
 0x1aa   : > { %vm8718_vm15 = vcmp.ne.s16.totalorder %v10381_v29, 0  ;;  %v2136_v8 = vor.u32 %v2134_v15, %v2133_v34  ;;  %v8725_v21 = vpack.c.bf16 %v983_v62, %v982_v61  ;;  %v3230_v28 = vsel %vm8666_vm11, 0, %v2768_v3  ;;  %v909_v61 = vpop.f32.mrb[61].mxu0 }
 0x1ab   : > { %v10384_v29 = vcombine.low %v8007_v32, %v8597_v44  ;;  %v8740_v35 = vsel %vm1922_vm7, %v2133_v34, %v2144_v56  ;;  %v1016_v37 = vpack.c.bf16 %v981_v18, %v980_v53  ;;  %3415 = vrot.lane.b32.xlu1 %v3230_v28, %s7730_s19  ;;  %v2771_v45 = vsel %vm2689_vm2, %v2769_v24, %v2770_v9  ;;  %v6988_v62 = vpop.f32.mrb[62].mxu0 }
 0x1ac   : > { %10387 = vst [vmem:[#allocation43_spill] sm:$0xff] %v8740_v35  ;;  %vm8747_vm4 = vcmp.eq.s32.totalorder %v1530_v16, 15  ;;  %v8753_v15 = vsel %vm1922_vm7, %v8656_v20, %v2136_v8  ;;  %v2155_v11 = vshrl.u32 %v8725_v21, 16  ;;  %v2158_v39 = vshll.u32 %v8725_v21, 16  ;;  %v912_v13 = vpop.f32.mrb[63].mxu0 }
 0x1ad   : > { %vm8732_vm0 = vcmp.ne.s16.totalorder %v10384_v29, 0  ;;  %v918_v34 = vadd.f32 %v8648_v40, %v6987_v52  ;;  %v3231_v58 = vsel %vm8676_vm12, 0, %v2771_v45  ;;  %v2147_v43 = vshrl.u32 %v1016_v37, 16  ;;  %vm3012_vm9 = vmpackc.low %vm8747_vm4, %vm8747_vm4 }
 0x1ae   : > { %v2150_v53 = vshll.u32 %v1016_v37, 16  ;;  %v910_v16 = vadd.f32 %v8648_v40, %v909_v61  ;;  %3417 = vrot.lane.b32.xlu0 %v3231_v58, %s7730_s19  ;;  %v3072_v20 = vsel %vm3008_vm1, 65537, %v10313_v49  ;;  %v8768_v56 = vrot.slane %v2155_v11, 7 }
 0x1af   : > { %v921_v18 = vadd.f32 %v8648_v40, %v6988_v62  ;;  %v2772_v3 = vor.u32 %v2770_v9, %v2139_v5  ;;  %v3074_v24 = vsel %vm3010_vm3, 65537, %v10313_v49  ;;  %v10390_v8 = vand.u32 15, %v7969_v63  ;;  %3323 = vrot.lane.b32.xlu1 %v8680_v14, %s7729_s22 }
 0x1b0   : > { %v2149_v38 = vrot.slane %v2147_v43, 7  ;;  %v986_v29 = vmax.f32 %v918_v34, 0.0  ;;  %v913_v52 = vadd.f32 %v8648_v40, %v912_v13  ;;  %v2773_v5 = vrot.slane %v2150_v53, 1 }
 0x1b1   : > { %vm8779_vm5 = vcmp.eq.s32.totalorder %v10390_v8, 15  ;;  %v984_v9 = vmax.f32 %v910_v16, 0.0  ;;  %v987_v45 = vmax.f32 %v921_v18, 0.0  ;;  %v2776_v61 = vrot.slane %v2158_v39, 1 }
 0x1b2   : > { %v2160_v27 = vor.u32 %v2158_v39, %v8768_v56  ;;  %v985_v58 = vmax.f32 %v913_v52, 0.0  ;;  %3325 = vrot.lane.b32.xlu0 %v1016_v37, %s7729_s22  ;;  %v2774_v63 = vsel %vm2689_vm2, %v2772_v3, %v2773_v5  ;;  %v2775_v62 = vor.u32 %v2773_v5, %v2147_v43 }
 0x1b3   : > { %v2152_v8 = vor.u32 %v2150_v53, %v2149_v38  ;;  %v1019_v35 = vpack.c.bf16 %v987_v45, %v986_v29  ;;  %v3232_v40 = vsel %vm8718_vm15, 0, %v2774_v63  ;;  %vm2206_vm6 = vcmask 1040384   ;;  %vm2950_vm15 = vmpackc.low %vm8779_vm5, %vm8779_vm5 }
 0x1b4   : > { %v8792_v34 = vsel %vm1922_vm7, %v2149_v38, %v2160_v27  ;;  %v1018_v14 = vpack.c.bf16 %v985_v58, %v984_v9  ;;  %3419 = vrot.lane.b32.xlu1 %v3232_v40, %s7730_s19  ;;  %v2777_v39 = vsel %vm2689_vm2, %v2775_v62, %v2776_v61  ;;  %v6199_v16 = vcombine.low %v8007_v32, %v3072_v20  ;;  %vm8811_vm10 = vmand %vm2206_vm6, %vm1922_vm7 }
 0x1b5   : > { %v8799_v37 = vsel %vm1922_vm7, %v8705_v12, %v2152_v8  ;;  %v1918_v43 = vshrl.u32 %v1019_v35, 16  ;;  %v2170_v53 = vshll.u32 %v1019_v35, 16  ;;  %v3233_v42 = vsel %vm8732_vm0, 0, %v2777_v39  ;;  %v10512_v12 = vld [vmem:[#allocation9_spill] sm:$0xff] }
 0x1b6   : > { %vm2818_vm8 = vcmask 1047552   ;;  %v2163_v18 = vshrl.u32 %v1018_v14, 16  ;;  %v2166_v13 = vshll.u32 %v1018_v14, 16  ;;  %3421 = vrot.lane.b32.xlu0 %v3233_v42, %s7730_s19  ;;  %v6200_v20 = vcombine.low %v8007_v32, %v3074_v24 }
 0x1b7   : > { %v1026_v3 = vadd.s32 40, %v7944_v41  ;;  %v8815_v46 = vrot.slane %v1918_v43, 7  ;;  %v2782_v38 = vrot.slane %v2170_v53, 1  ;;  %v10395_v29 = vand.u32 15, %v8265_v22  ;;  %vm8832_vm13 = vmand %vm2818_vm8, %vm2689_vm2 }
 0x1b8   : > { %v1028_v5 = vadd.s32 56, %v7944_v41  ;;  %v2165_v24 = vrot.slane %v2163_v18, 7  ;;  %3327 = vrot.lane.b32.xlu1 %v8725_v21, %s7729_s22  ;;  %v2778_v9 = vor.u32 %v2776_v61, %v2155_v11  ;;  %v2779_v45 = vrot.slane %v2166_v13, 1 }
 0x1b9   : > { %vm8819_vm11 = vcmp.eq.s32.totalorder %v10395_v29, 15  ;;  %vm8826_vm12 = vcmp.ne.s16.totalorder %v6199_v16, 0  ;;  %v2784_v58 = vor.u32 %v2782_v38, %v1918_v43  ;;  %v3076_v21 = vsel %vm3012_vm9, 65537, %v10313_v49 }
 0x1ba   : > { %v2172_v11 = vor.u32 %v2170_v53, %v8815_v46  ;;  %v2208_v61 = vsel %vm8811_vm10, %v8815_v46, %v7997_v25  ;;  %3329 = vrot.lane.b32.xlu0 %v1018_v14, %s7729_s22  ;;  %v2780_v63 = vsel %vm2689_vm2, %v2778_v9, %v2779_v45  ;;  %v2781_v62 = vor.u32 %v2779_v45, %v2163_v18  ;;  %vm2952_vm0 = vmpackc.low %vm8819_vm11, %vm8819_vm11 }
 0x1bb   : > { %vm3203_vm14 = vcmp.ne.s16.totalorder %v6200_v20, 0  ;;  %v2168_v44 = vor.u32 %v2166_v13, %v2165_v24  ;;  %v3234_v8 = vsel %vm8826_vm12, 0, %v2780_v63  ;;  %v2820_v40 = vsel %vm8832_vm13, %v2784_v58, %v7994_v17 }
 0x1bc   : > { %v1124_v39 = vand.u32 15, %v1026_v3  ;;  %v8858_v16 = vsel %vm1922_vm7, %v2165_v24, %v2172_v11  ;;  %3423 = vrot.lane.b32.xlu1 %v3234_v8, %s7730_s19  ;;  %v2783_v14 = vsel %vm2689_vm2, %v2781_v62, %v2782_v38  ;;  %v6201_v28 = vcombine.low %v8007_v32, %v3076_v21  ;;  %v10431_v3 = vld [vmem:[#allocation29_spill] sm:$0xff] }
 0x1bd   : > { %v8868_v43 = vsel %vm1922_vm7, %v8768_v56, %v2168_v44  ;;  %v3235_v53 = vsel %vm3203_vm14, 0, %v2783_v14  ;;  %v3014_v17 = vsel %vm2950_vm15, 65537, %v10313_v49  ;;  %v1138_v42 = vand.u32 15, %v1028_v5 }
 0x1be   : > { %3425 = vrot.lane.b32.xlu0 %v3235_v53, %s7730_s19  ;;  %v3016_v18 = vsel %vm2952_vm0, 65537, %v10313_v49  ;;  %vm8873_vm1 = vcmp.eq.s32.totalorder %v1124_v39, 15  ;;  %v1030_v20 = vadd.s32 72, %v7944_v41  ;;  %vm3204_vm2 = vcmp.ne.s16.totalorder %v6201_v28, 0 }
 0x1bf   : > { %v6170_v56 = vcombine.low %v8007_v32, %v3014_v17  ;;  %vm8880_vm7 = vcmp.eq.s32.totalorder %v1138_v42, 15  ;;  %v1032_v38 = vadd.s32 88, %v7944_v41  ;;  %v6171_v29 = vcombine.low %v8007_v32, %v3016_v18  ;;  %vm2954_vm3 = vmpackc.low %vm8873_vm1, %vm8873_vm1 }
 0x1c0   : > { %3331 = vrot.lane.b32.xlu1 %v1019_v35, %s7729_s22  ;;  %v3236_v52 = vsel %vm3204_vm2, 0, %v2820_v40  ;;  %v1152_v35 = vand.u32 15, %v1030_v20  ;;  %vm2956_vm5 = vmpackc.low %vm8880_vm7, %vm8880_vm7  ;;  %v3018_v5 = vsel %vm2954_vm3, 65537, %v10313_v49  ;;  %v1034_v45 = vadd.s32 104, %v7944_v41 }
 0x1c1   : > { %vm3173_vm4 = vcmp.ne.s16.totalorder %v6170_v56, 0  ;;  %v1166_v24 = vand.u32 15, %v1032_v38  ;;  %vm3174_vm6 = vcmp.ne.s16.totalorder %v6171_v29, 0  ;;  %v3020_v9 = vsel %vm2956_vm5, 65537, %v10313_v49 }
 0x1c2   : > { %3269 = vrot.lane.b32.xlu0 %v7963_v60, %s7729_s22  ;;  %v3205_v60 = vsel %vm3173_vm4, 0, %v8013_v33  ;;  %vm2634_vm8 = vcmp.eq.s32.totalorder %v1152_v35, 15  ;;  %v6172_v27 = vcombine.low %v8007_v32, %v3018_v5  ;;  %v3206_v22 = vsel %vm3174_vm6, 0, %v8041_v0 }
 0x1c3   : > { %vm2636_vm9 = vcmp.eq.s32.totalorder %v1166_v24, 15  ;;  %v1036_v58 = vadd.s32 120, %v7944_v41  ;;  %vm2958_vm11 = vmpackc.low %vm2634_vm8, %vm2634_vm8  ;;  %v1180_v33 = vand.u32 15, %v1034_v45  ;;  %v1038_v62 = vadd.s32 136, %v7944_v41  ;;  %v10412_v24 = vld [vmem:[#allocation15_spill] sm:$0xff]  ;;  %v10413_v45 = vld [vmem:[#allocation14_spill] sm:$0xff] }
 0x1c4   : > { %3427 = vrot.lane.b32.xlu1 %v3236_v52, %s7730_s19  ;;  %vm3175_vm12 = vcmp.ne.s16.totalorder %v6172_v27, 0  ;;  %vm2960_vm13 = vmpackc.low %vm2636_vm9, %vm2636_vm9  ;;  %v3022_v21 = vsel %vm2958_vm11, 65537, %v10313_v49  ;;  %v1040_v8 = vadd.s32 152, %v7944_v41  ;;  %v1042_v28 = vadd.s32 168, %v7944_v41 }
 0x1c5   : > { %v1194_v11 = vand.u32 15, %v1036_v58  ;;  %v3207_v0 = vsel %vm3175_vm12, 0, %v8054_v10  ;;  %v3024_v63 = vsel %vm2960_vm13, 65537, %v10313_v49  ;;  %vm2638_vm15 = vcmp.eq.s32.totalorder %v1180_v33, 15  ;;  %v10416_v58 = vld [vmem:[#allocation20_spill] sm:$0xff] }
 0x1c6   : > { %3271 = vrot.lane.b32.xlu0 %v7961_v59, %s7729_s22  ;;  %v6173_v59 = vcombine.low %v8007_v32, %v3020_v9  ;;  %vm2962_vm1 = vmpackc.low %vm2638_vm15, %vm2638_vm15  ;;  %v1208_v10 = vand.u32 15, %v1038_v62  ;;  %v1222_v39 = vand.u32 15, %v1040_v8  ;;  %v1236_v42 = vand.u32 15, %v1042_v28  ;;  %v10421_v62 = vld [vmem:[#allocation23_spill] sm:$0xff] }
 0x1c7   : > { %vm2640_vm0 = vcmp.eq.s32.totalorder %v1194_v11, 15  ;;  %v3026_v40 = vsel %vm2962_vm1, 65537, %v10313_v49  ;;  %v1046_v13 = vadd.s32 200, %v7944_v41  ;;  %v1048_v29 = vadd.s32 216, %v7944_v41 }
 0x1c8   : > { %3365 = vrot.lane.b32.xlu1 %v3205_v60, %s7730_s19  ;;  %vm3176_vm14 = vcmp.ne.s16.totalorder %v6173_v59, 0  ;;  %vm2964_vm7 = vmpackc.low %vm2640_vm0, %vm2640_vm0  ;;  %vm2642_vm4 = vcmp.eq.s32.totalorder %v1208_v10, 15  ;;  %vm8932_vm5 = vcmp.eq.s32.totalorder %v1222_v39, 15  ;;  %vm8951_vm12 = vcmp.eq.s32.totalorder %v1236_v42, 15  ;;  %v10422_v39 = vld [vmem:[#allocation19_spill] sm:$0xff] }
 0x1c9   : > { %v3208_v44 = vsel %vm3176_vm14, 0, %v8085_v50  ;;  %v3028_v14 = vsel %vm2964_vm7, 65537, %v10313_v49  ;;  %vm2966_vm6 = vmpackc.low %vm2642_vm4, %vm2642_vm4  ;;  %v1264_v35 = vand.u32 15, %v1046_v13  ;;  %v1055_v9 = vadd.s32 272, %v7944_v41 }
 0x1ca   : > { %3367 = vrot.lane.b32.xlu0 %v3206_v22, %s7730_s19  ;;  %vm2968_vm9 = vmpackc.low %vm8932_vm5, %vm8932_vm5  ;;  %v1050_v22 = vadd.s32 232, %v7944_v41  ;;  %v1057_v11 = vadd.s32 288, %v7944_v41  ;;  %v1063_v27 = vadd.s32 336, %v7944_v41 }
 0x1cb   : > { %v3032_v56 = vsel %vm2968_vm9, 65537, %v10313_v49  ;;  %vm2970_vm14 = vmpackc.low %vm8951_vm12, %vm8951_vm12 }
 0x1cc   : > { %3273 = vrot.lane.b32.xlu1 %v8004_v30, %s7729_s22  ;;  %v6174_v30 = vcombine.low %v8007_v32, %v3022_v21  ;;  %v3034_v60 = vsel %vm2970_vm14, 65537, %v10313_v49  ;;  %v1341_v10 = vand.u32 15, %v1057_v11 }
 0x1ce   : > { %3275 = vrot.lane.b32.xlu0 %v7999_v26, %s7729_s22  ;;  %v6175_v26 = vcombine.low %v8007_v32, %v3024_v63  ;;  %vm3177_vm2 = vcmp.ne.s16.totalorder %v6174_v30, 0 }
 0x1cf   : > { %v3209_v50 = vsel %vm3177_vm2, 0, %v8099_v1  ;;  %v6177_v1 = vcombine.low %v8007_v32, %v3028_v14  ;;  %vm8977_vm2 = vcmp.eq.s32.totalorder %v1264_v35, 15 }
 0x1d0   : > { %3369 = vrot.lane.b32.xlu1 %v3207_v0, %s7730_s19  ;;  %vm3178_vm3 = vcmp.ne.s16.totalorder %v6175_v26, 0  ;;  %v6180_v0 = vcombine.low %v8007_v32, %v3034_v60  ;;  %vm2974_vm4 = vmpackc.low %vm8977_vm2, %vm8977_vm2  ;;  %v1292_v26 = vand.u32 15, %v1050_v22 }
 0x1d1   : > { %v3210_v53 = vsel %vm3178_vm3, 0, %v8127_v36  ;;  %v3030_v36 = vsel %vm2966_vm6, 65537, %v10313_v49  ;;  %vm3180_vm11 = vcmp.ne.s16.totalorder %v6177_v1, 0  ;;  %v3038_v28 = vsel %vm2974_vm4, 65537, %v10313_v49  ;;  %v10428_v1 = vld [vmem:[#allocation26_spill] sm:$0xff] }
 0x1d2   : > { %3371 = vrot.lane.b32.xlu0 %v3208_v44, %s7730_s19  ;;  %v6178_v38 = vcombine.low %v8007_v32, %v3030_v36  ;;  %v1327_v44 = vand.u32 15, %v1055_v9  ;;  %vm9020_vm12 = vcmp.eq.s32.totalorder %v1292_v26, 15 }
 0x1d4   : > { %3277 = vrot.lane.b32.xlu1 %v8048_v6, %s7729_s22  ;;  %v6176_v6 = vcombine.low %v8007_v32, %v3026_v40  ;;  %vm3181_vm15 = vcmp.ne.s16.totalorder %v6178_v38, 0  ;;  %v1052_v40 = vadd.s32 248, %v7944_v41  ;;  %vm9011_vm9 = vcmp.eq.s32.totalorder %v1327_v44, 0 }
 0x1d5   : > { %v3213_v59 = vsel %vm3181_vm15, 0, %v10416_v58  ;;  %vm2371_vm14 = vmpackc.low %vm9011_vm9, %vm9011_vm9  ;;  %vm3591_vm9 = vcmask 785408  }
 0x1d6   : > { %3279 = vrot.lane.b32.xlu0 %v8043_v2, %s7729_s22  ;;  %v1044_v2 = vadd.s32 184, %v7944_v41  ;;  %vm3179_vm8 = vcmp.ne.s16.totalorder %v6176_v6, 0  ;;  %v1059_v6 = vadd.s32 304, %v7944_v41  ;;  %v1306_v13 = vand.u32 15, %v1052_v40  ;;  %vm2978_vm15 = vmpackc.low %vm9020_vm12, %vm9020_vm12 }
 0x1d7   : > { %v3211_v20 = vsel %vm3179_vm8, 0, %v8143_v19  ;;  %v6179_v19 = vcombine.low %v8007_v32, %v3032_v56  ;;  %vm3183_vm8 = vcmp.ne.s16.totalorder %v6180_v0, 0  ;;  %v2435_v52 = vsel %vm2371_vm14, 65537, %v10313_v49  ;;  %v10444_v0 = vld [vmem:[#allocation32_spill] sm:$0xff] }
 0x1d8   : > { %3373 = vrot.lane.b32.xlu1 %v3209_v50, %s7730_s19  ;;  %v1250_v18 = vand.u32 15, %v1044_v2  ;;  %v3215_v42 = vsel %vm3183_vm8, 0, %v10428_v1  ;;  %v3042_v60 = vsel %vm2978_vm15, 65537, %v10313_v49  ;;  %v6155_v22 = vcombine.low %v2435_v52, %v8007_v32  ;;  %v10452_v2 = vld [vmem:[#allocation31_spill] sm:$0xff] }
 0x1d9   : > { %vm3182_vm1 = vcmp.ne.s16.totalorder %v6179_v19, 0  ;;  %v6184_v26 = vcombine.low %v8007_v32, %v3042_v60 }
 0x1da   : > { %3375 = vrot.lane.b32.xlu0 %v3210_v53, %s7730_s19  ;;  %vm8959_vm13 = vcmp.eq.s32.totalorder %v1250_v18, 15  ;;  %v3214_v30 = vsel %vm3182_vm1, 0, %v10421_v62  ;;  %v10425_v53 = vld [vmem:[#allocation18_spill] sm:$0xff]  ;;  %v1061_v18 = vadd.s32 320, %v7944_v41  ;;  %vm9046_vm1 = vcmp.eq.s32.totalorder %v1306_v13, 15  ;;  %v10467_v62 = vld [vmem:[#allocation39_spill] sm:$0xff] }
 0x1db   : > { %vm2972_vm0 = vmpackc.low %vm8959_vm13, %vm8959_vm13  ;;  %vm9025_vm13 = vcmp.eq.s32.totalorder %v1341_v10, 0  ;;  %v10447_v10 = vld [vmem:[#allocation34_spill] sm:$0xff] }
 0x1dc   : > { %3281 = vrot.lane.b32.xlu1 %v8091_v57, %s7729_s22  ;;  %v1053_v57 = vadd.s32 256, %v7944_v41  ;;  %v3036_v21 = vsel %vm2972_vm0, 65537, %v10313_v49  ;;  %vm2373_vm0 = vmpackc.low %vm9025_vm13, %vm9025_vm13  ;;  %v1369_v19 = vand.u32 15, %v1061_v18  ;;  %vm9102_vm13 = vcmp.ne.s16.totalorder %v6155_v22, 0 }
 0x1dd   : > { %v6181_v8 = vcombine.low %v8007_v32, %v3036_v21  ;;  %v2437_v9 = vsel %vm2373_vm0, 65537, %v10313_v49  ;;  %vm2980_vm8 = vmpackc.low %vm9046_vm1, %vm9046_vm1  ;;  %v1065_v21 = vadd.s32 352, %v7944_v41  ;;  %vm9119_vm0 = vcmp.ne.s16.totalorder %v6184_v26, 0 }
 0x1de   : > { %3283 = vrot.lane.b32.xlu0 %v8087_v54, %s7729_s22  ;;  %v3212_v54 = vsel %vm3180_vm11, 0, %v8183_v4  ;;  %v1313_v5 = vand.u32 15, %v1053_v57  ;;  %v1278_v4 = vand.u32 15, %v1048_v29  ;;  %v6182_v57 = vcombine.low %v8007_v32, %v3038_v28 }
 0x1df   : > { %vm3184_vm11 = vcmp.ne.s16.totalorder %v6181_v8, 0  ;;  %v1355_v29 = vand.u32 15, %v1059_v6  ;;  %v6156_v44 = vcombine.low %v2437_v9, %v8007_v32  ;;  %v1397_v28 = vand.u32 15, %v1065_v21 }
 0x1e0   : > { %3377 = vrot.lane.b32.xlu1 %v3211_v20, %s7730_s19  ;;  %vm8983_vm7 = vcmp.eq.s32.totalorder %v1313_v5, 0  ;;  %vm8991_vm3 = vcmp.eq.s32.totalorder %v1278_v4, 15  ;;  %v3216_v38 = vsel %vm3184_vm11, 0, %v10431_v3  ;;  %vm9084_vm11 = vcmp.eq.s32.totalorder %v1369_v19, 0  ;;  %v10457_v3 = vld [vmem:[#allocation30_spill] sm:$0xff]  ;;  %v10460_v19 = vld [vmem:[#allocation36_spill] sm:$0xff] }
 0x1e1   : > { %vm2369_vm5 = vmpackc.low %vm8983_vm7, %vm8983_vm7  ;;  %vm9056_vm7 = vcmp.ne.s16.totalorder %v6182_v57, 0  ;;  %vm9062_vm4 = vcmp.eq.s32.totalorder %v1355_v29, 0  ;;  %vm9113_vm15 = vcmp.ne.s16.totalorder %v6156_v44, 0  ;;  %v2610_v36 = vsel %vm9102_vm13, 0, %v8449_v47  ;;  %v7543_v47 = vld [vmem:[%s10254_s3 + $0x8] sm:$0xff]  }
 0x1e2   : > { %3379 = vrot.lane.b32.xlu0 %v3212_v54, %s7730_s19  ;;  %vm2976_vm6 = vmpackc.low %vm8991_vm3, %vm8991_vm3  ;;  %v2433_v50 = vsel %vm2369_vm5, 65537, %v10313_v49  ;;  %vm3429_vm3 = vcmask 261120   ;;  %vm3526_vm5 = vcmask 523264   ;;  %v3217_v63 = vsel %vm9056_vm7, 0, %v10444_v0 }
 0x1e3   : > { %v3040_v17 = vsel %vm2976_vm6, 65537, %v10313_v49  ;;  %v6154_v20 = vcombine.low %v2433_v50, %v8007_v32  ;;  %vm2375_vm12 = vmpackc.low %vm9062_vm4, %vm9062_vm4  ;;  %v1383_v50 = vand.u32 15, %v1063_v27  ;;  %v3219_v35 = vsel %vm9119_vm0, 0, %v10460_v19 }
 0x1e4   : > { %3285 = vrot.lane.b32.xlu1 %v10412_v24, %s7729_s22  ;;  %v6183_v54 = vcombine.low %v8007_v32, %v3040_v17  ;;  %v10436_v24 = vld [vmem:[#allocation25_spill] sm:$0xff]  ;;  %vm2377_vm14 = vmpackc.low %vm9084_vm11, %vm9084_vm11  ;;  %v2439_v6 = vsel %vm2375_vm12, 65537, %v10313_v49  ;;  %v1069_v5 = vadd.s32 384, %v7944_v41 }
 0x1e5   : > { %vm9050_vm2 = vcmp.ne.s16.totalorder %v6154_v20, 0  ;;  %v2441_v18 = vsel %vm2377_vm14, 65537, %v10313_v49  ;;  %vm9128_vm1 = vcmp.eq.s32.totalorder %v1383_v50, 0  ;;  %v1067_v20 = vadd.s32 368, %v7944_v41 }
 0x1e6   : > { %3287 = vrot.lane.b32.xlu0 %v10413_v45, %s7729_s22  ;;  %vm9070_vm6 = vcmp.ne.s16.totalorder %v6183_v54, 0  ;;  %v2609_v11 = vsel %vm9050_vm2, 0, %v8460_v31  ;;  %vm9140_vm2 = vcmp.eq.s32.totalorder %v1397_v28, 0  ;;  %v2611_v54 = vsel %vm9113_vm15, 0, %v8520_v51  ;;  %vm2379_vm4 = vmpackc.low %vm9128_vm1, %vm9128_vm1  ;;  %v7593_v45 = vld [vmem:[%s10254_s3] sm:$0xff]  }
 0x1e7   : > { %v3218_v40 = vsel %vm9070_vm6, 0, %v10447_v10  ;;  %v6158_v60 = vcombine.low %v2441_v18, %v8007_v32  ;;  %v1411_v27 = vand.u32 15, %v1067_v20  ;;  %v2443_v21 = vsel %vm2379_vm4, 65537, %v10313_v49  ;;  %v7546_v18 = vld [vmem:[%s10254_s3 + $0x20] sm:$0xff]  }
 0x1e8   : > { %3381 = vrot.lane.b32.xlu1 %v3213_v59, %s7730_s19  ;;  %v10441_v59 = vld [vmem:[#allocation24_spill] sm:$0xff] }
 0x1e9   : > { %vm9188_vm11 = vcmp.ne.s16.totalorder %v6158_v60, 0  ;;  %vm9197_vm12 = vcmp.eq.s32.totalorder %v1411_v27, 0  ;;  %v1077_v27 = vadd.s32 448, %v7944_v41 }
 0x1ea   : > { %3383 = vrot.lane.b32.xlu0 %v3214_v30, %s7730_s19  ;;  %v2613_v50 = vsel %vm9188_vm11, 0, %v8582_v48  ;;  %vm2383_vm14 = vmpackc.low %vm9197_vm12, %vm9197_vm12 }
 0x1eb   : > { %v3302_v56 = vpop.permute.xlu0 %3301  ;;  %v2447_v13 = vsel %vm2383_vm14, 65537, %v10313_v49 }
 0x1ec   : > { %3289 = vrot.lane.b32.xlu1 %v10422_v39, %s7729_s22  ;;  %v3480_v30 = vsel %vm3429_vm3, %v2609_v11, %v3302_v56  ;;  %v3044_v39 = vsel %vm2980_vm8, 65537, %v10313_v49  ;;  %vm2381_vm8 = vmpackc.low %vm9140_vm2, %vm9140_vm2  ;;  %v1425_v11 = vand.u32 15, %v1069_v5  ;;  %v6161_v5 = vcombine.low %v2447_v13, %v8007_v32 }
 0x1ed   : > { %v2445_v44 = vsel %vm2381_vm8, 65537, %v10313_v49 }
 0x1ee   : > { %3291 = vrot.lane.b32.xlu0 %v10425_v53, %s7729_s22  ;;  %vm9213_vm13 = vcmp.eq.s32.totalorder %v1425_v11, 0 }
 0x1ef   : > { %v3304_v58 = vpop.permute.xlu0 %3303  ;;  %vm2385_vm0 = vmpackc.low %vm9213_vm13, %vm9213_vm13 }
 0x1f0   : > { %3385 = vrot.lane.b32.xlu1 %v3215_v42, %s7730_s19  ;;  %v6185_v42 = vcombine.low %v8007_v32, %v3044_v39  ;;  %v3483_v56 = vsel %vm3429_vm3, %v2610_v36, %v3304_v58  ;;  %v7545_v39 = vld [vmem:[%s10254_s3 + $0x18] sm:$0xff]  }
 0x1f2   : > { %3387 = vrot.lane.b32.xlu0 %v3216_v38, %s7730_s19  ;;  %v6157_v38 = vcombine.low %v2439_v6, %v8007_v32  ;;  %vm9159_vm7 = vcmp.ne.s16.totalorder %v6185_v42, 0  ;;  %v1073_v6 = vadd.s32 416, %v7944_v41  ;;  %v1081_v42 = vadd.s32 480, %v7944_v41 }
 0x1f3   : > { %v3306_v17 = vpop.permute.xlu0 %3305  ;;  %v3220_v33 = vsel %vm9159_vm7, 0, %v8444_v7  ;;  %v1071_v7 = vadd.s32 400, %v7944_v41 }
 0x1f4   : > { %3293 = vrot.lane.b32.xlu1 %v10436_v24, %s7729_s22  ;;  %v3398_v8 = vpop.permute.xlu1 %3397  ;;  %v3486_v24 = vsel %vm3429_vm3, %v2611_v54, %v3306_v17  ;;  %vm9172_vm6 = vcmp.ne.s16.totalorder %v6157_v38, 0  ;;  %v1453_v20 = vand.u32 15, %v1073_v6  ;;  %v1075_v54 = vadd.s32 432, %v7944_v41 }
 0x1f5   : > { %v9096_v31 = vsel %vm3526_vm5, %v3480_v30, %v3398_v8  ;;  %v2612_v30 = vsel %vm9172_vm6, 0, %v10467_v62  ;;  %v1439_v1 = vand.u32 15, %v1071_v7  ;;  %vm9280_vm6 = vcmp.ne.s16.totalorder %v6161_v5, 0  ;;  %v10486_v7 = vld [vmem:[#allocation41_spill] sm:$0xff] }
 0x1f6   : > { %3295 = vrot.lane.b32.xlu0 %v10441_v59, %s7729_s22  ;;  %7037 = vmatprep.mubr.msk.bf16.mxu1 %vm3591_vm9, %v9096_v31  ;;  %v7544_v59 = vld [vmem:[%s10254_s3 + $0x10] sm:$0xff]   ;;  %vm9265_vm7 = vcmp.eq.s32.totalorder %v1453_v20, 0  ;;  %v1083_v5 = vadd.s32 496, %v7944_v41 }
 0x1f7   : > { %vm9249_vm2 = vcmp.eq.s32.totalorder %v1439_v1, 0  ;;  %vm2389_vm8 = vmpackc.low %vm9265_vm7, %vm9265_vm7 }
 0x1f8   : > { %3389 = vrot.lane.b32.xlu1 %v3217_v63, %s7730_s19  ;;  %vm2387_vm4 = vmpackc.low %vm9249_vm2, %vm9249_vm2 }
 0x1f9   : > { %v2451_v62 = vsel %vm2387_vm4, 65537, %v10313_v49 }
 0x1fa   : > { %3391 = vrot.lane.b32.xlu0 %v3218_v40, %s7730_s19  ;;  %v3400_v57 = vpop.permute.xlu1 %3399  ;;  %v6159_v40 = vcombine.low %v2443_v21, %v8007_v32  ;;  %v1467_v21 = vand.u32 15, %v1075_v54  ;;  %v6163_v6 = vcombine.low %v2451_v62, %v8007_v32 }
 0x1fb   : > { %v9148_v52 = vsel %vm3526_vm5, %v3483_v56, %v3400_v57  ;;  %v1027_v56 = vadd.s32 48, %v7944_v41 }
 0x1fc   : > { %3297 = vrot.lane.b32.xlu1 %v10452_v2, %s7729_s22  ;;  %7038 = vmatmul.mubr.msk.bf16.vlgmr.msra.gmra.mrb[0].mxu1 %vm3591_vm9, %v9148_v52  ;;  %v6160_v2 = vcombine.low %v2445_v44, %v8007_v32  ;;  %vm9228_vm15 = vcmp.ne.s16.totalorder %v6159_v40, 0  ;;  %vm9301_vm12 = vcmp.eq.s32.totalorder %v1467_v21, 0  ;;  %v1523_v21 = vand.u32 15, %v1083_v5 }
 0x1fd   : > { %v3402_v4 = vpop.permute.xlu0 %3401  ;;  %7070 = vmatpush3.bf16.msra.mxu1 %v7593_v45  ;;  %vm2391_vm14 = vmpackc.low %vm9301_vm12, %vm9301_vm12 }
 0x1fe   : > { %3299 = vrot.lane.b32.xlu0 %v10457_v3, %s7729_s22  ;;  %v9167_v9 = vsel %vm3526_vm5, %v3486_v24, %v3402_v4  ;;  %v3308_v58 = vpop.permute.xlu1 %3307  ;;  %7071 = vmatprep.subr.bf16.mxu1 %v7543_v47  ;;  %vm9241_vm1 = vcmp.ne.s16.totalorder %v6160_v2, 0  ;;  %v10476_v3 = vld [vmem:[#allocation40_spill] sm:$0xff]  ;;  %v7547_v24 = vld [vmem:[%s10254_s3 + $0x28] sm:$0xff]   ;;  %vm9386_vm12 = vcmp.eq.s32.totalorder %v1523_v21, 0  ;;  %v10522_v21 = vld [vmem:[#allocation11_spill] sm:$0xff]  ;;  %s7731_s22 = smov [#allocation6]  }
 0x1ff   : > { %7041 = vmatprep.mubr.msk.bf16.mxu1 %vm3591_vm9, %v9167_v9  ;;  %v3489_v26 = vsel %vm3429_vm3, %v2612_v30, %v3308_v58  ;;  %v2614_v38 = vsel %vm9228_vm15, 0, %v10476_v3  ;;  %v10479_v4 = vld [vmem:[#allocation42_spill] sm:$0xff]  ;;  %v1481_v30 = vand.u32 15, %v1077_v27  ;;  %vm9332_vm15 = vcmp.ne.s16.totalorder %v6163_v6, 0  ;;  %v9344_v3 = vld [vmem:[%s10254_s3 + $0x80] sm:$0xff]   ;;  %s7660_s23 = sshll.u32 %s7731_s22, 4  ;;  %s7661_s23 = int_to_ptr.vmem [resolvable:$false] %s7660_s23 }
 0x200   : > { %3393 = vrot.lane.b32.xlu1 %v3219_v35, %s7730_s19  ;;  %v2615_v60 = vsel %vm9241_vm1, 0, %v10479_v4  ;;  %v2618_v54 = vsel %vm9332_vm15, 0, %v8685_v23  ;;  %s7662_s29 = scalar_lea.vmem %s7661_s23, 8192 }
 0x201   : > { %v3310_v63 = vpop.permute.xlu0 %3309  ;;  %7072 = vmatpush3.bf16.msra.mxu1 %v7543_v47  ;;  %v2449_v47 = vsel %vm2385_vm0, 65537, %v10313_v49  ;;  %vm9317_vm13 = vcmp.eq.s32.totalorder %v1481_v30, 0  ;;  %v10497_v30 = vld [vmem:[#allocation43_spill] sm:$0xff] }
 0x202   : > { %7073 = vmatprep.subr.bf16.mxu1 %v7544_v59  ;;  %v3492_v53 = vsel %vm3429_vm3, %v2613_v50, %v3310_v63  ;;  %v7548_v63 = vld [vmem:[%s10254_s3 + $0x30] sm:$0xff]   ;;  %vm2393_vm0 = vmpackc.low %vm9317_vm13, %vm9317_vm13 }
 0x203   : > { %v3404_v10 = vpop.permute.xlu1 %3403  ;;  %vm2399_vm13 = vmpackc.low %vm9386_vm12, %vm9386_vm12 }
 0x204   : > { %3395 = vrot.lane.b32.xlu1 %v3220_v33, %s7730_s19  ;;  %v9211_v14 = vsel %vm3526_vm5, %v3489_v26, %v3404_v10  ;;  %v2616_v26 = vsel %vm9280_vm6, 0, %v10486_v7  ;;  %v2453_v10 = vsel %vm2389_vm8, 65537, %v10313_v49 }
 0x205   : > { %7042 = vmatmul.mubr.msk.bf16.gmra.mrb[4].mxu1 %vm3591_vm9, %v9211_v14  ;;  %v6164_v13 = vcombine.low %v2453_v10, %v8007_v32 }
 0x206   : > { %v3406_v17 = vpop.permute.xlu0 %3405  ;;  %7074 = vmatpush3.bf16.msra.mxu1 %v7544_v59  ;;  %v6162_v59 = vcombine.low %v2449_v47, %v8007_v32  ;;  %v1509_v47 = vand.u32 15, %v1081_v42 }
 0x207   : > { %v9226_v48 = vsel %vm3526_vm5, %v3492_v53, %v3406_v17  ;;  %v3312_v36 = vpop.permute.xlu1 %3311  ;;  %7075 = vmatprep.subr.bf16.mxu1 %v7545_v39  ;;  %v7549_v53 = vld [vmem:[%s10254_s3 + $0x38] sm:$0xff]   ;;  %vm2587_vm1 = vcmp.ne.s16.totalorder %v6164_v13, 0  ;;  %v2463_v13 = vsel %vm2399_vm13, 65537, %v10313_v49 }
 0x208   : > { %7045 = vmatprep.mubr.msk.bf16.mxu1 %vm3591_vm9, %v9226_v48  ;;  %v3495_v19 = vsel %vm3429_vm3, %v2614_v38, %v3312_v36  ;;  %vm9293_vm11 = vcmp.ne.s16.totalorder %v6162_v59, 0  ;;  %v2455_v38 = vsel %vm2391_vm14, 65537, %v10313_v49  ;;  %v2619_v45 = vsel %vm2587_vm1, 0, %v8753_v15 }
 0x209   : > { %v2617_v17 = vsel %vm9293_vm11, 0, %v8692_v55  ;;  %vm9363_vm7 = vcmp.eq.s32.totalorder %v1509_v47, 0 }
 0x20a   : > { %v3314_v57 = vpop.permute.xlu0 %3313  ;;  %7076 = vmatpush3.bf16.msra.mxu1 %v7545_v39  ;;  %v1079_v39 = vadd.s32 464, %v7944_v41  ;;  %vm2397_vm8 = vmpackc.low %vm9363_vm7, %vm9363_vm7 }
 0x20b   : > { %7077 = vmatprep.subr.bf16.mxu1 %v7546_v18  ;;  %v3498_v22 = vsel %vm3429_vm3, %v2615_v60, %v3314_v57  ;;  %v6165_v60 = vcombine.low %v2455_v38, %v8007_v32 }
 0x20c   : > { %v3408_v35 = vpop.permute.xlu1 %3407  ;;  %v1495_v20 = vand.u32 15, %v1079_v39 }
 0x20d   : > { %v9263_v51 = vsel %vm3526_vm5, %v3495_v19, %v3408_v35  ;;  %v2457_v19 = vsel %vm2393_vm0, 65537, %v10313_v49  ;;  %vm2588_vm6 = vcmp.ne.s16.totalorder %v6165_v60, 0 }
 0x20e   : > { %v3410_v58 = vpop.permute.xlu0 %3409  ;;  %7046 = vmatmul.mubr.msk.bf16.gmra.mrb[8].mxu1 %vm3591_vm9, %v9263_v51  ;;  %vm9351_vm2 = vcmp.eq.s32.totalorder %v1495_v20, 0  ;;  %v6166_v59 = vcombine.low %v2457_v19, %v8007_v32  ;;  %v2620_v44 = vsel %vm2588_vm6, 0, %v10497_v30  ;;  %v6169_v19 = vcombine.low %v2463_v13, %v8007_v32 }
 0x20f   : > { %v9278_v33 = vsel %vm3526_vm5, %v3498_v22, %v3410_v58  ;;  %7078 = vmatpush3.bf16.msra.mxu1 %v7546_v18  ;;  %vm2395_vm4 = vmpackc.low %vm9351_vm2, %vm9351_vm2 }
 0x210   : > { %v3316_v0 = vpop.permute.xlu1 %3315  ;;  %7049 = vmatprep.mubr.msk.bf16.mxu1 %vm3591_vm9, %v9278_v33  ;;  %7079 = vmatprep.subr.bf16.mxu1 %v7547_v24  ;;  %vm2589_vm11 = vcmp.ne.s16.totalorder %v6166_v59, 0  ;;  %vm2592_vm6 = vcmp.ne.s16.totalorder %v6169_v19, 0 }
 0x211   : > { %v3501_v50 = vsel %vm3429_vm3, %v2616_v26, %v3316_v0  ;;  %v2459_v0 = vsel %vm2395_vm4, 65537, %v10313_v49  ;;  %v1089_v26 = vand.u32 15, %v7944_v41 }
 0x212   : > { %v3318_v8 = vpop.permute.xlu0 %3317  ;;  %v6167_v39 = vcombine.low %v2459_v0, %v8007_v32 }
 0x213   : > { %7080 = vmatpush3.bf16.msra.mxu1 %v7547_v24  ;;  %v3504_v36 = vsel %vm3429_vm3, %v2617_v17, %v3318_v8  ;;  %v2461_v8 = vsel %vm2397_vm8, 65537, %v10313_v49  ;;  %vm9407_vm14 = vcmp.eq.s32.totalorder %v1089_v26, 0 }
 0x214   : > { %7081 = vmatprep.subr.bf16.mxu1 %v7548_v63  ;;  %v6168_v1 = vcombine.low %v2461_v8, %v8007_v32  ;;  %vm2590_vm15 = vcmp.ne.s16.totalorder %v6167_v39, 0  ;;  %vm2337_vm2 = vmpackc.low %vm9407_vm14, %vm9407_vm14 }
 0x215   : > { %v3412_v28 = vpop.permute.xlu1 %3411  ;;  %v2622_v38 = vsel %vm2590_vm15, 0, %v8792_v34 }
 0x216   : > { %v9315_v2 = vsel %vm3526_vm5, %v3501_v50, %v3412_v28  ;;  %v2621_v50 = vsel %vm2589_vm11, 0, %v8799_v37  ;;  %vm2591_vm1 = vcmp.ne.s16.totalorder %v6168_v1, 0 }
 0x217   : > { %v3414_v18 = vpop.permute.xlu0 %3413  ;;  %7050 = vmatmul.mubr.msk.bf16.gmra.mrb[12].mxu1 %vm3591_vm9, %v9315_v2  ;;  %v2623_v35 = vsel %vm2591_vm1, 0, %v8868_v43  ;;  %v1029_v43 = vadd.s32 64, %v7944_v41 }
 0x218   : > { %v9330_v55 = vsel %vm3526_vm5, %v3504_v36, %v3414_v18  ;;  %7082 = vmatpush3.bf16.msra.mxu1 %v7548_v63  ;;  %v1023_v63 = vadd.s32 16, %v7944_v41  ;;  %v1025_v36 = vadd.s32 32, %v7944_v41 }
 0x219   : > { %v3320_v57 = vpop.permute.xlu1 %3319  ;;  %7053 = vmatprep.mubr.msk.bf16.mxu1 %vm3591_vm9, %v9330_v55  ;;  %7083 = vmatprep.subr.bf16.mxu1 %v7549_v53  ;;  %v1145_v30 = vand.u32 15, %v1029_v43 }
 0x21a   : > { %v3507_v24 = vsel %vm3429_vm3, %v2618_v54, %v3320_v57  ;;  %v1103_v6 = vand.u32 15, %v1023_v63  ;;  %v1117_v47 = vand.u32 15, %v1025_v36  ;;  %v1035_v36 = vadd.s32 112, %v7944_v41 }
 0x21b   : > { %v3322_v29 = vpop.permute.xlu0 %3321  ;;  %vm9480_vm15 = vcmp.eq.s32.totalorder %v1145_v30, 0 }
 0x21c   : > { %7084 = vmatpush3.bf16.msra.mxu1 %v7549_v53  ;;  %v3510_v22 = vsel %vm3429_vm3, %v2619_v45, %v3322_v29  ;;  %vm9415_vm0 = vcmp.eq.s32.totalorder %v1103_v6, 0  ;;  %vm9441_vm4 = vcmp.eq.s32.totalorder %v1117_v47, 0  ;;  %v1187_v19 = vand.u32 15, %v1035_v36 }
 0x21d   : > { %v3416_v4 = vpop.permute.xlu1 %3415  ;;  %7149 = vmatprep.subr.bf16.mxu1 %v9344_v3  ;;  %vm2339_vm7 = vmpackc.low %vm9415_vm0, %vm9415_vm0 }
 0x21e   : > { %v9361_v23 = vsel %vm3526_vm5, %v3507_v24, %v3416_v4  ;;  %v2401_v24 = vsel %vm2337_vm2, 65537, %v10313_v49  ;;  %v1131_v4 = vand.u32 15, %v1027_v56  ;;  %v2403_v27 = vsel %vm2339_vm7, 65537, %v10313_v49  ;;  %vm2341_vm11 = vmpackc.low %vm9441_vm4, %vm9441_vm4 }
 0x21f   : > { %7054 = vmatmul.mubr.msk.bf16.gmra.mrb[16].mxu1 %vm3591_vm9, %v9361_v23  ;;  %v6138_v59 = vcombine.low %v2401_v24, %v8007_v32  ;;  %v6139_v63 = vcombine.low %v2403_v27, %v8007_v32  ;;  %v2405_v26 = vsel %vm2341_vm11, 65537, %v10313_v49  ;;  %vm2345_vm0 = vmpackc.low %vm9480_vm15, %vm9480_vm15  ;;  %v7555_v27 = vld [vmem:[%s10254_s3 + $0xa8] sm:$0xff]  }
 0x220   : > { %v3418_v58 = vpop.permute.xlu0 %3417  ;;  %vm9449_vm8 = vcmp.eq.s32.totalorder %v1131_v4, 0  ;;  %v6140_v37 = vcombine.low %v2405_v26, %v8007_v32  ;;  %v10519_v4 = vld [vmem:[#allocation10_spill] sm:$0xff] }
 0x221   : > { %v9375_v15 = vsel %vm3526_vm5, %v3510_v22, %v3418_v58  ;;  %v3324_v11 = vpop.permute.xlu1 %3323  ;;  %vm2561_vm12 = vcmp.ne.s16.totalorder %v6138_v59, 0  ;;  %vm2343_vm13 = vmpackc.low %vm9449_vm8, %vm9449_vm8  ;;  %vm9467_vm14 = vcmp.ne.s16.totalorder %v6139_v63, 0  ;;  %v1037_v22 = vadd.s32 128, %v7944_v41 }
 0x222   : > { %7057 = vmatprep.mubr.msk.bf16.mxu1 %vm3591_vm9, %v9375_v15  ;;  %v3513_v10 = vsel %vm3429_vm3, %v2620_v44, %v3324_v11  ;;  %v1031_v11 = vadd.s32 80, %v7944_v41  ;;  %v2593_v39 = vsel %vm2561_vm12, 0, %v2208_v61  ;;  %v2594_v25 = vsel %vm9467_vm14, 0, %v10512_v12 }
 0x223   : > { %vm9505_vm1 = vcmp.ne.s16.totalorder %v6140_v37, 0  ;;  %v1051_v63 = vadd.s32 240, %v7944_v41 }
 0x224   : > { %v3326_v62 = vpop.permute.xlu0 %3325 }
 0x225   : > { %v3516_v53 = vsel %vm3429_vm3, %v2621_v50, %v3326_v62  ;;  %v2624_v62 = vsel %vm2592_vm6, 0, %v8858_v16  ;;  %v2407_v50 = vsel %vm2343_vm13, 65537, %v10313_v49  ;;  %vm9546_vm6 = vcmp.eq.s32.totalorder %v1187_v19, 0 }
 0x226   : > { %v3420_v40 = vpop.permute.xlu1 %3419  ;;  %v6141_v20 = vcombine.low %v2407_v50, %v8007_v32  ;;  %vm2351_vm12 = vmpackc.low %vm9546_vm6, %vm9546_vm6 }
 0x227   : > { %v9395_v28 = vsel %vm3526_vm5, %v3513_v10, %v3420_v40  ;;  %v1159_v10 = vand.u32 15, %v1031_v11  ;;  %v2415_v12 = vsel %vm2351_vm12, 65537, %v10313_v49  ;;  %v10542_v40 = vld [vmem:[#allocation17_spill] sm:$0xff] }
 0x228   : > { %v3422_v17 = vpop.permute.xlu0 %3421  ;;  %7058 = vmatmul.mubr.msk.bf16.gmra.mrb[20].mxu1 %vm3591_vm9, %v9395_v28  ;;  %vm9518_vm7 = vcmp.ne.s16.totalorder %v6141_v20, 0  ;;  %v10532_v20 = vld [vmem:[#allocation13_spill] sm:$0xff] }
 0x229   : > { %v9405_v42 = vsel %vm3526_vm5, %v3516_v53, %v3422_v17  ;;  %v1033_v53 = vadd.s32 96, %v7944_v41  ;;  %vm9491_vm10 = vcmp.eq.s32.totalorder %v1159_v10, 0  ;;  %v2596_v11 = vsel %vm9518_vm7, 0, %v10522_v21 }
 0x22a   : > { %v3328_v18 = vpop.permute.xlu1 %3327  ;;  %7061 = vmatprep.mubr.msk.bf16.mxu1 %vm3591_vm9, %v9405_v42  ;;  %vm2347_vm2 = vmpackc.low %vm9491_vm10, %vm9491_vm10  ;;  %v1201_v10 = vand.u32 15, %v1037_v22 }
 0x22b   : > { %v3519_v29 = vsel %vm3429_vm3, %v2622_v38, %v3328_v18 }
 0x22c   : > { %v3330_v57 = vpop.permute.xlu0 %3329  ;;  %vm9586_vm14 = vcmp.eq.s32.totalorder %v1201_v10, 0  ;;  %v7556_v10 = vld [vmem:[%s10254_s3 + $0xb0] sm:$0xff]  }
 0x22d   : > { %v3522_v34 = vsel %vm3429_vm3, %v2623_v35, %v3330_v57  ;;  %v1173_v57 = vand.u32 15, %v1033_v53  ;;  %v6145_v35 = vcombine.low %v2415_v12, %v8007_v32  ;;  %vm2353_vm10 = vmpackc.low %vm9586_vm14, %vm9586_vm14 }
 0x22e   : > { %v3424_v54 = vpop.permute.xlu1 %3423  ;;  %v2417_v22 = vsel %vm2353_vm10, 65537, %v10313_v49 }
 0x22f   : > { %v9431_v5 = vsel %vm3526_vm5, %v3519_v29, %v3424_v54  ;;  %v7551_v29 = vld [vmem:[%s10254_s3 + $0x88] sm:$0xff]   ;;  %v2409_v54 = vsel %vm2345_vm0, 65537, %v10313_v49  ;;  %vm9530_vm4 = vcmp.eq.s32.totalorder %v1173_v57, 0 }
 0x230   : > { %v3426_v60 = vpop.permute.xlu0 %3425  ;;  %7062 = vmatmul.mubr.msk.bf16.gmra.mrb[24].mxu1 %vm3591_vm9, %v9431_v5  ;;  %v6142_v59 = vcombine.low %v2409_v54, %v8007_v32  ;;  %vm2349_vm8 = vmpackc.low %vm9530_vm4, %vm9530_vm4 }
 0x231   : > { %v9438_v45 = vsel %vm3526_vm5, %v3522_v34, %v3426_v60  ;;  %v2595_v34 = vsel %vm9505_vm1, 0, %v10519_v4  ;;  %v2411_v60 = vsel %vm2347_vm2, 65537, %v10313_v49  ;;  %v2413_v50 = vsel %vm2349_vm8, 65537, %v10313_v49 }
 0x232   : > { %v3332_v58 = vpop.permute.xlu1 %3331  ;;  %7065 = vmatprep.mubr.msk.bf16.mxu1 %vm3591_vm9, %v9438_v45  ;;  %vm9561_vm11 = vcmp.ne.s16.totalorder %v6142_v59, 0  ;;  %vm9630_vm2 = vcmp.ne.s16.totalorder %v6145_v35, 0 }
 0x233   : > { %v3525_v44 = vsel %vm3429_vm3, %v2624_v62, %v3332_v58  ;;  %v1039_v62 = vadd.s32 144, %v7944_v41 }
 0x234   : > { %v3270_v0 = vpop.permute.xlu0 %3269 }
 0x235   : > { %v3432_v17 = vsel %vm3429_vm3, %v2593_v39, %v3270_v0  ;;  %v7553_v39 = vld [vmem:[%s10254_s3 + $0x98] sm:$0xff]   ;;  %v1215_v6 = vand.u32 15, %v1039_v62  ;;  %v1045_v62 = vadd.s32 192, %v7944_v41 }
 0x236   : > { %v3428_v8 = vpop.permute.xlu1 %3427 }
 0x237   : > { %v9464_v7 = vsel %vm3526_vm5, %v3525_v44, %v3428_v8  ;;  %v6143_v8 = vcombine.low %v2411_v60, %v8007_v32  ;;  %vm9602_vm15 = vcmp.eq.s32.totalorder %v1215_v6, 0  ;;  %v1047_v6 = vadd.s32 208, %v7944_v41 }
 0x238   : > { %v3272_v16 = vpop.permute.xlu0 %3271  ;;  %7066 = vmatmul.mubr.msk.bf16.gmra.mrb[28].mxu1 %vm3591_vm9, %v9464_v7  ;;  %vm2355_vm1 = vmpackc.low %vm9602_vm15, %vm9602_vm15  ;;  %v1257_v12 = vand.u32 15, %v1045_v62 }
 0x239   : > { %7085 = vmatprep.mubr.bf16.mxu1 %v10313_v49  ;;  %v3435_v18 = vsel %vm3429_vm3, %v2594_v25, %v3272_v16  ;;  %vm9574_vm13 = vcmp.ne.s16.totalorder %v6143_v8, 0  ;;  %v6146_v8 = vcombine.low %v2417_v22, %v8007_v32 }
 0x23a   : > { %v3366_v1 = vpop.permute.xlu1 %3365  ;;  %v2598_v57 = vsel %vm9574_vm13, 0, %v10532_v20  ;;  %vm9698_vm13 = vcmp.eq.s32.totalorder %v1257_v12, 0 }
 0x23b   : > { %v3528_v46 = vsel %vm3526_vm5, %v3432_v17, %v3366_v1  ;;  %v10529_v1 = vld [vmem:[#allocation12_spill] sm:$0xff]  ;;  %vm9673_vm8 = vcmp.ne.s16.totalorder %v6146_v8, 0  ;;  %vm2361_vm15 = vmpackc.low %vm9698_vm13, %vm9698_vm13  ;;  %v10555_v8 = vld [vmem:[#allocation27_spill] sm:$0xff] }
 0x23c   : > { %v3368_v13 = vpop.permute.xlu0 %3367  ;;  %7005 = vmatprep.mubr.msk.bf16.mxu0 %vm3591_vm9, %v3528_v46  ;;  %v2597_v37 = vsel %vm9561_vm11, 0, %v10529_v1 }
 0x23d   : > { %v9503_v56 = vsel %vm3526_vm5, %v3435_v18, %v3368_v13  ;;  %v6144_v18 = vcombine.low %v2413_v50, %v8007_v32  ;;  %v7554_v13 = vld [vmem:[%s10254_s3 + $0xa0] sm:$0xff]  }
 0x23e   : > { %v3274_v47 = vpop.permute.xlu1 %3273  ;;  %7006 = vmatmul.mubr.msk.bf16.vlgmr.msra.gmra.mrb[64].mxu0 %vm3591_vm9, %v9503_v56 }
 0x23f   : > { %v3438_v43 = vsel %vm3429_vm3, %v2595_v34, %v3274_v47  ;;  %vm9617_vm0 = vcmp.ne.s16.totalorder %v6144_v18, 0  ;;  %v1271_v18 = vand.u32 15, %v1047_v6 }
 0x240   : > { %v3276_v24 = vpop.permute.xlu0 %3275  ;;  %7086 = vmatmul.mubr.msk.bf16.vlgmr.msra.gmra.mrb[32].mxu1 %vm3591_vm9, %v3528_v46  ;;  %v1041_v46 = vadd.s32 160, %v7944_v41 }
 0x241   : > { %7150 = vmatpush3.bf16.msra.mxu1 %v9344_v3  ;;  %7089 = vmatprep.mubr.msk.bf16.mxu1 %vm3591_vm9, %v9503_v56  ;;  %v7552_v3 = vld [vmem:[%s10254_s3 + $0x90] sm:$0xff]   ;;  %v3441_v30 = vsel %vm3429_vm3, %v2596_v11, %v3276_v24  ;;  %v2419_v11 = vsel %vm2355_vm1, 65537, %v10313_v49  ;;  %vm9711_vm14 = vcmp.eq.s32.totalorder %v1271_v18, 0  ;;  %v9940_v18 = vld [vmem:[%s10255_s4] ss:$0 sm:$0xff] }
 0x242   : > { %v3370_v58 = vpop.permute.xlu1 %3369  ;;  %7151 = vmatprep.subr.bf16.mxu1 %v7551_v29  ;;  %v1229_v4 = vand.u32 15, %v1041_v46  ;;  %v6147_v1 = vcombine.low %v2419_v11, %v8007_v32 }
 0x243   : > { %v9544_v0 = vsel %vm3526_vm5, %v3438_v43, %v3370_v58 }
 0x244   : > { %v3372_v44 = vpop.permute.xlu0 %3371  ;;  %7009 = vmatprep.mubr.msk.bf16.mxu0 %vm3591_vm9, %v9544_v0  ;;  %vm9642_vm7 = vcmp.eq.s32.totalorder %v1229_v4, 0  ;;  %vm9686_vm12 = vcmp.ne.s16.totalorder %v6147_v1, 0 }
 0x245   : > { %v9559_v26 = vsel %vm3526_vm5, %v3441_v30, %v3372_v44  ;;  %7152 = vmatpush3.bf16.msra.mxu1 %v7551_v29  ;;  %v1043_v29 = vadd.s32 176, %v7944_v41  ;;  %vm2357_vm6 = vmpackc.low %vm9642_vm7, %vm9642_vm7 }
 0x246   : > { %v3278_v16 = vpop.permute.xlu1 %3277  ;;  %7010 = vmatmul.mubr.msk.bf16.gmra.mrb[68].mxu0 %vm3591_vm9, %v9559_v26  ;;  %7153 = vmatprep.subr.bf16.mxu1 %v7552_v3 }
 0x247   : > { %v3444_v61 = vsel %vm3429_vm3, %v2597_v37, %v3278_v16  ;;  %v1243_v43 = vand.u32 15, %v1043_v29  ;;  %v2600_v16 = vsel %vm9630_vm2, 0, %v10542_v40 }
 0x248   : > { %v3280_v17 = vpop.permute.xlu0 %3279  ;;  %7090 = vmatmul.mubr.msk.bf16.gmra.mrb[36].mxu1 %vm3591_vm9, %v9544_v0 }
 0x249   : > { %7093 = vmatprep.mubr.msk.bf16.mxu1 %vm3591_vm9, %v9559_v26  ;;  %7154 = vmatpush3.bf16.msra.mxu1 %v7552_v3  ;;  %v3447_v54 = vsel %vm3429_vm3, %v2598_v57, %v3280_v17  ;;  %v10539_v3 = vld [vmem:[#allocation16_spill] sm:$0xff]  ;;  %vm9658_vm4 = vcmp.eq.s32.totalorder %v1243_v43, 0  ;;  %v10549_v57 = vld [vmem:[#allocation21_spill] sm:$0xff] }
 0x24a   : > { %v3374_v36 = vpop.permute.xlu1 %3373  ;;  %7155 = vmatprep.subr.bf16.mxu1 %v7553_v39  ;;  %v2599_v21 = vsel %vm9617_vm0, 0, %v10539_v3  ;;  %vm2359_vm11 = vmpackc.low %vm9658_vm4, %vm9658_vm4  ;;  %v2601_v47 = vsel %vm9673_vm8, 0, %v10549_v57 }
 0x24b   : > { %v9600_v38 = vsel %vm3526_vm5, %v3444_v61, %v3374_v36  ;;  %v7557_v61 = vld [vmem:[%s10254_s3 + $0xb8] sm:$0xff]   ;;  %v2421_v36 = vsel %vm2357_vm6, 65537, %v10313_v49  ;;  %v2423_v29 = vsel %vm2359_vm11, 65537, %v10313_v49  ;;  %vm2363_vm0 = vmpackc.low %vm9711_vm14, %vm9711_vm14 }
 0x24c   : > { %v3376_v19 = vpop.permute.xlu0 %3375  ;;  %7013 = vmatprep.mubr.msk.bf16.mxu0 %vm3591_vm9, %v9600_v38  ;;  %v6148_v34 = vcombine.low %v2421_v36, %v8007_v32  ;;  %v6149_v3 = vcombine.low %v2423_v29, %v8007_v32 }
 0x24d   : > { %v9615_v24 = vsel %vm3526_vm5, %v3447_v54, %v3376_v19  ;;  %7156 = vmatpush3.bf16.msra.mxu1 %v7553_v39  ;;  %v1049_v19 = vadd.s32 224, %v7944_v41  ;;  %v2427_v41 = vsel %vm2363_vm0, 65537, %v10313_v49 }
 0x24e   : > { %v3282_v60 = vpop.permute.xlu1 %3281  ;;  %7014 = vmatmul.mubr.msk.bf16.gmra.mrb[72].mxu0 %vm3591_vm9, %v9615_v24  ;;  %7157 = vmatprep.subr.bf16.mxu1 %v7554_v13  ;;  %vm2571_vm10 = vcmp.ne.s16.totalorder %v6148_v34, 0  ;;  %vm2572_vm1 = vcmp.ne.s16.totalorder %v6149_v3, 0 }
 0x24f   : > { %v3450_v30 = vsel %vm3429_vm3, %v2599_v21, %v3282_v60  ;;  %v10552_v60 = vld [vmem:[#allocation22_spill] sm:$0xff]  ;;  %v1285_v11 = vand.u32 15, %v1049_v19 }
 0x250   : > { %v3284_v59 = vpop.permute.xlu0 %3283  ;;  %7094 = vmatmul.mubr.msk.bf16.gmra.mrb[40].mxu1 %vm3591_vm9, %v9600_v38 }
 0x251   : > { %7097 = vmatprep.mubr.msk.bf16.mxu1 %vm3591_vm9, %v9615_v24  ;;  %7158 = vmatpush3.bf16.msra.mxu1 %v7554_v13  ;;  %v3453_v53 = vsel %vm3429_vm3, %v2600_v16, %v3284_v59  ;;  %vm9738_vm2 = vcmp.eq.s32.totalorder %v1285_v11, 0  ;;  %v1299_v16 = vand.u32 15, %v1051_v63  ;;  %v10563_v63 = vld [vmem:[#allocation37_spill] sm:$0xff] }
 0x252   : > { %v3378_v44 = vpop.permute.xlu1 %3377  ;;  %7159 = vmatprep.subr.bf16.mxu1 %v7555_v27  ;;  %vm2365_vm7 = vmpackc.low %vm9738_vm2, %vm9738_vm2 }
 0x253   : > { %v9656_v39 = vsel %vm3526_vm5, %v3450_v30, %v3378_v44  ;;  %v2425_v30 = vsel %vm2361_vm15, 65537, %v10313_v49  ;;  %vm9758_vm4 = vcmp.eq.s32.totalorder %v1299_v16, 0 }
 0x254   : > { %v3380_v17 = vpop.permute.xlu0 %3379  ;;  %7017 = vmatprep.mubr.msk.bf16.mxu0 %vm3591_vm9, %v9656_v39  ;;  %vm2367_vm11 = vmpackc.low %vm9758_vm4, %vm9758_vm4 }
 0x255   : > { %v9671_v37 = vsel %vm3526_vm5, %v3453_v53, %v3380_v17  ;;  %7160 = vmatpush3.bf16.msra.mxu1 %v7555_v27  ;;  %v2602_v27 = vsel %vm9686_vm12, 0, %v10552_v60  ;;  %v6150_v53 = vcombine.low %v2425_v30, %v8007_v32  ;;  %v10558_v17 = vld [vmem:[#allocation28_spill] sm:$0xff] }
 0x256   : > { %v3286_v46 = vpop.permute.xlu1 %3285  ;;  %7018 = vmatmul.mubr.msk.bf16.gmra.mrb[76].mxu0 %vm3591_vm9, %v9671_v37  ;;  %7161 = vmatprep.subr.bf16.mxu1 %v7556_v10  ;;  %v2604_v1 = vsel %vm2572_vm1, 0, %v10558_v17 }
 0x257   : > { %v3456_v35 = vsel %vm3429_vm3, %v2601_v47, %v3286_v46  ;;  %vm2573_vm6 = vcmp.ne.s16.totalorder %v6150_v53, 0  ;;  %v10561_v47 = vld [vmem:[#allocation33_spill] sm:$0xff] }
 0x258   : > { %v3288_v20 = vpop.permute.xlu0 %3287  ;;  %7098 = vmatmul.mubr.msk.bf16.gmra.mrb[44].mxu1 %vm3591_vm9, %v9656_v39  ;;  %v2605_v29 = vsel %vm2573_vm6, 0, %v10561_v47 }
 0x259   : > { %7101 = vmatprep.mubr.msk.bf16.mxu1 %vm3591_vm9, %v9671_v37  ;;  %7162 = vmatpush3.bf16.msra.mxu1 %v7556_v10  ;;  %v3459_v58 = vsel %vm3429_vm3, %v2602_v27, %v3288_v20  ;;  %v2603_v10 = vsel %vm2571_vm10, 0, %v10555_v8  ;;  %v2429_v20 = vsel %vm2365_vm7, 65537, %v10313_v49  ;;  %v2431_v27 = vsel %vm2367_vm11, 65537, %v10313_v49 }
 0x25a   : > { %v3382_v4 = vpop.permute.xlu1 %3381  ;;  %7163 = vmatprep.subr.bf16.mxu1 %v7557_v61  ;;  %v6153_v11 = vcombine.low %v2431_v27, %v8007_v32 }
 0x25b   : > { %v9709_v22 = vsel %vm3526_vm5, %v3456_v35, %v3382_v4  ;;  %v6152_v35 = vcombine.low %v2429_v20, %v8007_v32  ;;  %v10562_v4 = vld [vmem:[#allocation35_spill] sm:$0xff] }
 0x25c   : > { %v3384_v59 = vpop.permute.xlu0 %3383  ;;  %7021 = vmatprep.mubr.msk.bf16.mxu0 %vm3591_vm9, %v9709_v22  ;;  %vm2576_vm13 = vcmp.ne.s16.totalorder %v6153_v11, 0 }
 0x25d   : > { %v9723_v21 = vsel %vm3526_vm5, %v3459_v58, %v3384_v59  ;;  %7164 = vmatpush3.bf16.msra.mxu1 %v7557_v61  ;;  %v6151_v61 = vcombine.low %v2427_v41, %v8007_v32  ;;  %vm2575_vm12 = vcmp.ne.s16.totalorder %v6152_v35, 0  ;;  %v10564_v41 = vld [vmem:[#allocation38_spill] sm:$0xff] }
 0x25e   : > { %v3290_v62 = vpop.permute.xlu1 %3289  ;;  %7022 = vmatmul.mubr.msk.bf16.gmra.mrb[80].mxu0 %vm3591_vm9, %v9723_v21  ;;  %v2608_v40 = vsel %vm2576_vm13, 0, %v10564_v41 }
 0x25f   : > { %v3462_v50 = vsel %vm3429_vm3, %v2603_v10, %v3290_v62  ;;  %vm2574_vm8 = vcmp.ne.s16.totalorder %v6151_v61, 0  ;;  %v2607_v62 = vsel %vm2575_vm12, 0, %v10563_v63 }
 0x260   : > { %v3292_v44 = vpop.permute.xlu0 %3291  ;;  %7102 = vmatmul.mubr.msk.bf16.gmra.mrb[48].mxu1 %vm3591_vm9, %v9709_v22  ;;  %v2606_v34 = vsel %vm2574_vm8, 0, %v10562_v4 }
 0x261   : > { %7105 = vmatprep.mubr.msk.bf16.mxu1 %vm3591_vm9, %v9723_v21  ;;  %v3465_v25 = vsel %vm3429_vm3, %v2604_v1, %v3292_v44 }
 0x262   : > { %v3386_v6 = vpop.permute.xlu1 %3385 }
 0x263   : > { %v9746_v12 = vsel %vm3526_vm5, %v3462_v50, %v3386_v6 }
 0x264   : > { %v3388_v46 = vpop.permute.xlu0 %3387  ;;  %7025 = vmatprep.mubr.msk.bf16.mxu0 %vm3591_vm9, %v9746_v12 }
 0x265   : > { %v9756_v36 = vsel %vm3526_vm5, %v3465_v25, %v3388_v46 }
 0x266   : > { %v3294_v13 = vpop.permute.xlu1 %3293  ;;  %7026 = vmatmul.mubr.msk.bf16.gmra.mrb[84].mxu0 %vm3591_vm9, %v9756_v36 }
 0x267   : > { %v3468_v54 = vsel %vm3429_vm3, %v2605_v29, %v3294_v13 }
 0x268   : > { %v3296_v57 = vpop.permute.xlu0 %3295  ;;  %7106 = vmatmul.mubr.msk.bf16.gmra.mrb[52].mxu1 %vm3591_vm9, %v9746_v12 }
 0x269   : > { %7109 = vmatprep.mubr.msk.bf16.mxu1 %vm3591_vm9, %v9756_v36  ;;  %v3471_v43 = vsel %vm3429_vm3, %v2606_v34, %v3296_v57 }
 0x26a   : > { %v3390_v19 = vpop.permute.xlu1 %3389 }
 0x26b   : > { %v3552_v60 = vsel %vm3526_vm5, %v3468_v54, %v3390_v19 }
 0x26c   : > { %v3392_v58 = vpop.permute.xlu0 %3391  ;;  %7029 = vmatprep.mubr.msk.bf16.mxu0 %vm3591_vm9, %v3552_v60 }
 0x26d   : > { %v3554_v59 = vsel %vm3526_vm5, %v3471_v43, %v3392_v58 }
 0x26e   : > { %v3298_v3 = vpop.permute.xlu1 %3297  ;;  %7030 = vmatmul.mubr.msk.bf16.gmra.mrb[88].mxu0 %vm3591_vm9, %v3554_v59 }
 0x26f   : > { %v3474_v30 = vsel %vm3429_vm3, %v2607_v62, %v3298_v3 }
 0x270   : > { %7110 = vmatmul.mubr.msk.bf16.gmra.mrb[56].mxu1 %vm3591_vm9, %v3552_v60  ;;  %v3300_v8 = vpop.permute.xlu0 %3299 }
 0x271   : > { %7113 = vmatprep.mubr.msk.bf16.mxu1 %vm3591_vm9, %v3554_v59  ;;  %v3477_v16 = vsel %vm3429_vm3, %v2608_v40, %v3300_v8 }
 0x272   : > { %v3394_v44 = vpop.permute.xlu1 %3393 }
 0x273   : > { %v3556_v10 = vsel %vm3526_vm5, %v3474_v30, %v3394_v44 }
 0x274   : > { %7033 = vmatprep.mubr.msk.bf16.mxu0 %vm3591_vm9, %v3556_v10 }
 0x276   : > { %v3396_v32 = vpop.permute.xlu1 %3395 }
 0x277   : > { %v3558_v50 = vsel %vm3526_vm5, %v3477_v16, %v3396_v32 }
 0x278   : > { %7034 = vmatmul.mubr.msk.bf16.gmra.mrb[92].mxu0 %vm3591_vm9, %v3558_v50  ;;  %7114 = vmatmul.mubr.msk.bf16.gmra.mrb[60].mxu1 %vm3591_vm9, %v3556_v10 }
 0x279   : > { %7117 = vmatprep.mubr.bf16.mxu1 %v10313_v49 }
 0x280   : > { %7118 = vmatmul.mubr.msk.bf16.gmra.mrb[0].mxu1 %vm3591_vm9, %v9096_v31  ;;  %v7558_v31 = vld [vmem:[%s10256_s5] sm:$0xff]  }
 0x281   : > { %7121 = vmatprep.mubr.msk.bf16.mxu1 %vm3591_vm9, %v9148_v52  ;;  %7229 = vmatprep.subr.bf16.mxu0 %v7558_v31 }
 0x282   : > { %7230 = vmatpush3.bf16.msra.mxu0 %v7558_v31 }
 0x288   : > { %7122 = vmatmul.mubr.msk.bf16.gmra.mrb[4].mxu1 %vm3591_vm9, %v9167_v9 }
 0x289   : > { %7125 = vmatprep.mubr.msk.bf16.mxu1 %vm3591_vm9, %v9211_v14 }
 0x290   : > { %7126 = vmatmul.mubr.msk.bf16.gmra.mrb[8].mxu1 %vm3591_vm9, %v9226_v48 }
 0x291   : > { %7129 = vmatprep.mubr.msk.bf16.mxu1 %vm3591_vm9, %v9263_v51 }
 0x298   : > { %7130 = vmatmul.mubr.msk.bf16.gmra.mrb[12].mxu1 %vm3591_vm9, %v9278_v33 }
 0x299   : > { %7133 = vmatprep.mubr.msk.bf16.mxu1 %vm3591_vm9, %v9315_v2 }
 0x2a0   : > { %7134 = vmatmul.mubr.msk.bf16.gmra.mrb[16].mxu1 %vm3591_vm9, %v9330_v55 }
 0x2a1   : > { %7137 = vmatprep.mubr.msk.bf16.mxu1 %vm3591_vm9, %v9361_v23 }
 0x2a8   : > { %7138 = vmatmul.mubr.msk.bf16.gmra.mrb[20].mxu1 %vm3591_vm9, %v9375_v15 }
 0x2a9   : > { %7141 = vmatprep.mubr.msk.bf16.mxu1 %vm3591_vm9, %v9395_v28 }
 0x2b0   : > { %7142 = vmatmul.mubr.msk.bf16.gmra.mrb[24].mxu1 %vm3591_vm9, %v9405_v42 }
 0x2b1   : > { %7145 = vmatprep.mubr.msk.bf16.mxu1 %vm3591_vm9, %v9431_v5 }
 0x2b8   : > { %7146 = vmatmul.mubr.msk.bf16.gmra.mrb[28].mxu1 %vm3591_vm9, %v9438_v45 }
 0x2b9   : > { %7165 = vmatprep.mubr.msk.bf16.mxu1 %vm3591_vm9, %v9503_v56  ;;  %v7559_v56 = vld [vmem:[%s10256_s5 + $0x8] sm:$0xff]  }
 0x2ba   : > { %7231 = vmatprep.subr.bf16.mxu0 %v7559_v56 }
 0x2bb   : > { %7232 = vmatpush3.bf16.msra.mxu0 %v7559_v56 }
 0x2c0   : > { %7166 = vmatmul.mubr.msk.bf16.vlgmr.msra.gmra.mrb[32].mxu1 %vm3591_vm9, %v9544_v0 }
 0x2c1   : > { %7169 = vmatprep.mubr.msk.bf16.mxu1 %vm3591_vm9, %v9559_v26 }
 0x2c8   : > { %7170 = vmatmul.mubr.msk.bf16.gmra.mrb[36].mxu1 %vm3591_vm9, %v9600_v38 }
 0x2c9   : > { %7173 = vmatprep.mubr.msk.bf16.mxu1 %vm3591_vm9, %v9615_v24 }
 0x2d0   : > { %7174 = vmatmul.mubr.msk.bf16.gmra.mrb[40].mxu1 %vm3591_vm9, %v9656_v39 }
 0x2d1   : > { %7177 = vmatprep.mubr.msk.bf16.mxu1 %vm3591_vm9, %v9671_v37 }
 0x2d8   : > { %7178 = vmatmul.mubr.msk.bf16.gmra.mrb[44].mxu1 %vm3591_vm9, %v9709_v22 }
 0x2d9   : > { %7181 = vmatprep.mubr.msk.bf16.mxu1 %vm3591_vm9, %v9723_v21 }
 0x2e0   : > { %7182 = vmatmul.mubr.msk.bf16.gmra.mrb[48].mxu1 %vm3591_vm9, %v9746_v12 }
 0x2e1   : > { %7185 = vmatprep.mubr.msk.bf16.mxu1 %vm3591_vm9, %v9756_v36 }
 0x2e8   : > { %7186 = vmatmul.mubr.msk.bf16.gmra.mrb[52].mxu1 %vm3591_vm9, %v3552_v60 }
 0x2e9   : > { %7189 = vmatprep.mubr.msk.bf16.mxu1 %vm3591_vm9, %v3554_v59 }
 0x2f0   : > { %7190 = vmatmul.mubr.msk.bf16.gmra.mrb[56].mxu1 %vm3591_vm9, %v3556_v10 }
 0x2f1   : > { %7193 = vmatprep.mubr.msk.bf16.mxu1 %vm3591_vm9, %v3558_v50 }
 0x2f8   : > { %7194 = vmatmul.mubr.bf16.gmra.mrb[60].mxu1 %v10313_v49 }
 0x2f9   : > { %7197 = vmatprep.mubr.msk.bf16.mxu1 %vm3591_vm9, %v9148_v52 }
 0x300   : > { %7198 = vmatmul.mubr.msk.bf16.gmra.mrb[0].mxu1 %vm3591_vm9, %v9167_v9 }
 0x301   : > { %7201 = vmatprep.mubr.msk.bf16.mxu1 %vm3591_vm9, %v9211_v14 }
 0x308   : > { %7202 = vmatmul.mubr.msk.bf16.gmra.mrb[4].mxu1 %vm3591_vm9, %v9226_v48 }
 0x309   : > { %7205 = vmatprep.mubr.msk.bf16.mxu1 %vm3591_vm9, %v9263_v51 }
 0x310   : > { %7206 = vmatmul.mubr.msk.bf16.gmra.mrb[8].mxu1 %vm3591_vm9, %v9278_v33 }
 0x311   : > { %v7007_v0 = vpop.f32.mrb[64].mxu0  ;;  %7209 = vmatprep.mubr.msk.bf16.mxu1 %vm3591_vm9, %v9315_v2 }
 0x312   : > { %v3869_v52 = vpop.f32.mrb[65].mxu0 }
 0x313   : > { %v7008_v26 = vpop.f32.mrb[66].mxu0 }
 0x314   : > { %v3872_v38 = vpop.f32.mrb[67].mxu0 }
 0x318   : > { %7210 = vmatmul.mubr.msk.bf16.gmra.mrb[12].mxu1 %vm3591_vm9, %v9330_v55 }
 0x319   : > { %v7011_v9 = vpop.f32.mrb[68].mxu0  ;;  %7213 = vmatprep.mubr.msk.bf16.mxu1 %vm3591_vm9, %v9361_v23 }
 0x31a   : > { %v3885_v14 = vpop.f32.mrb[69].mxu0 }
 0x31b   : > { %v7012_v48 = vpop.f32.mrb[70].mxu0 }
 0x31c   : > { %v3888_v51 = vpop.f32.mrb[71].mxu0 }
 0x320   : > { %7214 = vmatmul.mubr.msk.bf16.gmra.mrb[16].mxu1 %vm3591_vm9, %v9375_v15 }
 0x321   : > { %v9878_v33 = vpop.f32.mrb[72].mxu0  ;;  %7217 = vmatprep.mubr.msk.bf16.mxu1 %vm3591_vm9, %v9395_v28 }
 0x322   : > { %v9882_v2 = vpop.f32.mrb[73].mxu0 }
 0x323   : > { %v9884_v24 = vpop.f32.mrb[74].mxu0 }
 0x324   : > { %v9886_v55 = vpop.f32.mrb[75].mxu0 }
 0x328   : > { %7218 = vmatmul.mubr.msk.bf16.gmra.mrb[20].mxu1 %vm3591_vm9, %v9405_v42 }
 0x329   : > { %v9890_v23 = vpop.f32.mrb[76].mxu0  ;;  %7221 = vmatprep.mubr.msk.bf16.mxu1 %vm3591_vm9, %v9431_v5 }
 0x32a   : > { %v9894_v15 = vpop.f32.mrb[77].mxu0 }
 0x32b   : > { %v9896_v39 = vpop.f32.mrb[78].mxu0 }
 0x32c   : > { %v9898_v37 = vpop.f32.mrb[79].mxu0 }
 0x330   : > { %7222 = vmatmul.mubr.msk.bf16.gmra.mrb[24].mxu1 %vm3591_vm9, %v9438_v45 }
 0x331   : > { %v9902_v28 = vpop.f32.mrb[80].mxu0  ;;  %7225 = vmatprep.mubr.msk.bf16.mxu1 %vm3591_vm9, %v9464_v7 }
 0x332   : > { %v9906_v42 = vpop.f32.mrb[81].mxu0 }
 0x333   : > { %v9908_v22 = vpop.f32.mrb[82].mxu0 }
 0x334   : > { %v9910_v21 = vpop.f32.mrb[83].mxu0 }
 0x338   : > { %7226 = vmatmul.mubr.bf16.gmra.mrb[28].mxu1 %v10313_v49 }
 0x339   : > { %v9913_v5 = vpop.f32.mrb[84].mxu0 }
 0x33a   : > { %v9915_v6 = vpop.f32.mrb[85].mxu0 }
 0x33b   : > { %v9917_v53 = vpop.f32.mrb[86].mxu0 }
 0x33c   : > { %v9919_v45 = vpop.f32.mrb[87].mxu0 }
 0x341   : > { %v9921_v17 = vpop.f32.mrb[88].mxu0 }
 0x342   : > { %v9923_v1 = vpop.f32.mrb[89].mxu0 }
 0x343   : > { %v9925_v7 = vpop.f32.mrb[90].mxu0 }
 0x344   : > { %v9927_v12 = vpop.f32.mrb[91].mxu0 }
 0x34b   : > { %v9929_v25 = vpop.f32.mrb[92].mxu0 }
 0x34c   : > { %v9931_v46 = vpop.f32.mrb[93].mxu0 }
 0x34d   : > { %v9933_v49 = vpop.f32.mrb[94].mxu0 }
 0x34e   : > { %v9935_v61 = vpop.f32.mrb[95].mxu0 }
 0x393   : > { %v7167_v36 = vpop.f32.mrb[32].mxu1 }
 0x394   : > { %v7313_v13 = vadd.f32 %v7167_v36, %v7007_v0  ;;  %v4593_v20 = vpop.f32.mrb[33].mxu1 }
 0x395   : > { %v7314_v57 = vadd.f32 %v4593_v20, %v3869_v52  ;;  %v7168_v47 = vpop.f32.mrb[34].mxu1 }
 0x396   : > { %v4921_v29 = vadd.f32 %v7313_v13, %v9940_v18  ;;  %v7315_v54 = vadd.f32 %v7168_v47, %v7008_v26  ;;  %v4596_v19 = vpop.f32.mrb[35].mxu1 }
 0x397   : > { %v4919_v35 = vadd.f32 %v7314_v57, %v9940_v18  ;;  %v7316_v4 = vadd.f32 %v4596_v19, %v3872_v38 }
 0x398   : > { %v4922_v34 = vadd.f32 %v7315_v54, %v9940_v18  ;;  %v4985_v27 = vmax.f32 %v4921_v29, 0.0 }
 0x399   : > { %v4920_v60 = vadd.f32 %v7316_v4, %v9940_v18  ;;  %v4983_v58 = vmax.f32 %v4919_v35, 0.0 }
 0x39a   : > { %v4986_v43 = vmax.f32 %v4922_v34, 0.0 }
 0x39b   : > { %v4984_v59 = vmax.f32 %v4920_v60, 0.0  ;;  %v7171_v3 = vpop.f32.mrb[36].mxu1 }
 0x39c   : > { %v5048_v11 = vpack.c.bf16 %v4986_v43, %v4985_v27  ;;  %v7317_v63 = vadd.f32 %v7171_v3, %v7011_v9  ;;  %v4609_v62 = vpop.f32.mrb[37].mxu1 }
 0x39d   : > { %v5047_v30 = vpack.c.bf16 %v4984_v59, %v4983_v58  ;;  %v7318_v44 = vadd.f32 %v4609_v62, %v3885_v14  ;;  %v7172_v8 = vpop.f32.mrb[38].mxu1 }
 0x39e   : > { %v4925_v10 = vadd.f32 %v7317_v63, %v9940_v18  ;;  %v7319_v41 = vadd.f32 %v7172_v8, %v7012_v48  ;;  %v4612_v40 = vpop.f32.mrb[39].mxu1 }
 0x39f   : > { %v4923_v16 = vadd.f32 %v7318_v44, %v9940_v18  ;;  %v7320_v32 = vadd.f32 %v4612_v40, %v3888_v51  ;;  %7233 = vmatprep.mubr.msk.bf16.mxu0 %vm3429_vm3, %v5047_v30 }
 0x3a0   : > { %v4926_v50 = vadd.f32 %v7319_v41, %v9940_v18  ;;  %7234 = vmatmul.mubr.msk.bf16.vlgmr.msra.gmra.mrb[96].mxu0 %vm3429_vm3, %v5048_v11  ;;  %v4989_v56 = vmax.f32 %v4925_v10, 0.0 }
 0x3a1   : > { %v4924_v31 = vadd.f32 %v7320_v32, %v9940_v18  ;;  %v4987_v52 = vmax.f32 %v4923_v16, 0.0 }
 0x3a2   : > { %v4990_v0 = vmax.f32 %v4926_v50, 0.0 }
 0x3a3   : > { %v4988_v26 = vmax.f32 %v4924_v31, 0.0  ;;  %v7175_v38 = vpop.f32.mrb[40].mxu1 }
 0x3a4   : > { %v5050_v9 = vpack.c.bf16 %v4990_v0, %v4989_v56  ;;  %v7321_v14 = vadd.f32 %v7175_v38, %v9878_v33  ;;  %v4625_v48 = vpop.f32.mrb[41].mxu1 }
 0x3a5   : > { %v5049_v36 = vpack.c.bf16 %v4988_v26, %v4987_v52  ;;  %v7322_v51 = vadd.f32 %v4625_v48, %v9882_v2  ;;  %v7176_v13 = vpop.f32.mrb[42].mxu1 }
 0x3a6   : > { %v4929_v20 = vadd.f32 %v7321_v14, %v9940_v18  ;;  %v7323_v57 = vadd.f32 %v7176_v13, %v9884_v24  ;;  %v4628_v47 = vpop.f32.mrb[43].mxu1 }
 0x3a7   : > { %v4927_v29 = vadd.f32 %v7322_v51, %v9940_v18  ;;  %v7324_v54 = vadd.f32 %v4628_v47, %v9886_v55  ;;  %7237 = vmatprep.mubr.msk.bf16.mxu0 %vm3429_vm3, %v5049_v36 }
 0x3a8   : > { %v4930_v19 = vadd.f32 %v7323_v57, %v9940_v18  ;;  %7238 = vmatmul.mubr.msk.bf16.gmra.mrb[100].mxu0 %vm3429_vm3, %v5050_v9  ;;  %v4993_v35 = vmax.f32 %v4929_v20, 0.0 }
 0x3a9   : > { %v4928_v33 = vadd.f32 %v7324_v54, %v9940_v18  ;;  %v4991_v4 = vmax.f32 %v4927_v29, 0.0 }
 0x3aa   : > { %v4994_v2 = vmax.f32 %v4930_v19, 0.0 }
 0x3ab   : > { %v4992_v34 = vmax.f32 %v4928_v33, 0.0  ;;  %v7179_v60 = vpop.f32.mrb[44].mxu1 }
 0x3ac   : > { %v5052_v27 = vpack.c.bf16 %v4994_v2, %v4993_v35  ;;  %v7325_v24 = vadd.f32 %v7179_v60, %v9890_v23  ;;  %v4641_v43 = vpop.f32.mrb[45].mxu1 }
 0x3ad   : > { %v5051_v58 = vpack.c.bf16 %v4992_v34, %v4991_v4  ;;  %v7326_v55 = vadd.f32 %v4641_v43, %v9894_v15  ;;  %v7180_v59 = vpop.f32.mrb[46].mxu1 }
 0x3ae   : > { %v4933_v3 = vadd.f32 %v7325_v24, %v9940_v18  ;;  %v7327_v11 = vadd.f32 %v7180_v59, %v9896_v39  ;;  %v4644_v63 = vpop.f32.mrb[47].mxu1 }
 0x3af   : > { %v4931_v62 = vadd.f32 %v7326_v55, %v9940_v18  ;;  %v7328_v30 = vadd.f32 %v4644_v63, %v9898_v37  ;;  %7241 = vmatprep.mubr.msk.bf16.mxu0 %vm3429_vm3, %v5051_v58 }
 0x3b0   : > { %v4934_v44 = vadd.f32 %v7327_v11, %v9940_v18  ;;  %7242 = vmatmul.mubr.msk.bf16.gmra.mrb[104].mxu0 %vm3429_vm3, %v5052_v27  ;;  %v4997_v8 = vmax.f32 %v4933_v3, 0.0 }
 0x3b1   : > { %v4932_v23 = vadd.f32 %v7328_v30, %v9940_v18  ;;  %v4995_v10 = vmax.f32 %v4931_v62, 0.0 }
 0x3b2   : > { %v4998_v15 = vmax.f32 %v4934_v44, 0.0 }
 0x3b3   : > { %v4996_v41 = vmax.f32 %v4932_v23, 0.0  ;;  %v7183_v40 = vpop.f32.mrb[48].mxu1 }
 0x3b4   : > { %v5054_v16 = vpack.c.bf16 %v4998_v15, %v4997_v8  ;;  %v7329_v39 = vadd.f32 %v7183_v40, %v9902_v28  ;;  %v4657_v32 = vpop.f32.mrb[49].mxu1 }
 0x3b5   : > { %v5053_v50 = vpack.c.bf16 %v4996_v41, %v4995_v10  ;;  %v7330_v37 = vadd.f32 %v4657_v32, %v9906_v42  ;;  %v7184_v31 = vpop.f32.mrb[50].mxu1 }
 0x3b6   : > { %v4937_v56 = vadd.f32 %v7329_v39, %v9940_v18  ;;  %v7331_v0 = vadd.f32 %v7184_v31, %v9908_v22  ;;  %v4660_v52 = vpop.f32.mrb[51].mxu1 }
 0x3b7   : > { %v4935_v26 = vadd.f32 %v7330_v37, %v9940_v18  ;;  %v7332_v38 = vadd.f32 %v4660_v52, %v9910_v21  ;;  %7245 = vmatprep.mubr.msk.bf16.mxu0 %vm3429_vm3, %v5053_v50 }
 0x3b8   : > { %v4938_v9 = vadd.f32 %v7331_v0, %v9940_v18  ;;  %7246 = vmatmul.mubr.msk.bf16.gmra.mrb[108].mxu0 %vm3429_vm3, %v5054_v16  ;;  %v5001_v14 = vmax.f32 %v4937_v56, 0.0 }
 0x3b9   : > { %v4936_v28 = vadd.f32 %v7332_v38, %v9940_v18  ;;  %v4999_v48 = vmax.f32 %v4935_v26, 0.0 }
 0x3ba   : > { %v5002_v42 = vmax.f32 %v4938_v9, 0.0 }
 0x3bb   : > { %v5000_v36 = vmax.f32 %v4936_v28, 0.0  ;;  %v7187_v51 = vpop.f32.mrb[52].mxu1 }
 0x3bc   : > { %v5056_v13 = vpack.c.bf16 %v5002_v42, %v5001_v14  ;;  %v7333_v22 = vadd.f32 %v7187_v51, %v9913_v5  ;;  %v4673_v20 = vpop.f32.mrb[53].mxu1 }
 0x3bd   : > { %v5055_v57 = vpack.c.bf16 %v5000_v36, %v4999_v48  ;;  %v7334_v21 = vadd.f32 %v4673_v20, %v9915_v6  ;;  %v7188_v47 = vpop.f32.mrb[54].mxu1 }
 0x3be   : > { %v4941_v29 = vadd.f32 %v7333_v22, %v9940_v18  ;;  %v7335_v54 = vadd.f32 %v7188_v47, %v9917_v53  ;;  %v4676_v19 = vpop.f32.mrb[55].mxu1 }
 0x3bf   : > { %v4939_v33 = vadd.f32 %v7334_v21, %v9940_v18  ;;  %v7336_v35 = vadd.f32 %v4676_v19, %v9919_v45  ;;  %7249 = vmatprep.mubr.msk.bf16.mxu0 %vm3429_vm3, %v5055_v57 }
 0x3c0   : > { %v4942_v2 = vadd.f32 %v7335_v54, %v9940_v18  ;;  %7250 = vmatmul.mubr.msk.bf16.gmra.mrb[112].mxu0 %vm3429_vm3, %v5056_v13  ;;  %v5005_v4 = vmax.f32 %v4941_v29, 0.0 }
 0x3c1   : > { %v4940_v5 = vadd.f32 %v7336_v35, %v9940_v18  ;;  %v5003_v34 = vmax.f32 %v4939_v33, 0.0 }
 0x3c2   : > { %v5006_v6 = vmax.f32 %v4942_v2, 0.0 }
 0x3c3   : > { %v5004_v60 = vmax.f32 %v4940_v5, 0.0  ;;  %v7191_v27 = vpop.f32.mrb[56].mxu1 }
 0x3c4   : > { %v5058_v24 = vpack.c.bf16 %v5006_v6, %v5005_v4  ;;  %v7337_v53 = vadd.f32 %v7191_v27, %v9921_v17  ;;  %v4689_v43 = vpop.f32.mrb[57].mxu1 }
 0x3c5   : > { %v5057_v58 = vpack.c.bf16 %v5004_v60, %v5003_v34  ;;  %v7338_v45 = vadd.f32 %v4689_v43, %v9923_v1  ;;  %v7192_v55 = vpop.f32.mrb[58].mxu1 }
 0x3c6   : > { %v4945_v59 = vadd.f32 %v7337_v53, %v9940_v18  ;;  %v7339_v3 = vadd.f32 %v7192_v55, %v9925_v7  ;;  %v4692_v11 = vpop.f32.mrb[59].mxu1 }
 0x3c7   : > { %v4943_v63 = vadd.f32 %v7338_v45, %v9940_v18  ;;  %v7340_v62 = vadd.f32 %v4692_v11, %v9927_v12  ;;  %7253 = vmatprep.mubr.msk.bf16.mxu0 %vm3429_vm3, %v5057_v58 }
 0x3c8   : > { %v4946_v30 = vadd.f32 %v7339_v3, %v9940_v18  ;;  %7254 = vmatmul.mubr.msk.bf16.gmra.mrb[116].mxu0 %vm3429_vm3, %v5058_v24  ;;  %v5009_v44 = vmax.f32 %v4945_v59, 0.0 }
 0x3c9   : > { %v4944_v17 = vadd.f32 %v7340_v62, %v9940_v18  ;;  %v5007_v23 = vmax.f32 %v4943_v63, 0.0 }
 0x3ca   : > { %v5010_v1 = vmax.f32 %v4946_v30, 0.0 }
 0x3cb   : > { %v5008_v8 = vmax.f32 %v4944_v17, 0.0  ;;  %v7195_v15 = vpop.f32.mrb[60].mxu1 }
 0x3cc   : > { %v5060_v10 = vpack.c.bf16 %v5010_v1, %v5009_v44  ;;  %v7341_v7 = vadd.f32 %v7195_v15, %v9929_v25  ;;  %v4705_v41 = vpop.f32.mrb[61].mxu1 }
 0x3cd   : > { %v5059_v40 = vpack.c.bf16 %v5008_v8, %v5007_v23  ;;  %v7342_v12 = vadd.f32 %v4705_v41, %v9931_v46  ;;  %v7196_v16 = vpop.f32.mrb[62].mxu1 }
 0x3ce   : > { %v4949_v39 = vadd.f32 %v7341_v7, %v9940_v18  ;;  %v7343_v32 = vadd.f32 %v7196_v16, %v9933_v49  ;;  %v4708_v50 = vpop.f32.mrb[63].mxu1 }
 0x3cf   : > { %v4947_v37 = vadd.f32 %v7342_v12, %v9940_v18  ;;  %v7344_v31 = vadd.f32 %v4708_v50, %v9935_v61  ;;  %7257 = vmatprep.mubr.msk.bf16.mxu0 %vm3429_vm3, %v5059_v40 }
 0x3d0   : > { %v4950_v56 = vadd.f32 %v7343_v32, %v9940_v18  ;;  %7258 = vmatmul.mubr.msk.bf16.gmra.mrb[120].mxu0 %vm3429_vm3, %v5060_v10  ;;  %v5013_v0 = vmax.f32 %v4949_v39, 0.0 }
 0x3d1   : > { %v4948_v25 = vadd.f32 %v7344_v31, %v9940_v18  ;;  %v5011_v52 = vmax.f32 %v4947_v37, 0.0 }
 0x3d2   : > { %v5014_v46 = vmax.f32 %v4950_v56, 0.0 }
 0x3d3   : > { %v5012_v26 = vmax.f32 %v4948_v25, 0.0  ;;  %v7199_v38 = vpop.f32.mrb[0].mxu1 }
 0x3d4   : > { %v5062_v9 = vpack.c.bf16 %v5014_v46, %v5013_v0  ;;  %v4953_v49 = vadd.f32 %v7199_v38, %v9940_v18  ;;  %v4721_v28 = vpop.f32.mrb[1].mxu1 }
 0x3d5   : > { %v5061_v14 = vpack.c.bf16 %v5012_v26, %v5011_v52  ;;  %v4951_v61 = vadd.f32 %v9940_v18, %v4721_v28  ;;  %v7200_v42 = vpop.f32.mrb[2].mxu1 }
 0x3d6   : > { %v4954_v48 = vadd.f32 %v7200_v42, %v9940_v18  ;;  %v4724_v36 = vpop.f32.mrb[3].mxu1  ;;  %v5017_v13 = vmax.f32 %v4953_v49, 0.0 }
 0x3d7   : > { %v4952_v51 = vadd.f32 %v9940_v18, %v4724_v36  ;;  %7261 = vmatprep.mubr.msk.bf16.mxu0 %vm3429_vm3, %v5061_v14  ;;  %v5015_v20 = vmax.f32 %v4951_v61, 0.0 }
 0x3d8   : > { %v5018_v22 = vmax.f32 %v4954_v48, 0.0  ;;  %7262 = vmatmul.mubr.msk.bf16.gmra.mrb[124].mxu0 %vm3429_vm3, %v5062_v9 }
 0x3d9   : > { %v5016_v57 = vmax.f32 %v4952_v51, 0.0 }
 0x3da   : > { %v5064_v21 = vpack.c.bf16 %v5018_v22, %v5017_v13 }
 0x3db   : > { %v5063_v47 = vpack.c.bf16 %v5016_v57, %v5015_v20  ;;  %v7203_v29 = vpop.f32.mrb[4].mxu1 }
 0x3dc   : > { %v4957_v54 = vadd.f32 %v7203_v29, %v9940_v18  ;;  %v4737_v19 = vpop.f32.mrb[5].mxu1 }
 0x3dd   : > { %v4955_v33 = vadd.f32 %v9940_v18, %v4737_v19  ;;  %v7204_v35 = vpop.f32.mrb[6].mxu1  ;;  %7265 = vmatprep.mubr.msk.bf16.mxu0 %vm3429_vm3, %v5063_v47 }
 0x3de   : > { %v4958_v2 = vadd.f32 %v7204_v35, %v9940_v18  ;;  %v4740_v5 = vpop.f32.mrb[7].mxu1  ;;  %v5021_v6 = vmax.f32 %v4957_v54, 0.0 }
 0x3df   : > { %v4956_v4 = vadd.f32 %v9940_v18, %v4740_v5  ;;  %v5019_v60 = vmax.f32 %v4955_v33, 0.0 }
 0x3e0   : > { %v5022_v34 = vmax.f32 %v4958_v2, 0.0  ;;  %7266 = vmatmul.mubr.msk.bf16.gmra.mrb[128].mxu0 %vm3429_vm3, %v5064_v21 }
 0x3e1   : > { %v5020_v27 = vmax.f32 %v4956_v4, 0.0 }
 0x3e2   : > { %v5066_v24 = vpack.c.bf16 %v5022_v34, %v5021_v6 }
 0x3e3   : > { %v5065_v53 = vpack.c.bf16 %v5020_v27, %v5019_v60  ;;  %v7207_v43 = vpop.f32.mrb[8].mxu1 }
 0x3e4   : > { %v4961_v58 = vadd.f32 %v7207_v43, %v9940_v18  ;;  %v4753_v45 = vpop.f32.mrb[9].mxu1 }
 0x3e5   : > { %v4959_v55 = vadd.f32 %v9940_v18, %v4753_v45  ;;  %v7208_v59 = vpop.f32.mrb[10].mxu1  ;;  %7269 = vmatprep.mubr.msk.bf16.mxu0 %vm3429_vm3, %v5065_v53 }
 0x3e6   : > { %v4962_v3 = vadd.f32 %v7208_v59, %v9940_v18  ;;  %v4756_v11 = vpop.f32.mrb[11].mxu1  ;;  %v5025_v62 = vmax.f32 %v4961_v58, 0.0 }
 0x3e7   : > { %v4960_v63 = vadd.f32 %v9940_v18, %v4756_v11  ;;  %v5023_v17 = vmax.f32 %v4959_v55, 0.0 }
 0x3e8   : > { %v5026_v30 = vmax.f32 %v4962_v3, 0.0  ;;  %7270 = vmatmul.mubr.msk.bf16.gmra.mrb[132].mxu0 %vm3429_vm3, %v5066_v24 }
 0x3e9   : > { %v5024_v44 = vmax.f32 %v4960_v63, 0.0 }
 0x3ea   : > { %v5068_v1 = vpack.c.bf16 %v5026_v30, %v5025_v62 }
 0x3eb   : > { %v5067_v23 = vpack.c.bf16 %v5024_v44, %v5023_v17  ;;  %v7211_v8 = vpop.f32.mrb[12].mxu1 }
 0x3ec   : > { %v4965_v15 = vadd.f32 %v7211_v8, %v9940_v18  ;;  %v4769_v10 = vpop.f32.mrb[13].mxu1 }
 0x3ed   : > { %v4963_v7 = vadd.f32 %v9940_v18, %v4769_v10  ;;  %v7212_v41 = vpop.f32.mrb[14].mxu1  ;;  %7273 = vmatprep.mubr.msk.bf16.mxu0 %vm3429_vm3, %v5067_v23 }
 0x3ee   : > { %v4966_v40 = vadd.f32 %v7212_v41, %v9940_v18  ;;  %v4772_v12 = vpop.f32.mrb[15].mxu1  ;;  %v5029_v39 = vmax.f32 %v4965_v15, 0.0 }
 0x3ef   : > { %v4964_v16 = vadd.f32 %v9940_v18, %v4772_v12  ;;  %v5027_v50 = vmax.f32 %v4963_v7, 0.0 }
 0x3f0   : > { %v5030_v32 = vmax.f32 %v4966_v40, 0.0  ;;  %7274 = vmatmul.mubr.msk.bf16.gmra.mrb[136].mxu0 %vm3429_vm3, %v5068_v1 }
 0x3f1   : > { %v5028_v37 = vmax.f32 %v4964_v16, 0.0  ;;  %v10065_v16 = vld [vmem:[%s10257_s6] ss:$0 sm:$0xff] }
 0x3f2   : > { %v5070_v31 = vpack.c.bf16 %v5030_v32, %v5029_v39  ;;  %v7594_v39 = vld [vmem:[%s7882_s15 + $0x8] sm:$0xff]  }
 0x3f3   : > { %v5069_v56 = vpack.c.bf16 %v5028_v37, %v5027_v50  ;;  %v7215_v25 = vpop.f32.mrb[16].mxu1  ;;  %v5489_v32 = vunpack.c.l.bf16 %v7594_v39 }
 0x3f4   : > { %v4969_v0 = vadd.f32 %v7215_v25, %v9940_v18  ;;  %v4785_v46 = vpop.f32.mrb[17].mxu1  ;;  %v5490_v25 = vunpack.c.h.bf16 %v7594_v39 }
 0x3f5   : > { %v4967_v52 = vadd.f32 %v9940_v18, %v4785_v46  ;;  %v7216_v26 = vpop.f32.mrb[18].mxu1  ;;  %7277 = vmatprep.mubr.msk.bf16.mxu0 %vm3429_vm3, %v5069_v56 }
 0x3f6   : > { %v4970_v38 = vadd.f32 %v7216_v26, %v9940_v18  ;;  %v4788_v9 = vpop.f32.mrb[19].mxu1  ;;  %v5033_v28 = vmax.f32 %v4969_v0, 0.0 }
 0x3f7   : > { %v4968_v49 = vadd.f32 %v9940_v18, %v4788_v9  ;;  %v5031_v61 = vmax.f32 %v4967_v52, 0.0 }
 0x3f8   : > { %v5034_v14 = vmax.f32 %v4970_v38, 0.0  ;;  %7278 = vmatmul.mubr.msk.bf16.gmra.mrb[140].mxu0 %vm3429_vm3, %v5070_v31 }
 0x3f9   : > { %v5032_v42 = vmax.f32 %v4968_v49, 0.0 }
 0x3fa   : > { %v5072_v48 = vpack.c.bf16 %v5034_v14, %v5033_v28 }
 0x3fb   : > { %v5071_v36 = vpack.c.bf16 %v5032_v42, %v5031_v61  ;;  %v7219_v51 = vpop.f32.mrb[20].mxu1 }
 0x3fc   : > { %v4973_v13 = vadd.f32 %v7219_v51, %v9940_v18  ;;  %v4801_v22 = vpop.f32.mrb[21].mxu1 }
 0x3fd   : > { %v4971_v20 = vadd.f32 %v9940_v18, %v4801_v22  ;;  %v7220_v57 = vpop.f32.mrb[22].mxu1  ;;  %7281 = vmatprep.mubr.msk.bf16.mxu0 %vm3429_vm3, %v5071_v36  ;;  %v7596_v36 = vld [vmem:[%s7882_s15 + $0x18] sm:$0xff]  }
 0x3fe   : > { %v4974_v21 = vadd.f32 %v7220_v57, %v9940_v18  ;;  %v4804_v47 = vpop.f32.mrb[23].mxu1  ;;  %v5037_v54 = vmax.f32 %v4973_v13, 0.0  ;;  %v5493_v51 = vunpack.c.l.bf16 %v7596_v36  ;;  %v7597_v57 = vld [vmem:[%s7882_s15 + $0x10] sm:$0xff]  }
 0x3ff   : > { %v4972_v29 = vadd.f32 %v9940_v18, %v4804_v47  ;;  %v5035_v33 = vmax.f32 %v4971_v20, 0.0 }
 0x400   : > { %v5038_v19 = vmax.f32 %v4974_v21, 0.0  ;;  %7282 = vmatmul.mubr.msk.bf16.gmra.mrb[144].mxu0 %vm3429_vm3, %v5072_v48  ;;  %v5491_v21 = vunpack.c.l.bf16 %v7597_v57 }
 0x401   : > { %v5036_v35 = vmax.f32 %v4972_v29, 0.0 }
 0x402   : > { %v5074_v2 = vpack.c.bf16 %v5038_v19, %v5037_v54  ;;  %v5494_v19 = vunpack.c.h.bf16 %v7596_v36 }
 0x403   : > { %v5073_v5 = vpack.c.bf16 %v5036_v35, %v5035_v33  ;;  %v7223_v4 = vpop.f32.mrb[24].mxu1 }
 0x404   : > { %v4977_v6 = vadd.f32 %v7223_v4, %v9940_v18  ;;  %v4817_v34 = vpop.f32.mrb[25].mxu1 }
 0x405   : > { %v4975_v60 = vadd.f32 %v9940_v18, %v4817_v34  ;;  %v7224_v27 = vpop.f32.mrb[26].mxu1  ;;  %7285 = vmatprep.mubr.msk.bf16.mxu0 %vm3429_vm3, %v5073_v5  ;;  %v5492_v5 = vunpack.c.h.bf16 %v7597_v57 }
 0x406   : > { %v4978_v24 = vadd.f32 %v7224_v27, %v9940_v18  ;;  %v4820_v53 = vpop.f32.mrb[27].mxu1  ;;  %v5041_v58 = vmax.f32 %v4977_v6, 0.0 }
 0x407   : > { %v4976_v43 = vadd.f32 %v9940_v18, %v4820_v53  ;;  %v5039_v55 = vmax.f32 %v4975_v60, 0.0 }
 0x408   : > { %v5042_v45 = vmax.f32 %v4978_v24, 0.0  ;;  %7286 = vmatmul.mubr.msk.bf16.gmra.mrb[148].mxu0 %vm3429_vm3, %v5074_v2 }
 0x409   : > { %v5040_v59 = vmax.f32 %v4976_v43, 0.0 }
 0x40a   : > { %v5076_v3 = vpack.c.bf16 %v5042_v45, %v5041_v58  ;;  %v7598_v45 = vld [vmem:[%s7882_s15 + $0x28] sm:$0xff]  }
 0x40b   : > { %v5075_v11 = vpack.c.bf16 %v5040_v59, %v5039_v55  ;;  %v7227_v63 = vpop.f32.mrb[28].mxu1  ;;  %v5497_v55 = vunpack.c.l.bf16 %v7598_v45 }
 0x40c   : > { %v4981_v62 = vadd.f32 %v7227_v63, %v9940_v18  ;;  %v4833_v30 = vpop.f32.mrb[29].mxu1  ;;  %v7599_v63 = vld [vmem:[%s7882_s15 + $0x20] sm:$0xff]  }
 0x40d   : > { %v4979_v17 = vadd.f32 %v9940_v18, %v4833_v30  ;;  %v7228_v44 = vpop.f32.mrb[30].mxu1  ;;  %7289 = vmatprep.mubr.msk.bf16.mxu0 %vm3429_vm3, %v5075_v11 }
 0x40e   : > { %v4982_v1 = vadd.f32 %v7228_v44, %v9940_v18  ;;  %v4836_v23 = vpop.f32.mrb[31].mxu1  ;;  %v5045_v15 = vmax.f32 %v4981_v62, 0.0  ;;  %v5495_v62 = vunpack.c.l.bf16 %v7599_v63 }
 0x40f   : > { %v4980_v8 = vadd.f32 %v9940_v18, %v4836_v23  ;;  %v5043_v7 = vmax.f32 %v4979_v17, 0.0  ;;  %v7595_v18 = vld [vmem:[%s7882_s15] sm:$0xff]  }
 0x410   : > { %v5046_v10 = vmax.f32 %v4982_v1, 0.0  ;;  %7290 = vmatmul.mubr.msk.bf16.gmra.mrb[152].mxu0 %vm3429_vm3, %v5076_v3  ;;  %v5487_v50 = vunpack.c.l.bf16 %v7595_v18  ;;  %v5488_v0 = vunpack.c.h.bf16 %v7595_v18  ;;  %v5498_v1 = vunpack.c.h.bf16 %v7598_v45 }
 0x411   : > { %v5044_v41 = vmax.f32 %v4980_v8, 0.0 }
 0x412   : > { %v5078_v40 = vpack.c.bf16 %v5046_v10, %v5045_v15  ;;  %v5496_v10 = vunpack.c.h.bf16 %v7599_v63 }
 0x413   : > { %v5077_v12 = vpack.c.bf16 %v5044_v41, %v5043_v7 }
 0x415   : > { %7293 = vmatprep.mubr.msk.bf16.mxu0 %vm3429_vm3, %v5077_v12 }
 0x418   : > { %7294 = vmatmul.mubr.msk.bf16.gmra.mrb[156].mxu0 %vm3429_vm3, %v5078_v40 }
 0x473   : > { %v7235_v37 = vpop.f32.mrb[96].mxu0 }
 0x474   : > { %v5241_v31 = vadd.f32 %v7235_v37, %v10065_v16  ;;  %v5232_v56 = vpop.f32.mrb[97].mxu0 }
 0x475   : > { %v5233_v46 = vadd.f32 %v10065_v16, %v5232_v56  ;;  %v7236_v52 = vpop.f32.mrb[98].mxu0 }
 0x476   : > { %v5553_v26 = vadd.f32 %v5489_v32, %v5241_v31  ;;  %v5244_v38 = vadd.f32 %v7236_v52, %v10065_v16  ;;  %v5235_v9 = vpop.f32.mrb[99].mxu0  ;;  %v7600_v31 = vld [vmem:[%s7882_s15 + $0x38] sm:$0xff]   ;;  %v7601_v52 = vld [vmem:[%s7882_s15 + $0x30] sm:$0xff]  }
 0x477   : > { %v5551_v49 = vadd.f32 %v5487_v50, %v5233_v46  ;;  %v5236_v28 = vadd.f32 %v10065_v16, %v5235_v9  ;;  %v5501_v56 = vunpack.c.l.bf16 %v7600_v31 }
 0x478   : > { %v5554_v14 = vadd.f32 %v5490_v25, %v5244_v38  ;;  %v5617_v42 = vmax.f32 %v5553_v26, 0.0  ;;  %v5499_v26 = vunpack.c.l.bf16 %v7601_v52 }
 0x479   : > { %v5552_v61 = vadd.f32 %v5488_v0, %v5236_v28  ;;  %v5615_v13 = vmax.f32 %v5551_v49, 0.0  ;;  %v5502_v28 = vunpack.c.h.bf16 %v7600_v31 }
 0x47a   : > { %v5618_v48 = vmax.f32 %v5554_v14, 0.0 }
 0x47b   : > { %v5616_v22 = vmax.f32 %v5552_v61, 0.0  ;;  %v7239_v20 = vpop.f32.mrb[100].mxu0 }
 0x47c   : > { %v6440_v47 = vpack.c.bf16 %v5618_v48, %v5617_v42  ;;  %v5257_v29 = vadd.f32 %v7239_v20, %v10065_v16  ;;  %v5248_v54 = vpop.f32.mrb[101].mxu0  ;;  %v5500_v48 = vunpack.c.h.bf16 %v7601_v52 }
 0x47d   : > { %v6435_v33 = vpack.c.bf16 %v5616_v22, %v5615_v13  ;;  %v5249_v35 = vadd.f32 %v10065_v16, %v5248_v54  ;;  %v7240_v2 = vpop.f32.mrb[102].mxu0  ;;  %v7602_v54 = vld [vmem:[%s7882_s15 + $0x48] sm:$0xff]  }
 0x47e   : > { %6592 = vst [vmem:[%s10079_s9 + $0x8] sm:$0xff] %v6440_v47   ;;  %v5557_v4 = vadd.f32 %v5493_v51, %v5257_v29  ;;  %v5260_v6 = vadd.f32 %v7240_v2, %v10065_v16  ;;  %v5251_v34 = vpop.f32.mrb[103].mxu0 }
 0x47f   : > { %6436 = vst [vmem:[%s10079_s9] sm:$0xff] %v6435_v33   ;;  %v5555_v60 = vadd.f32 %v5491_v21, %v5249_v35  ;;  %v5252_v27 = vadd.f32 %v10065_v16, %v5251_v34 }
 0x480   : > { %v5558_v24 = vadd.f32 %v5494_v19, %v5260_v6  ;;  %v5621_v43 = vmax.f32 %v5557_v4, 0.0  ;;  %v5505_v19 = vunpack.c.l.bf16 %v7602_v54 }
 0x481   : > { %v5556_v53 = vadd.f32 %v5492_v5, %v5252_v27  ;;  %v5619_v59 = vmax.f32 %v5555_v60, 0.0  ;;  %v7603_v5 = vld [vmem:[%s7882_s15 + $0x40] sm:$0xff]   ;;  %v5506_v27 = vunpack.c.h.bf16 %v7602_v54 }
 0x482   : > { %v5622_v58 = vmax.f32 %v5558_v24, 0.0  ;;  %v5503_v4 = vunpack.c.l.bf16 %v7603_v5 }
 0x483   : > { %v5620_v3 = vmax.f32 %v5556_v53, 0.0  ;;  %v7243_v11 = vpop.f32.mrb[104].mxu0 }
 0x484   : > { %v6450_v30 = vpack.c.bf16 %v5622_v58, %v5621_v43  ;;  %v5273_v17 = vadd.f32 %v7243_v11, %v10065_v16  ;;  %v5264_v44 = vpop.f32.mrb[105].mxu0  ;;  %v5504_v58 = vunpack.c.h.bf16 %v7603_v5 }
 0x485   : > { %v6445_v23 = vpack.c.bf16 %v5620_v3, %v5619_v59  ;;  %v5265_v8 = vadd.f32 %v10065_v16, %v5264_v44  ;;  %v7244_v15 = vpop.f32.mrb[106].mxu0  ;;  %v7604_v44 = vld [vmem:[%s7882_s15 + $0x58] sm:$0xff]  }
 0x486   : > { %6594 = vst [vmem:[%s10079_s9 + $0x18] sm:$0xff] %v6450_v30   ;;  %v5561_v7 = vadd.f32 %v5497_v55, %v5273_v17  ;;  %v5276_v41 = vadd.f32 %v7244_v15, %v10065_v16  ;;  %v5267_v40 = vpop.f32.mrb[107].mxu0 }
 0x487   : > { %6593 = vst [vmem:[%s10079_s9 + $0x10] sm:$0xff] %v6445_v23   ;;  %v5559_v12 = vadd.f32 %v5495_v62, %v5265_v8  ;;  %v5268_v39 = vadd.f32 %v10065_v16, %v5267_v40 }
 0x488   : > { %v5562_v32 = vadd.f32 %v5498_v1, %v5276_v41  ;;  %v5625_v50 = vmax.f32 %v5561_v7, 0.0  ;;  %v5509_v1 = vunpack.c.l.bf16 %v7604_v44 }
 0x489   : > { %v5560_v18 = vadd.f32 %v5496_v10, %v5268_v39  ;;  %v5623_v25 = vmax.f32 %v5559_v12, 0.0  ;;  %v7605_v10 = vld [vmem:[%s7882_s15 + $0x50] sm:$0xff]   ;;  %v5510_v39 = vunpack.c.h.bf16 %v7604_v44 }
 0x48a   : > { %v5626_v37 = vmax.f32 %v5562_v32, 0.0  ;;  %v5507_v7 = vunpack.c.l.bf16 %v7605_v10 }
 0x48b   : > { %v5624_v0 = vmax.f32 %v5560_v18, 0.0  ;;  %v7247_v46 = vpop.f32.mrb[108].mxu0 }
 0x48c   : > { %v6460_v38 = vpack.c.bf16 %v5626_v37, %v5625_v50  ;;  %v5289_v9 = vadd.f32 %v7247_v46, %v10065_v16  ;;  %v5280_v49 = vpop.f32.mrb[109].mxu0  ;;  %v5508_v37 = vunpack.c.h.bf16 %v7605_v10 }
 0x48d   : > { %v6455_v14 = vpack.c.bf16 %v5624_v0, %v5623_v25  ;;  %v5281_v61 = vadd.f32 %v10065_v16, %v5280_v49  ;;  %v7248_v42 = vpop.f32.mrb[110].mxu0  ;;  %v7606_v49 = vld [vmem:[%s7882_s15 + $0x68] sm:$0xff]  }
 0x48e   : > { %6596 = vst [vmem:[%s10079_s9 + $0x28] sm:$0xff] %v6460_v38   ;;  %v5565_v36 = vadd.f32 %v5501_v56, %v5289_v9  ;;  %v5292_v51 = vadd.f32 %v7248_v42, %v10065_v16  ;;  %v5283_v13 = vpop.f32.mrb[111].mxu0 }
 0x48f   : > { %6595 = vst [vmem:[%s10079_s9 + $0x20] sm:$0xff] %v6455_v14   ;;  %v5563_v22 = vadd.f32 %v5499_v26, %v5281_v61  ;;  %v5284_v20 = vadd.f32 %v10065_v16, %v5283_v13 }
 0x490   : > { %v5566_v57 = vadd.f32 %v5502_v28, %v5292_v51  ;;  %v5629_v47 = vmax.f32 %v5565_v36, 0.0  ;;  %v5513_v28 = vunpack.c.l.bf16 %v7606_v49 }
 0x491   : > { %v5564_v21 = vadd.f32 %v5500_v48, %v5284_v20  ;;  %v5627_v33 = vmax.f32 %v5563_v22, 0.0  ;;  %v7607_v48 = vld [vmem:[%s7882_s15 + $0x60] sm:$0xff]   ;;  %v5514_v20 = vunpack.c.h.bf16 %v7606_v49 }
 0x492   : > { %v5630_v29 = vmax.f32 %v5566_v57, 0.0  ;;  %v5511_v36 = vunpack.c.l.bf16 %v7607_v48 }
 0x493   : > { %v5628_v35 = vmax.f32 %v5564_v21, 0.0  ;;  %v7251_v2 = vpop.f32.mrb[112].mxu0 }
 0x494   : > { %v6470_v6 = vpack.c.bf16 %v5630_v29, %v5629_v47  ;;  %v5305_v34 = vadd.f32 %v7251_v2, %v10065_v16  ;;  %v5296_v60 = vpop.f32.mrb[113].mxu0  ;;  %v5512_v29 = vunpack.c.h.bf16 %v7607_v48 }
 0x495   : > { %v6465_v24 = vpack.c.bf16 %v5628_v35, %v5627_v33  ;;  %v5297_v53 = vadd.f32 %v10065_v16, %v5296_v60  ;;  %v7252_v43 = vpop.f32.mrb[114].mxu0  ;;  %v7608_v60 = vld [vmem:[%s7882_s15 + $0x78] sm:$0xff]  }
 0x496   : > { %6598 = vst [vmem:[%s10079_s9 + $0x38] sm:$0xff] %v6470_v6   ;;  %v5569_v45 = vadd.f32 %v5505_v19, %v5305_v34  ;;  %v5308_v55 = vadd.f32 %v7252_v43, %v10065_v16  ;;  %v5299_v59 = vpop.f32.mrb[115].mxu0 }
 0x497   : > { %6597 = vst [vmem:[%s10079_s9 + $0x30] sm:$0xff] %v6465_v24   ;;  %v5567_v3 = vadd.f32 %v5503_v4, %v5297_v53  ;;  %v5300_v11 = vadd.f32 %v10065_v16, %v5299_v59 }
 0x498   : > { %v5570_v63 = vadd.f32 %v5506_v27, %v5308_v55  ;;  %v5633_v30 = vmax.f32 %v5569_v45, 0.0  ;;  %v5517_v27 = vunpack.c.l.bf16 %v7608_v60 }
 0x499   : > { %v5568_v62 = vadd.f32 %v5504_v58, %v5300_v11  ;;  %v5631_v23 = vmax.f32 %v5567_v3, 0.0  ;;  %v7609_v58 = vld [vmem:[%s7882_s15 + $0x70] sm:$0xff]   ;;  %v5518_v11 = vunpack.c.h.bf16 %v7608_v60 }
 0x49a   : > { %v5634_v17 = vmax.f32 %v5570_v63, 0.0  ;;  %v5515_v45 = vunpack.c.l.bf16 %v7609_v58 }
 0x49b   : > { %v5632_v8 = vmax.f32 %v5568_v62, 0.0  ;;  %v7255_v15 = vpop.f32.mrb[116].mxu0 }
 0x49c   : > { %v6480_v41 = vpack.c.bf16 %v5634_v17, %v5633_v30  ;;  %v5321_v40 = vadd.f32 %v7255_v15, %v10065_v16  ;;  %v5312_v12 = vpop.f32.mrb[117].mxu0  ;;  %v5516_v17 = vunpack.c.h.bf16 %v7609_v58 }
 0x49d   : > { %v6475_v32 = vpack.c.bf16 %v5632_v8, %v5631_v23  ;;  %v5313_v18 = vadd.f32 %v10065_v16, %v5312_v12  ;;  %v7256_v50 = vpop.f32.mrb[118].mxu0  ;;  %v7610_v12 = vld [vmem:[%s7882_s15 + $0x88] sm:$0xff]  }
 0x49e   : > { %6600 = vst [vmem:[%s10079_s9 + $0x48] sm:$0xff] %v6480_v41   ;;  %v5573_v31 = vadd.f32 %v5509_v1, %v5321_v40  ;;  %v5324_v56 = vadd.f32 %v7256_v50, %v10065_v16  ;;  %v5315_v25 = vpop.f32.mrb[119].mxu0 }
 0x49f   : > { %6599 = vst [vmem:[%s10079_s9 + $0x40] sm:$0xff] %v6475_v32   ;;  %v5571_v0 = vadd.f32 %v5507_v7, %v5313_v18  ;;  %v5316_v46 = vadd.f32 %v10065_v16, %v5315_v25 }
 0x4a0   : > { %v5574_v52 = vadd.f32 %v5510_v39, %v5324_v56  ;;  %v5637_v38 = vmax.f32 %v5573_v31, 0.0  ;;  %v5521_v39 = vunpack.c.l.bf16 %v7610_v12 }
 0x4a1   : > { %v5572_v26 = vadd.f32 %v5508_v37, %v5316_v46  ;;  %v5635_v14 = vmax.f32 %v5571_v0, 0.0  ;;  %v7611_v37 = vld [vmem:[%s7882_s15 + $0x80] sm:$0xff]   ;;  %v5522_v46 = vunpack.c.h.bf16 %v7610_v12 }
 0x4a2   : > { %v5638_v9 = vmax.f32 %v5574_v52, 0.0  ;;  %v5519_v31 = vunpack.c.l.bf16 %v7611_v37 }
 0x4a3   : > { %v5636_v61 = vmax.f32 %v5572_v26, 0.0  ;;  %v7259_v42 = vpop.f32.mrb[120].mxu0 }
 0x4a4   : > { %v6490_v51 = vpack.c.bf16 %v5638_v9, %v5637_v38  ;;  %v5337_v13 = vadd.f32 %v7259_v42, %v10065_v16  ;;  %v5328_v22 = vpop.f32.mrb[121].mxu0  ;;  %v5520_v9 = vunpack.c.h.bf16 %v7611_v37 }
 0x4a5   : > { %v6485_v57 = vpack.c.bf16 %v5636_v61, %v5635_v14  ;;  %v5329_v21 = vadd.f32 %v10065_v16, %v5328_v22  ;;  %v7260_v47 = vpop.f32.mrb[122].mxu0  ;;  %v7612_v22 = vld [vmem:[%s7882_s15 + $0x98] sm:$0xff]  }
 0x4a6   : > { %6602 = vst [vmem:[%s10079_s9 + $0x58] sm:$0xff] %v6490_v51   ;;  %v5577_v54 = vadd.f32 %v5513_v28, %v5337_v13  ;;  %v5340_v19 = vadd.f32 %v7260_v47, %v10065_v16  ;;  %v5331_v33 = vpop.f32.mrb[123].mxu0 }
 0x4a7   : > { %6601 = vst [vmem:[%s10079_s9 + $0x50] sm:$0xff] %v6485_v57   ;;  %v5575_v35 = vadd.f32 %v5511_v36, %v5329_v21  ;;  %v5332_v2 = vadd.f32 %v10065_v16, %v5331_v33 }
 0x4a8   : > { %v5578_v5 = vadd.f32 %v5514_v20, %v5340_v19  ;;  %v5641_v6 = vmax.f32 %v5577_v54, 0.0  ;;  %v5525_v20 = vunpack.c.l.bf16 %v7612_v22 }
 0x4a9   : > { %v5576_v4 = vadd.f32 %v5512_v29, %v5332_v2  ;;  %v5639_v24 = vmax.f32 %v5575_v35, 0.0  ;;  %v7613_v29 = vld [vmem:[%s7882_s15 + $0x90] sm:$0xff]   ;;  %v5526_v2 = vunpack.c.h.bf16 %v7612_v22 }
 0x4aa   : > { %v5642_v34 = vmax.f32 %v5578_v5, 0.0  ;;  %v5523_v54 = vunpack.c.l.bf16 %v7613_v29 }
 0x4ab   : > { %v5640_v53 = vmax.f32 %v5576_v4, 0.0  ;;  %v7263_v43 = vpop.f32.mrb[124].mxu0 }
 0x4ac   : > { %v6500_v55 = vpack.c.bf16 %v5642_v34, %v5641_v6  ;;  %v5353_v59 = vadd.f32 %v7263_v43, %v10065_v16  ;;  %v5344_v3 = vpop.f32.mrb[125].mxu0  ;;  %v5524_v34 = vunpack.c.h.bf16 %v7613_v29 }
 0x4ad   : > { %v6495_v63 = vpack.c.bf16 %v5640_v53, %v5639_v24  ;;  %v5345_v62 = vadd.f32 %v10065_v16, %v5344_v3  ;;  %v7264_v30 = vpop.f32.mrb[126].mxu0  ;;  %v7614_v3 = vld [vmem:[%s7882_s15 + $0xa8] sm:$0xff]  }
 0x4ae   : > { %6604 = vst [vmem:[%s10079_s9 + $0x68] sm:$0xff] %v6500_v55   ;;  %v5581_v44 = vadd.f32 %v5517_v27, %v5353_v59  ;;  %v5356_v1 = vadd.f32 %v7264_v30, %v10065_v16  ;;  %v5347_v23 = vpop.f32.mrb[127].mxu0 }
 0x4af   : > { %6603 = vst [vmem:[%s10079_s9 + $0x60] sm:$0xff] %v6495_v63   ;;  %v5579_v8 = vadd.f32 %v5515_v45, %v5345_v62  ;;  %v5348_v15 = vadd.f32 %v10065_v16, %v5347_v23 }
 0x4b0   : > { %v5582_v10 = vadd.f32 %v5518_v11, %v5356_v1  ;;  %v5645_v41 = vmax.f32 %v5581_v44, 0.0  ;;  %v5529_v11 = vunpack.c.l.bf16 %v7614_v3 }
 0x4b1   : > { %v5580_v7 = vadd.f32 %v5516_v17, %v5348_v15  ;;  %v5643_v32 = vmax.f32 %v5579_v8, 0.0  ;;  %v7615_v17 = vld [vmem:[%s7882_s15 + $0xa0] sm:$0xff]   ;;  %v5530_v15 = vunpack.c.h.bf16 %v7614_v3 }
 0x4b2   : > { %v5646_v40 = vmax.f32 %v5582_v10, 0.0  ;;  %v5527_v44 = vunpack.c.l.bf16 %v7615_v17 }
 0x4b3   : > { %v5644_v18 = vmax.f32 %v5580_v7, 0.0  ;;  %v7267_v50 = vpop.f32.mrb[128].mxu0 }
 0x4b4   : > { %v6510_v56 = vpack.c.bf16 %v5646_v40, %v5645_v41  ;;  %v5369_v25 = vadd.f32 %v7267_v50, %v10065_v16  ;;  %v5360_v0 = vpop.f32.mrb[129].mxu0  ;;  %v5528_v40 = vunpack.c.h.bf16 %v7615_v17 }
 0x4b5   : > { %v6505_v52 = vpack.c.bf16 %v5644_v18, %v5643_v32  ;;  %v5361_v26 = vadd.f32 %v10065_v16, %v5360_v0  ;;  %v7268_v38 = vpop.f32.mrb[130].mxu0  ;;  %v7616_v0 = vld [vmem:[%s7882_s15 + $0xb8] sm:$0xff]  }
 0x4b6   : > { %6606 = vst [vmem:[%s10079_s9 + $0x78] sm:$0xff] %v6510_v56   ;;  %v5585_v49 = vadd.f32 %v5521_v39, %v5369_v25  ;;  %v5372_v28 = vadd.f32 %v7268_v38, %v10065_v16  ;;  %v5363_v14 = vpop.f32.mrb[131].mxu0 }
 0x4b7   : > { %6605 = vst [vmem:[%s10079_s9 + $0x70] sm:$0xff] %v6505_v52   ;;  %v5583_v61 = vadd.f32 %v5519_v31, %v5361_v26  ;;  %v5364_v42 = vadd.f32 %v10065_v16, %v5363_v14 }
 0x4b8   : > { %v5586_v48 = vadd.f32 %v5522_v46, %v5372_v28  ;;  %v5649_v51 = vmax.f32 %v5585_v49, 0.0  ;;  %v5533_v46 = vunpack.c.l.bf16 %v7616_v0 }
 0x4b9   : > { %v5584_v36 = vadd.f32 %v5520_v9, %v5364_v42  ;;  %v5647_v57 = vmax.f32 %v5583_v61, 0.0  ;;  %v7617_v9 = vld [vmem:[%s7882_s15 + $0xb0] sm:$0xff]   ;;  %v5534_v42 = vunpack.c.h.bf16 %v7616_v0 }
 0x4ba   : > { %v5650_v13 = vmax.f32 %v5586_v48, 0.0  ;;  %v5531_v49 = vunpack.c.l.bf16 %v7617_v9 }
 0x4bb   : > { %v5648_v21 = vmax.f32 %v5584_v36, 0.0  ;;  %v7271_v47 = vpop.f32.mrb[132].mxu0 }
 0x4bc   : > { %v6520_v19 = vpack.c.bf16 %v5650_v13, %v5649_v51  ;;  %v5385_v33 = vadd.f32 %v7271_v47, %v10065_v16  ;;  %v5376_v35 = vpop.f32.mrb[133].mxu0  ;;  %v5532_v13 = vunpack.c.h.bf16 %v7617_v9 }
 0x4bd   : > { %v6515_v5 = vpack.c.bf16 %v5648_v21, %v5647_v57  ;;  %v5377_v4 = vadd.f32 %v10065_v16, %v5376_v35  ;;  %v7272_v6 = vpop.f32.mrb[134].mxu0  ;;  %v7618_v35 = vld [vmem:[%s7882_s15 + $0xc8] sm:$0xff]  }
 0x4be   : > { %6608 = vst [vmem:[%s10079_s9 + $0x88] sm:$0xff] %v6520_v19   ;;  %v5589_v60 = vadd.f32 %v5525_v20, %v5385_v33  ;;  %v5388_v27 = vadd.f32 %v7272_v6, %v10065_v16  ;;  %v5379_v24 = vpop.f32.mrb[135].mxu0 }
 0x4bf   : > { %6607 = vst [vmem:[%s10079_s9 + $0x80] sm:$0xff] %v6515_v5   ;;  %v5587_v53 = vadd.f32 %v5523_v54, %v5377_v4  ;;  %v5380_v43 = vadd.f32 %v10065_v16, %v5379_v24 }
 0x4c0   : > { %v5590_v58 = vadd.f32 %v5526_v2, %v5388_v27  ;;  %v5653_v55 = vmax.f32 %v5589_v60, 0.0  ;;  %v5537_v2 = vunpack.c.l.bf16 %v7618_v35 }
 0x4c1   : > { %v5588_v45 = vadd.f32 %v5524_v34, %v5380_v43  ;;  %v5651_v63 = vmax.f32 %v5587_v53, 0.0  ;;  %v7619_v34 = vld [vmem:[%s7882_s15 + $0xc0] sm:$0xff]   ;;  %v5538_v43 = vunpack.c.h.bf16 %v7618_v35 }
 0x4c2   : > { %v5654_v59 = vmax.f32 %v5590_v58, 0.0  ;;  %v5535_v60 = vunpack.c.l.bf16 %v7619_v34 }
 0x4c3   : > { %v5652_v62 = vmax.f32 %v5588_v45, 0.0  ;;  %v7275_v30 = vpop.f32.mrb[136].mxu0 }
 0x4c4   : > { %v6530_v1 = vpack.c.bf16 %v5654_v59, %v5653_v55  ;;  %v5401_v23 = vadd.f32 %v7275_v30, %v10065_v16  ;;  %v5392_v8 = vpop.f32.mrb[137].mxu0  ;;  %v5536_v59 = vunpack.c.h.bf16 %v7619_v34 }
 0x4c5   : > { %v6525_v10 = vpack.c.bf16 %v5652_v62, %v5651_v63  ;;  %v5393_v7 = vadd.f32 %v10065_v16, %v5392_v8  ;;  %v7276_v41 = vpop.f32.mrb[138].mxu0  ;;  %v7620_v8 = vld [vmem:[%s7882_s15 + $0xd8] sm:$0xff]  }
 0x4c6   : > { %6610 = vst [vmem:[%s10079_s9 + $0x98] sm:$0xff] %v6530_v1   ;;  %v5593_v12 = vadd.f32 %v5529_v11, %v5401_v23  ;;  %v5404_v39 = vadd.f32 %v7276_v41, %v10065_v16  ;;  %v5395_v32 = vpop.f32.mrb[139].mxu0 }
 0x4c7   : > { %6609 = vst [vmem:[%s10079_s9 + $0x90] sm:$0xff] %v6525_v10   ;;  %v5591_v18 = vadd.f32 %v5527_v44, %v5393_v7  ;;  %v5396_v50 = vadd.f32 %v10065_v16, %v5395_v32 }
 0x4c8   : > { %v5594_v37 = vadd.f32 %v5530_v15, %v5404_v39  ;;  %v5657_v56 = vmax.f32 %v5593_v12, 0.0  ;;  %v5541_v15 = vunpack.c.l.bf16 %v7620_v8 }
 0x4c9   : > { %v5592_v31 = vadd.f32 %v5528_v40, %v5396_v50  ;;  %v5655_v52 = vmax.f32 %v5591_v18, 0.0  ;;  %v7621_v40 = vld [vmem:[%s7882_s15 + $0xd0] sm:$0xff]   ;;  %v5542_v50 = vunpack.c.h.bf16 %v7620_v8 }
 0x4ca   : > { %v5658_v25 = vmax.f32 %v5594_v37, 0.0  ;;  %v5539_v12 = vunpack.c.l.bf16 %v7621_v40 }
 0x4cb   : > { %v5656_v26 = vmax.f32 %v5592_v31, 0.0  ;;  %v7279_v38 = vpop.f32.mrb[140].mxu0 }
 0x4cc   : > { %v6540_v28 = vpack.c.bf16 %v5658_v25, %v5657_v56  ;;  %v5417_v14 = vadd.f32 %v7279_v38, %v10065_v16  ;;  %v5408_v61 = vpop.f32.mrb[141].mxu0  ;;  %v5540_v25 = vunpack.c.h.bf16 %v7621_v40 }
 0x4cd   : > { %v6535_v48 = vpack.c.bf16 %v5656_v26, %v5655_v52  ;;  %v5409_v36 = vadd.f32 %v10065_v16, %v5408_v61  ;;  %v7280_v51 = vpop.f32.mrb[142].mxu0  ;;  %v7622_v61 = vld [vmem:[%s7882_s15 + $0xe8] sm:$0xff]  }
 0x4ce   : > { %6612 = vst [vmem:[%s10079_s9 + $0xa8] sm:$0xff] %v6540_v28   ;;  %v5597_v22 = vadd.f32 %v5533_v46, %v5417_v14  ;;  %v5420_v20 = vadd.f32 %v7280_v51, %v10065_v16  ;;  %v5411_v57 = vpop.f32.mrb[143].mxu0 }
 0x4cf   : > { %6611 = vst [vmem:[%s10079_s9 + $0xa0] sm:$0xff] %v6535_v48   ;;  %v5595_v21 = vadd.f32 %v5531_v49, %v5409_v36  ;;  %v5412_v47 = vadd.f32 %v10065_v16, %v5411_v57 }
 0x4d0   : > { %v5598_v29 = vadd.f32 %v5534_v42, %v5420_v20  ;;  %v5661_v19 = vmax.f32 %v5597_v22, 0.0  ;;  %v5545_v42 = vunpack.c.l.bf16 %v7622_v61 }
 0x4d1   : > { %v5596_v54 = vadd.f32 %v5532_v13, %v5412_v47  ;;  %v5659_v5 = vmax.f32 %v5595_v21, 0.0  ;;  %v7623_v13 = vld [vmem:[%s7882_s15 + $0xe0] sm:$0xff]   ;;  %v5546_v47 = vunpack.c.h.bf16 %v7622_v61 }
 0x4d2   : > { %v5662_v33 = vmax.f32 %v5598_v29, 0.0  ;;  %v5543_v22 = vunpack.c.l.bf16 %v7623_v13 }
 0x4d3   : > { %v5660_v4 = vmax.f32 %v5596_v54, 0.0  ;;  %v7283_v6 = vpop.f32.mrb[144].mxu0 }
 0x4d4   : > { %v6550_v27 = vpack.c.bf16 %v5662_v33, %v5661_v19  ;;  %v5433_v24 = vadd.f32 %v7283_v6, %v10065_v16  ;;  %v5424_v53 = vpop.f32.mrb[145].mxu0  ;;  %v5544_v33 = vunpack.c.h.bf16 %v7623_v13 }
 0x4d5   : > { %v6545_v58 = vpack.c.bf16 %v5660_v4, %v5659_v5  ;;  %v5425_v45 = vadd.f32 %v10065_v16, %v5424_v53  ;;  %v7284_v55 = vpop.f32.mrb[146].mxu0  ;;  %v7624_v53 = vld [vmem:[%s7882_s15 + $0xf8] sm:$0xff]  }
 0x4d6   : > { %6614 = vst [vmem:[%s10079_s9 + $0xb8] sm:$0xff] %v6550_v27   ;;  %v5601_v3 = vadd.f32 %v5537_v2, %v5433_v24  ;;  %v5436_v11 = vadd.f32 %v7284_v55, %v10065_v16  ;;  %v5427_v63 = vpop.f32.mrb[147].mxu0 }
 0x4d7   : > { %6613 = vst [vmem:[%s10079_s9 + $0xb0] sm:$0xff] %v6545_v58   ;;  %v5599_v62 = vadd.f32 %v5535_v60, %v5425_v45  ;;  %v5428_v30 = vadd.f32 %v10065_v16, %v5427_v63 }
 0x4d8   : > { %v5602_v17 = vadd.f32 %v5538_v43, %v5436_v11  ;;  %v5665_v1 = vmax.f32 %v5601_v3, 0.0  ;;  %v5549_v43 = vunpack.c.l.bf16 %v7624_v53 }
 0x4d9   : > { %v5600_v44 = vadd.f32 %v5536_v59, %v5428_v30  ;;  %v5663_v10 = vmax.f32 %v5599_v62, 0.0  ;;  %v7625_v59 = vld [vmem:[%s7882_s15 + $0xf0] sm:$0xff]   ;;  %v5550_v30 = vunpack.c.h.bf16 %v7624_v53  ;;  %s6014_s15 = sshll.u32 %s10079_s9, 4  ;;  %s10204_s15 = int_to_ptr.vmem [resolvable:$true] %s6014_s15 }
 0x4da   : > { %v5666_v23 = vmax.f32 %v5602_v17, 0.0  ;;  %v5547_v3 = vunpack.c.l.bf16 %v7625_v59  ;;  %s7656_s20 = scalar_lea.vmem %s10204_s15, 4096  ;;  %p7663_p8 = scmp.lt.s32.totalorder %s10204_s15, %s7661_s23 }
 0x4db   : > { %v5664_v7 = vmax.f32 %v5600_v44, 0.0  ;;  %v7287_v41 = vpop.f32.mrb[148].mxu0  ;;  %p7657_p6 = scmp.ne.s32.totalorder %s10204_s15, %s7656_s20  ;;  %p7664_p9 = scmp.lt.s32.totalorder %s7662_s29, %s7656_s20 }
 0x4dc   : > { %v6560_v39 = vpack.c.bf16 %v5666_v23, %v5665_v1  ;;  %v5449_v32 = vadd.f32 %v7287_v41, %v10065_v16  ;;  %v5440_v18 = vpop.f32.mrb[149].mxu0  ;;  %v5548_v23 = vunpack.c.h.bf16 %v7625_v59 }
 0x4dd   : > { %v6555_v37 = vpack.c.bf16 %v5664_v7, %v5663_v10  ;;  %v5441_v31 = vadd.f32 %v10065_v16, %v5440_v18  ;;  %v7288_v56 = vpop.f32.mrb[150].mxu0  ;;  %p7658_p11 = pnand %p7657_p6, %p10565_p10  ;;  %p7665_p13 = por %p7664_p9, %p7663_p8 }
 0x4de   : > { %6616 = vst [vmem:[%s10079_s9 + $0xc8] sm:$0xff] %v6560_v39   ;;  %v5605_v0 = vadd.f32 %v5541_v15, %v5449_v32  ;;  %v5452_v46 = vadd.f32 %v7288_v56, %v10065_v16  ;;  %v5443_v52 = vpop.f32.mrb[151].mxu0 }
 0x4df   : > { %6615 = vst [vmem:[%s10079_s9 + $0xc0] sm:$0xff] %v6555_v37   ;;  %v5603_v26 = vadd.f32 %v5539_v12, %v5441_v31  ;;  %v5444_v38 = vadd.f32 %v10065_v16, %v5443_v52  ;;  %p7659_p12 = pneg %p7658_p11 }
 0x4e0   : > { %v5606_v9 = vadd.f32 %v5542_v50, %v5452_v46  ;;  %v5669_v28 = vmax.f32 %v5605_v0, 0.0 }
 0x4e1   : > { %v5604_v49 = vadd.f32 %v5540_v25, %v5444_v38  ;;  %v5667_v48 = vmax.f32 %v5603_v26, 0.0  ;;  %p7666_p1 = pnand %p7665_p13, %p7659_p12 }
 0x4e2   : > { %v5670_v14 = vmax.f32 %v5606_v9, 0.0 }
 0x4e3   : > { %v5668_v36 = vmax.f32 %v5604_v49, 0.0  ;;  %v7291_v51 = vpop.f32.mrb[152].mxu0 }
 0x4e4   : > { %v6570_v20 = vpack.c.bf16 %v5670_v14, %v5669_v28  ;;  %v5465_v57 = vadd.f32 %v7291_v51, %v10065_v16  ;;  %v5456_v21 = vpop.f32.mrb[153].mxu0 }
 0x4e5   : > { %v6565_v29 = vpack.c.bf16 %v5668_v36, %v5667_v48  ;;  %v5457_v54 = vadd.f32 %v10065_v16, %v5456_v21  ;;  %v7292_v19 = vpop.f32.mrb[154].mxu0 }
 0x4e6   : > { %6618 = vst [vmem:[%s10079_s9 + $0xd8] sm:$0xff] %v6570_v20   ;;  %v5609_v35 = vadd.f32 %v5545_v42, %v5465_v57  ;;  %v5468_v2 = vadd.f32 %v7292_v19, %v10065_v16  ;;  %v5459_v5 = vpop.f32.mrb[155].mxu0 }
 0x4e7   : > { %6617 = vst [vmem:[%s10079_s9 + $0xd0] sm:$0xff] %v6565_v29   ;;  %v5607_v4 = vadd.f32 %v5543_v22, %v5457_v54  ;;  %v5460_v6 = vadd.f32 %v10065_v16, %v5459_v5 }
 0x4e8   : > { %v5610_v34 = vadd.f32 %v5546_v47, %v5468_v2  ;;  %v5673_v27 = vmax.f32 %v5609_v35, 0.0 }
 0x4e9   : > { %v5608_v60 = vadd.f32 %v5544_v33, %v5460_v6  ;;  %v5671_v58 = vmax.f32 %v5607_v4, 0.0 }
 0x4ea   : > { %v5674_v24 = vmax.f32 %v5610_v34, 0.0 }
 0x4eb   : > { %v5672_v45 = vmax.f32 %v5608_v60, 0.0  ;;  %v7295_v55 = vpop.f32.mrb[156].mxu0 }
 0x4ec   : > { %v6580_v11 = vpack.c.bf16 %v5674_v24, %v5673_v27  ;;  %v5481_v63 = vadd.f32 %v7295_v55, %v10065_v16  ;;  %v5472_v62 = vpop.f32.mrb[157].mxu0 }
 0x4ed   : > { %v6575_v17 = vpack.c.bf16 %v5672_v45, %v5671_v58  ;;  %v5473_v44 = vadd.f32 %v10065_v16, %v5472_v62  ;;  %v7296_v1 = vpop.f32.mrb[158].mxu0 }
 0x4ee   : > { %6620 = vst [vmem:[%s10079_s9 + $0xe8] sm:$0xff] %v6580_v11   ;;  %v5613_v8 = vadd.f32 %v5549_v43, %v5481_v63  ;;  %v5484_v15 = vadd.f32 %v7296_v1, %v10065_v16  ;;  %v5475_v10 = vpop.f32.mrb[159].mxu0 }
 0x4ef   : > { %6619 = vst [vmem:[%s10079_s9 + $0xe0] sm:$0xff] %v6575_v17   ;;  %v5611_v7 = vadd.f32 %v5547_v3, %v5473_v44  ;;  %v5476_v41 = vadd.f32 %v10065_v16, %v5475_v10 }
 0x4f0   : > { %v5614_v40 = vadd.f32 %v5550_v30, %v5484_v15  ;;  %v5677_v39 = vmax.f32 %v5613_v8, 0.0 }
 0x4f1   : > { %v5612_v12 = vadd.f32 %v5548_v23, %v5476_v41  ;;  %v5675_v18 = vmax.f32 %v5611_v7, 0.0 }
 0x4f2   : > { %v5678_v32 = vmax.f32 %v5614_v40, 0.0 }
 0x4f3   : > { %v5676_v50 = vmax.f32 %v5612_v12, 0.0 }
 0x4f4   : > { %v6590_v37 = vpack.c.bf16 %v5678_v32, %v5677_v39 }
 0x4f5   : > { %v6585_v31 = vpack.c.bf16 %v5676_v50, %v5675_v18 }
 0x4f6   : > { %6622 = vst [vmem:[%s10079_s9 + $0xf8] sm:$0xff] %v6590_v37  }
 0x4f7   : > { %6621 = vst [vmem:[%s10079_s9 + $0xf0] sm:$0xff] %v6585_v31  }
 0x4f8   : > { %7669 = shalt.err (!%p7666_p1)
}
 0x4f9   : > { %s7670_s21 = scalar_lea.hbm %s10202_s18, 4096  ;;  %s7674_s17 = scalar_lea.hbm %s10258_s7, 16384 }
 0x4fa   : > { %p7671_p3 = scmp.ne.s32.totalorder %s10202_s18, %s7670_s21  ;;  %p7675_p0 = scmp.lt.u32.totalorder %s10202_s18, %s10258_s7 }
 0x4fb   : > { %p7676_p2 = scmp.lt.u32.totalorder %s7674_s17, %s7670_s21  ;;  %p7678_p6 = scmp.lt.u32.totalorder %s7670_s21, %s10202_s18 }
 0x4fc   : > { %p7672_p4 = pnand %p7671_p3, %p10565_p10 }
 0x4fd   : > { %p7677_p7 = por %p7676_p2, %p7675_p0 }
 0x4fe   : > { %p7673_p5 = pneg %p7672_p4 }
 0x4ff   : > { %p7679_p11 = por %p7678_p6, %p7677_p7 }
 0x501   : > { %p7680_p12 = pnand %p7679_p11, %p7673_p5 }
 0x503   : > { %7683 = shalt.err (!%p7680_p12)
}
 0x504   : > { %s7732_s20 = smov 4  }
 0x505   : > { %7443 = dma.vmem_to_hbm [thread:$0]  (%p10565_p10), %s10204_s15, 4096, %s10202_s18, %s6000_s28, %s7730_s19, %s7730_s19, %s7732_s20  }
 0x506 PF: > { %p7454_p8 = scmp.ge.s32.totalorder %s7722_s27, 2  ;;  %s6029_s22 = sand.u32 1, %s7710_s24  }
 0x507   : > { %p10566_p9 = scmp.ne.s32.totalorder %s10276_s14, 0  ;;  %s6030_s23 = scalar_lea.sflag [#allocation5], %s6029_s22 }
 0x509   : > { %p7450_p13 = pnand %p7454_p8, %p10566_p9 }
 0x50b   : > { %7705 = dma.done.wait (!%p7450_p13), %s6030_s23, 4096  }
 0x50c   : > { %7707 = vsyncadd (!%p7450_p13), %s6030_s23, 4294963200  ;;  %p20_p1 = scmp.ge.s32.totalorder %s7798_s30, 6   ;;  %s10567_s24 = smov %s7714_s25 }
 0x50d   : > { %s10568_s25 = smov %s7718_s26  ;;  %s10569_s26 = smov %s7810_s10 }
 0x50e   : > { %s10570_s27 = smov %s7798_s30  ;;  %22 = sbr.rel (!%p20_p1) target bundleno = 5 (0x5), region = 98 }
 0x515   :  { %6035 = vsyncpa [#allocation4], 1 }
 0x516   :  { %6037 = vsyncpa [#allocation4 + $0x1], 1 }
 0x517   :  { %6038 = vsyncpa [#allocation5], 1 }
 0x518   :  { %6040 = vsyncpa [#allocation5 + $0x1], 1 }

</bundles_post_ra>
